<compile_context>
chip_gen: v7x
topology: tpu7x:2x2x1
jax: 0.10.0
libtpu: 0.0.40
codegen_flags: <defaults>
</compile_context>

<pallas_src>
import numpy as np
import jax
import jax.numpy as jnp
from jax.experimental import pallas as pl
from jax.experimental.pallas import tpu as pltpu


def _round_up(x, m):
    return (x + m - 1) // m * m


def make_kernel(module_num, n_gate_layers, H, P):
    M = module_num
    G = n_gate_layers

    def kernel(*refs):
        it = iter(refs)
        mod_in = next(it)[...]          # (tb, d_mod)
        gate_in = next(it)[...]         # (tb, d_gate)
        mod_w0 = next(it)[...]          # (d_mod, H)
        mod_b0 = next(it)[...]          # (1, H)
        mod_w_rest = next(it)           # ref (M-1, H, H)
        mod_b_rest = next(it)           # ref (M-1, 1, H)
        gate_w = [next(it)[...] for _ in range(G)]
        gate_b = [next(it)[...] for _ in range(G)]
        expand = next(it)               # ref (M, P, M*H)  gate-chunk -> lane-group bcast
        place = next(it)                # ref (M, H, M*H)  h_i -> lane-group i placement
        fold = next(it)[...]            # (M*H, H)         lane-group sum
        mem = next(it)[...]             # (M, P)           chunk membership (0/1)
        seg = next(it)[...]             # (P, P)           block-diagonal ones
        out_ref = next(it)              # (tb, H + P) = [last_out | gates]

        f32 = jnp.float32

        # ---- gate MLP (MXU matmuls + VPU relu) ----
        g = gate_in
        for l in range(G):
            g = jnp.dot(g, gate_w[l], preferred_element_type=f32) + gate_b[l]
            if l < G - 1:
                g = jnp.maximum(g, 0.0)
        logits = g                      # (tb, P), P = M*(M+1)//2

        # ---- segmented (per-chunk) softmax; cross-lane work on the MXU ----
        # Exact per-chunk maxes are kept (stability parity with PyTorch); the
        # max scatter-back uses the membership matmul and the per-chunk sums use
        # the block-diagonal matmul -> no masked lane-sum / where+add scatter
        # loops on the XLU/VPU.
        NEG = jnp.float32(-1e30)
        cmaxes = []
        for m in range(M):
            in_chunk = mem[m:m + 1, :] > 0.5                       # (1, P)
            cmaxes.append(jnp.max(jnp.where(in_chunk, logits, NEG),
                                  axis=-1, keepdims=True))
        cmax = jnp.concatenate(cmaxes, axis=-1)                    # (tb, M)
        lane_max = jnp.dot(cmax, mem, preferred_element_type=f32)  # (tb, P)
        e = jnp.exp(logits - lane_max)
        den = jnp.dot(e, seg, preferred_element_type=f32)          # chunk sums, scattered
        soft = e / den                  # per-chunk softmax == gates == softmax_gates

        # ---- module FC chain with gated mixing + resnet, lane-dense state slab ----
        h0 = jnp.maximum(
            jnp.dot(mod_in, mod_w0, preferred_element_type=f32) + mod_b0, 0.0)
        S = jnp.dot(h0, place[0], preferred_element_type=f32)      # h0 -> group 0
        for i in range(1, M):
            gw = jnp.dot(soft, expand[i - 1], preferred_element_type=f32)   # (tb, M*H)
            mix = jnp.dot(S * gw, fold, preferred_element_type=f32)         # (tb, H)
            fc = jnp.maximum(
                jnp.dot(mix, mod_w_rest[i - 1], preferred_element_type=f32)
                + mod_b_rest[i - 1], 0.0)
            hi = fc + mix                                                    # use_resnet=True
            S = S + jnp.dot(hi, place[i], preferred_element_type=f32)       # -> group i
        gw = jnp.dot(soft, expand[M - 1], preferred_element_type=f32)
        last = jnp.dot(S * gw, fold, preferred_element_type=f32)            # (tb, H)

        # ---- single store; output slab is exactly H+P wide (no pad lanes) ----
        out_ref[...] = jnp.concatenate([last, soft], axis=-1)

    return kernel


def depth_route_forward(module_input, gate_input, gate_ws, gate_bs, mod_ws, mod_bs,
                        module_num, *, top_k=None, rescale_prob=True,
                        route_as_sample=False, use_resnet=True, resrouting=False,
                        explore_sample=False, tb=1024):
    M = module_num
    assert M >= 2, "DepthRoute kernel expects module_num >= 2"
    top_k = M if top_k is None else top_k
    if not (top_k == M and rescale_prob and use_resnet and not route_as_sample
            and not resrouting and not explore_sample):
        # TODO(synk): general top_k < module_num, multinomial explore sampling and
        # training-mode resrouting would need an in-kernel top-k / sampler; only
        # the default eval-mode config is implemented.
        raise NotImplementedError(
            "Pallas DepthRoute kernel only supports the default config "
            "(top_k == module_num, rescale_prob=True, use_resnet=True, no "
            "route_as_sample/resrouting/explore sampling, eval mode).")

    B, d_mod = module_input.shape
    _, d_gate = gate_input.shape
    G = len(gate_ws)
    H = mod_ws[0].shape[1]
    P = M * (M + 1) // 2
    MH = M * H
    L_out = H + P                      # exactly the useful lanes; no 128-pad

    # Batch tile: sublane-aligned, capped so the grid has >= 2 steps whenever B
    # allows it (both v7x TensorCores stay busy).  Inputs are NOT padded: the
    # grid is ragged; garbage rows of the last tile have no cross-row coupling
    # and never appear in the (B, L_out) output.
    tb = _round_up(max(8, min(tb, B)), 8)
    tb = min(tb, _round_up(max(8, -(-B // 2)), 8))
    grid = (pl.cdiv(B, tb),)

    # Stack the (H,H) module weights / biases into single slabs.
    mod_w0, mod_b0 = mod_ws[0], mod_bs[0].reshape(1, H)
    mod_w_rest = jnp.stack(mod_ws[1:], axis=0)                              # (M-1,H,H)
    mod_b_rest = jnp.stack([b.reshape(1, H) for b in mod_bs[1:]], axis=0)   # (M-1,1,H)
    gate_bs = [b.reshape(1, -1) for b in gate_bs]

    # Constant 0/1 routing matrices, built host-side; grid-invariant inputs are
    # fetched once by the pipeliner and their matmuls are numerically exact.
    chunk_off = np.cumsum([0] + list(range(1, M)))       # chunk c starts at chunk_off[c]
    expand = np.zeros((M, P, MH), np.float32)
    for c in range(M):
        for g in range(c + 1):
            expand[c, chunk_off[c] + g, g * H:(g + 1) * H] = 1.0
    place = np.zeros((M, H, MH), np.float32)
    for i in range(M):
        place[i, :, i * H:(i + 1) * H] = np.eye(H, dtype=np.float32)
    fold = np.tile(np.eye(H, dtype=np.float32), (M, 1))  # (MH, H)
    cid = np.zeros((P,), np.int64)
    for c in range(M):
        cid[chunk_off[c]:chunk_off[c] + c + 1] = c
    mem = (np.arange(M)[:, None] == cid[None, :]).astype(np.float32)        # (M, P)
    seg = (cid[:, None] == cid[None, :]).astype(np.float32)                 # (P, P)

    weight_args = [mod_w0, mod_b0, mod_w_rest, mod_b_rest,
                   *gate_ws, *gate_bs,
                   jnp.asarray(expand), jnp.asarray(place), jnp.asarray(fold),
                   jnp.asarray(mem), jnp.asarray(seg)]

    def _const_spec(a):
        nd = a.ndim
        return pl.BlockSpec(a.shape, lambda i, _n=nd: (0,) * _n)

    # module_input / gate_input stay as two separate full-row streams: each tile
    # is already a single contiguous DMA, whereas fusing them in the wrapper
    # would cost an extra HBM round-trip of both arrays (same reason the
    # wrapper-side pad was removed).
    in_specs = [
        pl.BlockSpec((tb, d_mod), lambda i: (i, 0)),
        pl.BlockSpec((tb, d_gate), lambda i: (i, 0)),
    ] + [_const_spec(a) for a in weight_args]

    slab = pl.pallas_call(
        make_kernel(M, G, H, P),
        grid=grid,
        in_specs=in_specs,
        out_specs=pl.BlockSpec((tb, L_out), lambda i: (i, 0)),
        out_shape=jax.ShapeDtypeStruct((B, L_out), jnp.float32),
        compiler_params=pltpu.CompilerParams(dimension_semantics=("parallel",)),
    )(module_input, gate_input, *weight_args)

    last_out = slab[:, :H]
    gates = slab[:, H:]
    # top_k == module_num  =>  the one-hot sum is a compile-time constant of ones
    # and softmax_gates_cat == gates_cat; both produced outside the kernel.
    onehot = jnp.ones((B, P), jnp.float32)
    return last_out, gates, onehot, gates


# ---------------- parameter init (matches _fanin_init's fan_in quirk) --------
def _linear_params(key, in_dim, out_dim):
    # PyTorch weight shape is (out, in); _fanin_init uses fan_in = size[0] = out_dim
    bound = (1.0 / out_dim) ** 0.5
    w = jax.random.uniform(key, (in_dim, out_dim), jnp.float32, -bound, bound)
    b = jnp.full((1, out_dim), 0.1, jnp.float32)   # _constant_bias_init
    return w, b


# ---------------- pure-JAX reference for verification ------------------------
def reference(module_input, gate_input, gate_ws, gate_bs, mod_ws, mod_bs, M):
    g = gate_input
    for l in range(len(gate_ws)):
        g = g @ gate_ws[l] + gate_bs[l]
        if l < len(gate_ws) - 1:
            g = jnp.maximum(g, 0.0)
    logits = g
    gates_list = []
    off = 0
    for m in range(1, M + 1):
        gates_list.append(jax.nn.softmax(logits[:, off:off + m], axis=-1))
        off += m
    h = jnp.maximum(module_input @ mod_ws[0] + mod_bs[0], 0.0)
    outs = [h]
    for i in range(1, M):
        gate = gates_list[i - 1]
        mix = sum(outs[j] * gate[:, j:j + 1] for j in range(i))
        outs.append(jnp.maximum(mix @ mod_ws[i] + mod_bs[i], 0.0) + mix)
    lg = gates_list[M - 1]
    last = sum(outs[j] * lg[:, j:j + 1] for j in range(M))
    cat = jnp.concatenate(gates_list, axis=-1)
    return last, cat, jnp.ones_like(cat), cat


if __name__ == "__main__":
    # small shapes consistent with the module
    B = 200                      # not a tile multiple (exercises the ragged last tile)
    module_input_shape = 24
    module_hidden = 32           # module_num * module_hidden = 128 lanes
    module_num = 4
    gate_input_shape = 20
    gate_hiddens = [32, 16]

    key = jax.random.PRNGKey(0)
    keys = jax.random.split(key, 16)
    ki = iter(range(16))

    # module_fcs
    mod_ws, mod_bs = [], []
    w, b = _linear_params(keys[next(ki)], module_input_shape, module_hidden)
    mod_ws.append(w); mod_bs.append(b)
    for _ in range(module_num - 1):
        w, b = _linear_params(keys[next(ki)], module_hidden, module_hidden)
        mod_ws.append(w); mod_bs.append(b)

    # gates
    gate_ws, gate_bs = [], []
    in_dim = gate_input_shape
    for h in gate_hiddens:
        w, b = _linear_params(keys[next(ki)], in_dim, h)
        gate_ws.append(w); gate_bs.append(b)
        in_dim = h
    gate_out_dim = module_num * (module_num + 1) // 2
    w, b = _linear_params(keys[next(ki)], in_dim, gate_out_dim)
    gate_ws.append(w); gate_bs.append(b)

    # inputs
    module_input = jax.random.normal(keys[next(ki)], (B, module_input_shape), jnp.float32)
    gate_input = jax.random.normal(keys[next(ki)], (B, gate_input_shape), jnp.float32)

    # default tb=1024 is capped to ceil(B/2) rounded to 8 -> two grid steps + ragged tail
    outs = depth_route_forward(module_input, gate_input,
                               gate_ws, gate_bs, mod_ws, mod_bs, module_num)
    outs = jax.block_until_ready(outs)

    refs = reference(module_input, gate_input, gate_ws, gate_bs, mod_ws, mod_bs,
                     module_num)
    for o, r in zip(outs, refs):
        assert o.shape == r.shape and o.dtype == r.dtype
        assert jnp.allclose(o, r, rtol=1e-5, atol=1e-5), \
            float(jnp.max(jnp.abs(o - r)))

    print("KERNEL_OK")
</pallas_src>

<mosaic_0001>
module attributes {stable_mosaic.version = 11 : i64} {
  func.func @kernel(%arg0: i32, %arg1: memref<104x24xf32, #tpu.memory_space<vmem>>, %arg2: memref<104x20xf32, #tpu.memory_space<vmem>>, %arg3: memref<24x32xf32, #tpu.memory_space<vmem>>, %arg4: memref<1x32xf32, #tpu.memory_space<vmem>>, %arg5: memref<3x32x32xf32, #tpu.memory_space<vmem>>, %arg6: memref<3x1x32xf32, #tpu.memory_space<vmem>>, %arg7: memref<20x32xf32, #tpu.memory_space<vmem>>, %arg8: memref<32x16xf32, #tpu.memory_space<vmem>>, %arg9: memref<16x10xf32, #tpu.memory_space<vmem>>, %arg10: memref<1x32xf32, #tpu.memory_space<vmem>>, %arg11: memref<1x16xf32, #tpu.memory_space<vmem>>, %arg12: memref<1x10xf32, #tpu.memory_space<vmem>>, %arg13: memref<4x10x128xf32, #tpu.memory_space<vmem>>, %arg14: memref<4x32x128xf32, #tpu.memory_space<vmem>>, %arg15: memref<128x32xf32, #tpu.memory_space<vmem>>, %arg16: memref<4x10xf32, #tpu.memory_space<vmem>>, %arg17: memref<10x10xf32, #tpu.memory_space<vmem>>, %arg18: memref<104x42xf32, #tpu.memory_space<vmem>>) attributes {dimension_semantics = [#tpu.dimension_semantics<parallel>], iteration_bounds = array<i64: 2>, scalar_prefetch = 0 : i64, scratch_operands = 0 : i64, tpu.core_type = #tpu.core_type<tc>, window_params = [{transform_indices = @transform_0, window_bounds = array<i64: 104, 24>}, {transform_indices = @transform_1, window_bounds = array<i64: 104, 20>}, {pipeline_mode = #tpu.pipeline_mode<synchronous>, transform_indices = @transform_2, window_bounds = array<i64: 24, 32>}, {pipeline_mode = #tpu.pipeline_mode<synchronous>, transform_indices = @transform_3, window_bounds = array<i64: 1, 32>}, {pipeline_mode = #tpu.pipeline_mode<synchronous>, transform_indices = @transform_4, window_bounds = array<i64: 3, 32, 32>}, {pipeline_mode = #tpu.pipeline_mode<synchronous>, transform_indices = @transform_5, window_bounds = array<i64: 3, 1, 32>}, {pipeline_mode = #tpu.pipeline_mode<synchronous>, transform_indices = @transform_6, window_bounds = array<i64: 20, 32>}, {pipeline_mode = #tpu.pipeline_mode<synchronous>, transform_indices = @transform_7, window_bounds = array<i64: 32, 16>}, {pipeline_mode = #tpu.pipeline_mode<synchronous>, transform_indices = @transform_8, window_bounds = array<i64: 16, 10>}, {pipeline_mode = #tpu.pipeline_mode<synchronous>, transform_indices = @transform_9, window_bounds = array<i64: 1, 32>}, {pipeline_mode = #tpu.pipeline_mode<synchronous>, transform_indices = @transform_10, window_bounds = array<i64: 1, 16>}, {pipeline_mode = #tpu.pipeline_mode<synchronous>, transform_indices = @transform_11, window_bounds = array<i64: 1, 10>}, {pipeline_mode = #tpu.pipeline_mode<synchronous>, transform_indices = @transform_12, window_bounds = array<i64: 4, 10, 128>}, {pipeline_mode = #tpu.pipeline_mode<synchronous>, transform_indices = @transform_13, window_bounds = array<i64: 4, 32, 128>}, {pipeline_mode = #tpu.pipeline_mode<synchronous>, transform_indices = @transform_14, window_bounds = array<i64: 128, 32>}, {pipeline_mode = #tpu.pipeline_mode<synchronous>, transform_indices = @transform_15, window_bounds = array<i64: 4, 10>}, {pipeline_mode = #tpu.pipeline_mode<synchronous>, transform_indices = @transform_16, window_bounds = array<i64: 10, 10>}, {transform_indices = @transform_17, window_bounds = array<i64: 104, 42>}]} {
    %c0 = arith.constant 0 : index
    %c0_0 = arith.constant 0 : index
    %0 = vector.load %arg1[%c0, %c0_0] : memref<104x24xf32, #tpu.memory_space<vmem>>, vector<104x24xf32>
    %c0_1 = arith.constant 0 : index
    %c0_2 = arith.constant 0 : index
    %1 = vector.load %arg2[%c0_1, %c0_2] : memref<104x20xf32, #tpu.memory_space<vmem>>, vector<104x20xf32>
    %c0_3 = arith.constant 0 : index
    %c0_4 = arith.constant 0 : index
    %2 = vector.load %arg3[%c0_3, %c0_4] : memref<24x32xf32, #tpu.memory_space<vmem>>, vector<24x32xf32>
    %c0_5 = arith.constant 0 : index
    %c0_6 = arith.constant 0 : index
    %3 = vector.load %arg4[%c0_5, %c0_6] : memref<1x32xf32, #tpu.memory_space<vmem>>, vector<1x32xf32>
    %c0_7 = arith.constant 0 : index
    %c0_8 = arith.constant 0 : index
    %4 = vector.load %arg7[%c0_7, %c0_8] : memref<20x32xf32, #tpu.memory_space<vmem>>, vector<20x32xf32>
    %c0_9 = arith.constant 0 : index
    %c0_10 = arith.constant 0 : index
    %5 = vector.load %arg8[%c0_9, %c0_10] : memref<32x16xf32, #tpu.memory_space<vmem>>, vector<32x16xf32>
    %c0_11 = arith.constant 0 : index
    %c0_12 = arith.constant 0 : index
    %6 = vector.load %arg9[%c0_11, %c0_12] : memref<16x10xf32, #tpu.memory_space<vmem>>, vector<16x10xf32>
    %c0_13 = arith.constant 0 : index
    %c0_14 = arith.constant 0 : index
    %7 = vector.load %arg10[%c0_13, %c0_14] : memref<1x32xf32, #tpu.memory_space<vmem>>, vector<1x32xf32>
    %c0_15 = arith.constant 0 : index
    %c0_16 = arith.constant 0 : index
    %8 = vector.load %arg11[%c0_15, %c0_16] : memref<1x16xf32, #tpu.memory_space<vmem>>, vector<1x16xf32>
    %c0_17 = arith.constant 0 : index
    %c0_18 = arith.constant 0 : index
    %9 = vector.load %arg12[%c0_17, %c0_18] : memref<1x10xf32, #tpu.memory_space<vmem>>, vector<1x10xf32>
    %c0_19 = arith.constant 0 : index
    %c0_20 = arith.constant 0 : index
    %10 = vector.load %arg15[%c0_19, %c0_20] : memref<128x32xf32, #tpu.memory_space<vmem>>, vector<128x32xf32>
    %c0_21 = arith.constant 0 : index
    %c0_22 = arith.constant 0 : index
    %11 = vector.load %arg16[%c0_21, %c0_22] : memref<4x10xf32, #tpu.memory_space<vmem>>, vector<4x10xf32>
    %c0_23 = arith.constant 0 : index
    %c0_24 = arith.constant 0 : index
    %12 = vector.load %arg17[%c0_23, %c0_24] : memref<10x10xf32, #tpu.memory_space<vmem>>, vector<10x10xf32>
    %cst = arith.constant dense<0.000000e+00> : vector<104x32xf32>
    %13 = tpu.matmul %1, %4, %cst {dimension_numbers = #tpu.dot_dimension_numbers<[1], [0], [0], [1], [0, 0, 1, 1], [], []>} : vector<104x20xf32>, vector<20x32xf32>, vector<104x32xf32> -> vector<104x32xf32>
    %14 = vector.broadcast %7 : vector<1x32xf32> to vector<104x32xf32>
    %15 = arith.addf %13, %14 : vector<104x32xf32>
    %cst_25 = arith.constant 0.000000e+00 : f32
    %16 = vector.broadcast %cst_25 : f32 to vector<104x32xf32>
    %17 = arith.maximumf %15, %16 : vector<104x32xf32>
    %cst_26 = arith.constant dense<0.000000e+00> : vector<104x16xf32>
    %18 = tpu.matmul %17, %5, %cst_26 {dimension_numbers = #tpu.dot_dimension_numbers<[1], [0], [0], [1], [0, 0, 1, 1], [], []>} : vector<104x32xf32>, vector<32x16xf32>, vector<104x16xf32> -> vector<104x16xf32>
    %19 = vector.broadcast %8 : vector<1x16xf32> to vector<104x16xf32>
    %20 = arith.addf %18, %19 : vector<104x16xf32>
    %cst_27 = arith.constant 0.000000e+00 : f32
    %21 = vector.broadcast %cst_27 : f32 to vector<104x16xf32>
    %22 = arith.maximumf %20, %21 : vector<104x16xf32>
    %cst_28 = arith.constant dense<0.000000e+00> : vector<104x10xf32>
    %23 = tpu.matmul %22, %6, %cst_28 {dimension_numbers = #tpu.dot_dimension_numbers<[1], [0], [0], [1], [0, 0, 1, 1], [], []>} : vector<104x16xf32>, vector<16x10xf32>, vector<104x10xf32> -> vector<104x10xf32>
    %24 = vector.broadcast %9 : vector<1x10xf32> to vector<104x10xf32>
    %25 = arith.addf %23, %24 : vector<104x10xf32>
    %26 = vector.extract_strided_slice %11 {offsets = [0, 0], sizes = [1, 10], strides = [1, 1]} : vector<4x10xf32> to vector<1x10xf32>
    %cst_29 = arith.constant 5.000000e-01 : f32
    %27 = vector.broadcast %cst_29 : f32 to vector<1x10xf32>
    %28 = arith.cmpf ogt, %26, %27 : vector<1x10xf32>
    %cst_30 = arith.constant -1.000000e+30 : f32
    %29 = vector.shape_cast %28 : vector<1x10xi1> to vector<1x10xi1>
    %30 = vector.broadcast %29 : vector<1x10xi1> to vector<104x10xi1>
    %31 = vector.broadcast %cst_30 : f32 to vector<104x10xf32>
    %32 = arith.select %30, %25, %31 : vector<104x10xi1>, vector<104x10xf32>
    %cst_31 = arith.constant dense<0xFF800000> : vector<104xf32>
    %33 = vector.multi_reduction <maximumf>, %32, %cst_31 [1] : vector<104x10xf32> to vector<104xf32>
    %34 = vector.shape_cast %33 : vector<104xf32> to vector<104x1xf32>
    %35 = vector.extract_strided_slice %11 {offsets = [1, 0], sizes = [1, 10], strides = [1, 1]} : vector<4x10xf32> to vector<1x10xf32>
    %cst_32 = arith.constant 5.000000e-01 : f32
    %36 = vector.broadcast %cst_32 : f32 to vector<1x10xf32>
    %37 = arith.cmpf ogt, %35, %36 : vector<1x10xf32>
    %cst_33 = arith.constant -1.000000e+30 : f32
    %38 = vector.shape_cast %37 : vector<1x10xi1> to vector<1x10xi1>
    %39 = vector.broadcast %38 : vector<1x10xi1> to vector<104x10xi1>
    %40 = vector.broadcast %cst_33 : f32 to vector<104x10xf32>
    %41 = arith.select %39, %25, %40 : vector<104x10xi1>, vector<104x10xf32>
    %cst_34 = arith.constant dense<0xFF800000> : vector<104xf32>
    %42 = vector.multi_reduction <maximumf>, %41, %cst_34 [1] : vector<104x10xf32> to vector<104xf32>
    %43 = vector.shape_cast %42 : vector<104xf32> to vector<104x1xf32>
    %44 = vector.extract_strided_slice %11 {offsets = [2, 0], sizes = [1, 10], strides = [1, 1]} : vector<4x10xf32> to vector<1x10xf32>
    %cst_35 = arith.constant 5.000000e-01 : f32
    %45 = vector.broadcast %cst_35 : f32 to vector<1x10xf32>
    %46 = arith.cmpf ogt, %44, %45 : vector<1x10xf32>
    %cst_36 = arith.constant -1.000000e+30 : f32
    %47 = vector.shape_cast %46 : vector<1x10xi1> to vector<1x10xi1>
    %48 = vector.broadcast %47 : vector<1x10xi1> to vector<104x10xi1>
    %49 = vector.broadcast %cst_36 : f32 to vector<104x10xf32>
    %50 = arith.select %48, %25, %49 : vector<104x10xi1>, vector<104x10xf32>
    %cst_37 = arith.constant dense<0xFF800000> : vector<104xf32>
    %51 = vector.multi_reduction <maximumf>, %50, %cst_37 [1] : vector<104x10xf32> to vector<104xf32>
    %52 = vector.shape_cast %51 : vector<104xf32> to vector<104x1xf32>
    %53 = vector.extract_strided_slice %11 {offsets = [3, 0], sizes = [1, 10], strides = [1, 1]} : vector<4x10xf32> to vector<1x10xf32>
    %cst_38 = arith.constant 5.000000e-01 : f32
    %54 = vector.broadcast %cst_38 : f32 to vector<1x10xf32>
    %55 = arith.cmpf ogt, %53, %54 : vector<1x10xf32>
    %cst_39 = arith.constant -1.000000e+30 : f32
    %56 = vector.shape_cast %55 : vector<1x10xi1> to vector<1x10xi1>
    %57 = vector.broadcast %56 : vector<1x10xi1> to vector<104x10xi1>
    %58 = vector.broadcast %cst_39 : f32 to vector<104x10xf32>
    %59 = arith.select %57, %25, %58 : vector<104x10xi1>, vector<104x10xf32>
    %cst_40 = arith.constant dense<0xFF800000> : vector<104xf32>
    %60 = vector.multi_reduction <maximumf>, %59, %cst_40 [1] : vector<104x10xf32> to vector<104xf32>
    %61 = vector.shape_cast %60 : vector<104xf32> to vector<104x1xf32>
    %62 = tpu.concatenate %34, %43, %52, %61 in 1 : vector<104x1xf32>, vector<104x1xf32>, vector<104x1xf32>, vector<104x1xf32> -> vector<104x4xf32>
    %cst_41 = arith.constant dense<0.000000e+00> : vector<104x10xf32>
    %63 = tpu.matmul %62, %11, %cst_41 {dimension_numbers = #tpu.dot_dimension_numbers<[1], [0], [0], [1], [0, 0, 1, 1], [], []>} : vector<104x4xf32>, vector<4x10xf32>, vector<104x10xf32> -> vector<104x10xf32>
    %64 = arith.subf %25, %63 : vector<104x10xf32>
    %65 = math.exp %64 : vector<104x10xf32>
    %cst_42 = arith.constant dense<0.000000e+00> : vector<104x10xf32>
    %66 = tpu.matmul %65, %12, %cst_42 {dimension_numbers = #tpu.dot_dimension_numbers<[1], [0], [0], [1], [0, 0, 1, 1], [], []>} : vector<104x10xf32>, vector<10x10xf32>, vector<104x10xf32> -> vector<104x10xf32>
    %67 = arith.divf %65, %66 : vector<104x10xf32>
    %cst_43 = arith.constant dense<0.000000e+00> : vector<104x32xf32>
    %68 = tpu.matmul %0, %2, %cst_43 {dimension_numbers = #tpu.dot_dimension_numbers<[1], [0], [0], [1], [0, 0, 1, 1], [], []>} : vector<104x24xf32>, vector<24x32xf32>, vector<104x32xf32> -> vector<104x32xf32>
    %69 = vector.broadcast %3 : vector<1x32xf32> to vector<104x32xf32>
    %70 = arith.addf %68, %69 : vector<104x32xf32>
    %cst_44 = arith.constant 0.000000e+00 : f32
    %71 = vector.broadcast %cst_44 : f32 to vector<104x32xf32>
    %72 = arith.maximumf %70, %71 : vector<104x32xf32>
    %c0_45 = arith.constant 0 : index
    %c0_46 = arith.constant 0 : index
    %c0_47 = arith.constant 0 : index
    %73 = vector.load %arg14[%c0_45, %c0_46, %c0_47] : memref<4x32x128xf32, #tpu.memory_space<vmem>>, vector<1x32x128xf32>
    %74 = vector.shape_cast %73 : vector<1x32x128xf32> to vector<32x128xf32>
    %cst_48 = arith.constant dense<0.000000e+00> : vector<104x128xf32>
    %75 = tpu.matmul %72, %74, %cst_48 {dimension_numbers = #tpu.dot_dimension_numbers<[1], [0], [0], [1], [0, 0, 1, 1], [], []>} : vector<104x32xf32>, vector<32x128xf32>, vector<104x128xf32> -> vector<104x128xf32>
    %c0_49 = arith.constant 0 : index
    %c0_50 = arith.constant 0 : index
    %c0_51 = arith.constant 0 : index
    %76 = vector.load %arg13[%c0_49, %c0_50, %c0_51] : memref<4x10x128xf32, #tpu.memory_space<vmem>>, vector<1x10x128xf32>
    %77 = vector.shape_cast %76 : vector<1x10x128xf32> to vector<10x128xf32>
    %cst_52 = arith.constant dense<0.000000e+00> : vector<104x128xf32>
    %78 = tpu.matmul %67, %77, %cst_52 {dimension_numbers = #tpu.dot_dimension_numbers<[1], [0], [0], [1], [0, 0, 1, 1], [], []>} : vector<104x10xf32>, vector<10x128xf32>, vector<104x128xf32> -> vector<104x128xf32>
    %79 = arith.mulf %75, %78 : vector<104x128xf32>
    %cst_53 = arith.constant dense<0.000000e+00> : vector<104x32xf32>
    %80 = tpu.matmul %79, %10, %cst_53 {dimension_numbers = #tpu.dot_dimension_numbers<[1], [0], [0], [1], [0, 0, 1, 1], [], []>} : vector<104x128xf32>, vector<128x32xf32>, vector<104x32xf32> -> vector<104x32xf32>
    %c0_54 = arith.constant 0 : index
    %c0_55 = arith.constant 0 : index
    %c0_56 = arith.constant 0 : index
    %81 = vector.load %arg5[%c0_54, %c0_55, %c0_56] : memref<3x32x32xf32, #tpu.memory_space<vmem>>, vector<1x32x32xf32>
    %82 = vector.shape_cast %81 : vector<1x32x32xf32> to vector<32x32xf32>
    %cst_57 = arith.constant dense<0.000000e+00> : vector<104x32xf32>
    %83 = tpu.matmul %80, %82, %cst_57 {dimension_numbers = #tpu.dot_dimension_numbers<[1], [0], [0], [1], [0, 0, 1, 1], [], []>} : vector<104x32xf32>, vector<32x32xf32>, vector<104x32xf32> -> vector<104x32xf32>
    %c0_58 = arith.constant 0 : index
    %c0_59 = arith.constant 0 : index
    %c0_60 = arith.constant 0 : index
    %84 = vector.load %arg6[%c0_58, %c0_59, %c0_60] : memref<3x1x32xf32, #tpu.memory_space<vmem>>, vector<1x1x32xf32>
    %85 = vector.shape_cast %84 : vector<1x1x32xf32> to vector<1x32xf32>
    %86 = vector.broadcast %85 : vector<1x32xf32> to vector<104x32xf32>
    %87 = arith.addf %83, %86 : vector<104x32xf32>
    %cst_61 = arith.constant 0.000000e+00 : f32
    %88 = vector.broadcast %cst_61 : f32 to vector<104x32xf32>
    %89 = arith.maximumf %87, %88 : vector<104x32xf32>
    %90 = arith.addf %89, %80 : vector<104x32xf32>
    %c1 = arith.constant 1 : index
    %c0_62 = arith.constant 0 : index
    %c0_63 = arith.constant 0 : index
    %91 = vector.load %arg14[%c1, %c0_62, %c0_63] : memref<4x32x128xf32, #tpu.memory_space<vmem>>, vector<1x32x128xf32>
    %92 = vector.shape_cast %91 : vector<1x32x128xf32> to vector<32x128xf32>
    %cst_64 = arith.constant dense<0.000000e+00> : vector<104x128xf32>
    %93 = tpu.matmul %90, %92, %cst_64 {dimension_numbers = #tpu.dot_dimension_numbers<[1], [0], [0], [1], [0, 0, 1, 1], [], []>} : vector<104x32xf32>, vector<32x128xf32>, vector<104x128xf32> -> vector<104x128xf32>
    %94 = arith.addf %75, %93 : vector<104x128xf32>
    %c1_65 = arith.constant 1 : index
    %c0_66 = arith.constant 0 : index
    %c0_67 = arith.constant 0 : index
    %95 = vector.load %arg13[%c1_65, %c0_66, %c0_67] : memref<4x10x128xf32, #tpu.memory_space<vmem>>, vector<1x10x128xf32>
    %96 = vector.shape_cast %95 : vector<1x10x128xf32> to vector<10x128xf32>
    %cst_68 = arith.constant dense<0.000000e+00> : vector<104x128xf32>
    %97 = tpu.matmul %67, %96, %cst_68 {dimension_numbers = #tpu.dot_dimension_numbers<[1], [0], [0], [1], [0, 0, 1, 1], [], []>} : vector<104x10xf32>, vector<10x128xf32>, vector<104x128xf32> -> vector<104x128xf32>
    %98 = arith.mulf %94, %97 : vector<104x128xf32>
    %cst_69 = arith.constant dense<0.000000e+00> : vector<104x32xf32>
    %99 = tpu.matmul %98, %10, %cst_69 {dimension_numbers = #tpu.dot_dimension_numbers<[1], [0], [0], [1], [0, 0, 1, 1], [], []>} : vector<104x128xf32>, vector<128x32xf32>, vector<104x32xf32> -> vector<104x32xf32>
    %c1_70 = arith.constant 1 : index
    %c0_71 = arith.constant 0 : index
    %c0_72 = arith.constant 0 : index
    %100 = vector.load %arg5[%c1_70, %c0_71, %c0_72] : memref<3x32x32xf32, #tpu.memory_space<vmem>>, vector<1x32x32xf32>
    %101 = vector.shape_cast %100 : vector<1x32x32xf32> to vector<32x32xf32>
    %cst_73 = arith.constant dense<0.000000e+00> : vector<104x32xf32>
    %102 = tpu.matmul %99, %101, %cst_73 {dimension_numbers = #tpu.dot_dimension_numbers<[1], [0], [0], [1], [0, 0, 1, 1], [], []>} : vector<104x32xf32>, vector<32x32xf32>, vector<104x32xf32> -> vector<104x32xf32>
    %c1_74 = arith.constant 1 : index
    %c0_75 = arith.constant 0 : index
    %c0_76 = arith.constant 0 : index
    %103 = vector.load %arg6[%c1_74, %c0_75, %c0_76] : memref<3x1x32xf32, #tpu.memory_space<vmem>>, vector<1x1x32xf32>
    %104 = vector.shape_cast %103 : vector<1x1x32xf32> to vector<1x32xf32>
    %105 = vector.broadcast %104 : vector<1x32xf32> to vector<104x32xf32>
    %106 = arith.addf %102, %105 : vector<104x32xf32>
    %cst_77 = arith.constant 0.000000e+00 : f32
    %107 = vector.broadcast %cst_77 : f32 to vector<104x32xf32>
    %108 = arith.maximumf %106, %107 : vector<104x32xf32>
    %109 = arith.addf %108, %99 : vector<104x32xf32>
    %c2 = arith.constant 2 : index
    %c0_78 = arith.constant 0 : index
    %c0_79 = arith.constant 0 : index
    %110 = vector.load %arg14[%c2, %c0_78, %c0_79] : memref<4x32x128xf32, #tpu.memory_space<vmem>>, vector<1x32x128xf32>
    %111 = vector.shape_cast %110 : vector<1x32x128xf32> to vector<32x128xf32>
    %cst_80 = arith.constant dense<0.000000e+00> : vector<104x128xf32>
    %112 = tpu.matmul %109, %111, %cst_80 {dimension_numbers = #tpu.dot_dimension_numbers<[1], [0], [0], [1], [0, 0, 1, 1], [], []>} : vector<104x32xf32>, vector<32x128xf32>, vector<104x128xf32> -> vector<104x128xf32>
    %113 = arith.addf %94, %112 : vector<104x128xf32>
    %c2_81 = arith.constant 2 : index
    %c0_82 = arith.constant 0 : index
    %c0_83 = arith.constant 0 : index
    %114 = vector.load %arg13[%c2_81, %c0_82, %c0_83] : memref<4x10x128xf32, #tpu.memory_space<vmem>>, vector<1x10x128xf32>
    %115 = vector.shape_cast %114 : vector<1x10x128xf32> to vector<10x128xf32>
    %cst_84 = arith.constant dense<0.000000e+00> : vector<104x128xf32>
    %116 = tpu.matmul %67, %115, %cst_84 {dimension_numbers = #tpu.dot_dimension_numbers<[1], [0], [0], [1], [0, 0, 1, 1], [], []>} : vector<104x10xf32>, vector<10x128xf32>, vector<104x128xf32> -> vector<104x128xf32>
    %117 = arith.mulf %113, %116 : vector<104x128xf32>
    %cst_85 = arith.constant dense<0.000000e+00> : vector<104x32xf32>
    %118 = tpu.matmul %117, %10, %cst_85 {dimension_numbers = #tpu.dot_dimension_numbers<[1], [0], [0], [1], [0, 0, 1, 1], [], []>} : vector<104x128xf32>, vector<128x32xf32>, vector<104x32xf32> -> vector<104x32xf32>
    %c2_86 = arith.constant 2 : index
    %c0_87 = arith.constant 0 : index
    %c0_88 = arith.constant 0 : index
    %119 = vector.load %arg5[%c2_86, %c0_87, %c0_88] : memref<3x32x32xf32, #tpu.memory_space<vmem>>, vector<1x32x32xf32>
    %120 = vector.shape_cast %119 : vector<1x32x32xf32> to vector<32x32xf32>
    %cst_89 = arith.constant dense<0.000000e+00> : vector<104x32xf32>
    %121 = tpu.matmul %118, %120, %cst_89 {dimension_numbers = #tpu.dot_dimension_numbers<[1], [0], [0], [1], [0, 0, 1, 1], [], []>} : vector<104x32xf32>, vector<32x32xf32>, vector<104x32xf32> -> vector<104x32xf32>
    %c2_90 = arith.constant 2 : index
    %c0_91 = arith.constant 0 : index
    %c0_92 = arith.constant 0 : index
    %122 = vector.load %arg6[%c2_90, %c0_91, %c0_92] : memref<3x1x32xf32, #tpu.memory_space<vmem>>, vector<1x1x32xf32>
    %123 = vector.shape_cast %122 : vector<1x1x32xf32> to vector<1x32xf32>
    %124 = vector.broadcast %123 : vector<1x32xf32> to vector<104x32xf32>
    %125 = arith.addf %121, %124 : vector<104x32xf32>
    %cst_93 = arith.constant 0.000000e+00 : f32
    %126 = vector.broadcast %cst_93 : f32 to vector<104x32xf32>
    %127 = arith.maximumf %125, %126 : vector<104x32xf32>
    %128 = arith.addf %127, %118 : vector<104x32xf32>
    %c3 = arith.constant 3 : index
    %c0_94 = arith.constant 0 : index
    %c0_95 = arith.constant 0 : index
    %129 = vector.load %arg14[%c3, %c0_94, %c0_95] : memref<4x32x128xf32, #tpu.memory_space<vmem>>, vector<1x32x128xf32>
    %130 = vector.shape_cast %129 : vector<1x32x128xf32> to vector<32x128xf32>
    %cst_96 = arith.constant dense<0.000000e+00> : vector<104x128xf32>
    %131 = tpu.matmul %128, %130, %cst_96 {dimension_numbers = #tpu.dot_dimension_numbers<[1], [0], [0], [1], [0, 0, 1, 1], [], []>} : vector<104x32xf32>, vector<32x128xf32>, vector<104x128xf32> -> vector<104x128xf32>
    %132 = arith.addf %113, %131 : vector<104x128xf32>
    %c3_97 = arith.constant 3 : index
    %c0_98 = arith.constant 0 : index
    %c0_99 = arith.constant 0 : index
    %133 = vector.load %arg13[%c3_97, %c0_98, %c0_99] : memref<4x10x128xf32, #tpu.memory_space<vmem>>, vector<1x10x128xf32>
    %134 = vector.shape_cast %133 : vector<1x10x128xf32> to vector<10x128xf32>
    %cst_100 = arith.constant dense<0.000000e+00> : vector<104x128xf32>
    %135 = tpu.matmul %67, %134, %cst_100 {dimension_numbers = #tpu.dot_dimension_numbers<[1], [0], [0], [1], [0, 0, 1, 1], [], []>} : vector<104x10xf32>, vector<10x128xf32>, vector<104x128xf32> -> vector<104x128xf32>
    %136 = arith.mulf %132, %135 : vector<104x128xf32>
    %cst_101 = arith.constant dense<0.000000e+00> : vector<104x32xf32>
    %137 = tpu.matmul %136, %10, %cst_101 {dimension_numbers = #tpu.dot_dimension_numbers<[1], [0], [0], [1], [0, 0, 1, 1], [], []>} : vector<104x128xf32>, vector<128x32xf32>, vector<104x32xf32> -> vector<104x32xf32>
    %138 = tpu.concatenate %137, %67 in 1 : vector<104x32xf32>, vector<104x10xf32> -> vector<104x42xf32>
    %c0_102 = arith.constant 0 : index
    %c0_103 = arith.constant 0 : index
    %139 = vector.load %arg18[%c0_102, %c0_103] : memref<104x42xf32, #tpu.memory_space<vmem>>, vector<104x42xf32>
    tpu.vector_store %arg18[%c0_102, %c0_103], %138 {strides = array<i32>} : memref<104x42xf32, #tpu.memory_space<vmem>>, vector<104x42xf32>,
    return
  }
  func.func @transform_0(%arg0: i32) -> (i32, i32) {
    %c0_i32 = arith.constant 0 : i32
    %c0_i32_0 = arith.constant 0 : i32
    return %arg0, %c0_i32 : i32, i32
  }
  func.func @transform_1(%arg0: i32) -> (i32, i32) {
    %c0_i32 = arith.constant 0 : i32
    %c0_i32_0 = arith.constant 0 : i32
    return %arg0, %c0_i32 : i32, i32
  }
  func.func @transform_2(%arg0: i32) -> (i32, i32) {
    %c0_i32 = arith.constant 0 : i32
    %c0_i32_0 = arith.constant 0 : i32
    %c0_i32_1 = arith.constant 0 : i32
    return %c0_i32, %c0_i32_0 : i32, i32
  }
  func.func @transform_3(%arg0: i32) -> (i32, i32) {
    %c0_i32 = arith.constant 0 : i32
    %c0_i32_0 = arith.constant 0 : i32
    %c0_i32_1 = arith.constant 0 : i32
    return %c0_i32, %c0_i32_0 : i32, i32
  }
  func.func @transform_4(%arg0: i32) -> (i32, i32, i32) {
    %c0_i32 = arith.constant 0 : i32
    %c0_i32_0 = arith.constant 0 : i32
    %c0_i32_1 = arith.constant 0 : i32
    %c0_i32_2 = arith.constant 0 : i32
    return %c0_i32, %c0_i32_0, %c0_i32_1 : i32, i32, i32
  }
  func.func @transform_5(%arg0: i32) -> (i32, i32, i32) {
    %c0_i32 = arith.constant 0 : i32
    %c0_i32_0 = arith.constant 0 : i32
    %c0_i32_1 = arith.constant 0 : i32
    %c0_i32_2 = arith.constant 0 : i32
    return %c0_i32, %c0_i32_0, %c0_i32_1 : i32, i32, i32
  }
  func.func @transform_6(%arg0: i32) -> (i32, i32) {
    %c0_i32 = arith.constant 0 : i32
    %c0_i32_0 = arith.constant 0 : i32
    %c0_i32_1 = arith.constant 0 : i32
    return %c0_i32, %c0_i32_0 : i32, i32
  }
  func.func @transform_7(%arg0: i32) -> (i32, i32) {
    %c0_i32 = arith.constant 0 : i32
    %c0_i32_0 = arith.constant 0 : i32
    %c0_i32_1 = arith.constant 0 : i32
    return %c0_i32, %c0_i32_0 : i32, i32
  }
  func.func @transform_8(%arg0: i32) -> (i32, i32) {
    %c0_i32 = arith.constant 0 : i32
    %c0_i32_0 = arith.constant 0 : i32
    %c0_i32_1 = arith.constant 0 : i32
    return %c0_i32, %c0_i32_0 : i32, i32
  }
  func.func @transform_9(%arg0: i32) -> (i32, i32) {
    %c0_i32 = arith.constant 0 : i32
    %c0_i32_0 = arith.constant 0 : i32
    %c0_i32_1 = arith.constant 0 : i32
    return %c0_i32, %c0_i32_0 : i32, i32
  }
  func.func @transform_10(%arg0: i32) -> (i32, i32) {
    %c0_i32 = arith.constant 0 : i32
    %c0_i32_0 = arith.constant 0 : i32
    %c0_i32_1 = arith.constant 0 : i32
    return %c0_i32, %c0_i32_0 : i32, i32
  }
  func.func @transform_11(%arg0: i32) -> (i32, i32) {
    %c0_i32 = arith.constant 0 : i32
    %c0_i32_0 = arith.constant 0 : i32
    %c0_i32_1 = arith.constant 0 : i32
    return %c0_i32, %c0_i32_0 : i32, i32
  }
  func.func @transform_12(%arg0: i32) -> (i32, i32, i32) {
    %c0_i32 = arith.constant 0 : i32
    %c0_i32_0 = arith.constant 0 : i32
    %c0_i32_1 = arith.constant 0 : i32
    %c0_i32_2 = arith.constant 0 : i32
    return %c0_i32, %c0_i32_0, %c0_i32_1 : i32, i32, i32
  }
  func.func @transform_13(%arg0: i32) -> (i32, i32, i32) {
    %c0_i32 = arith.constant 0 : i32
    %c0_i32_0 = arith.constant 0 : i32
    %c0_i32_1 = arith.constant 0 : i32
    %c0_i32_2 = arith.constant 0 : i32
    return %c0_i32, %c0_i32_0, %c0_i32_1 : i32, i32, i32
  }
  func.func @transform_14(%arg0: i32) -> (i32, i32) {
    %c0_i32 = arith.constant 0 : i32
    %c0_i32_0 = arith.constant 0 : i32
    %c0_i32_1 = arith.constant 0 : i32
    return %c0_i32, %c0_i32_0 : i32, i32
  }
  func.func @transform_15(%arg0: i32) -> (i32, i32) {
    %c0_i32 = arith.constant 0 : i32
    %c0_i32_0 = arith.constant 0 : i32
    %c0_i32_1 = arith.constant 0 : i32
    return %c0_i32, %c0_i32_0 : i32, i32
  }
  func.func @transform_16(%arg0: i32) -> (i32, i32) {
    %c0_i32 = arith.constant 0 : i32
    %c0_i32_0 = arith.constant 0 : i32
    %c0_i32_1 = arith.constant 0 : i32
    return %c0_i32, %c0_i32_0 : i32, i32
  }
  func.func @transform_17(%arg0: i32) -> (i32, i32) {
    %c0_i32 = arith.constant 0 : i32
    %c0_i32_0 = arith.constant 0 : i32
    return %arg0, %c0_i32 : i32, i32
  }
}

</mosaic_0001>

<bundles_post_ra>
// kernel: tpu_custom_call.1
= control target key start
LH: loop header
LB: loop body
LE: loop exit
PB: predicated region body
PF: predicated region fallthrough
CT: control target
= control target key end

     0   :  { %s9437_s0 = inlined_call_operand.vmem [shape: f32[200,24], index: 0, kind: input, shape index: {}]   ;;  %s9438_s1 = inlined_call_operand.vmem [shape: f32[200,20], index: 1, kind: input, shape index: {}]   ;;  %s9439_s2 = inlined_call_operand.vmem [shape: f32[24,32], index: 2, kind: input, shape index: {}]   ;;  %s9440_s3 = inlined_call_operand.vmem [shape: f32[1,32], index: 3, kind: input, shape index: {}]   ;;  %s9441_s4 = inlined_call_operand.vmem [shape: f32[3,32,32], index: 4, kind: input, shape index: {}]   ;;  %s9442_s5 = inlined_call_operand.vmem [shape: f32[3,1,32], index: 5, kind: input, shape index: {}]   ;;  %s9443_s6 = inlined_call_operand.vmem [shape: f32[20,32], index: 6, kind: input, shape index: {}]   ;;  %s9444_s7 = inlined_call_operand.vmem [shape: f32[32,16], index: 7, kind: input, shape index: {}]   ;;  %s9445_s8 = inlined_call_operand.vmem [shape: f32[16,10], index: 8, kind: input, shape index: {}]   ;;  %s9446_s9 = inlined_call_operand.vmem [shape: f32[1,32], index: 9, kind: input, shape index: {}]   ;;  %s9447_s10 = inlined_call_operand.vmem [shape: f32[1,16], index: 10, kind: input, shape index: {}]   ;;  %s9448_s11 = inlined_call_operand.vmem [shape: f32[1,10], index: 11, kind: input, shape index: {}]   ;;  %s9449_s12 = inlined_call_operand.vmem [shape: f32[4,10,128], index: 12, kind: input, shape index: {}]   ;;  %s9450_s13 = inlined_call_operand.vmem [shape: f32[4,32,128], index: 13, kind: input, shape index: {}]   ;;  %s9451_s14 = inlined_call_operand.vmem [shape: f32[128,32], index: 14, kind: input, shape index: {}]   ;;  %s9452_s15 = inlined_call_operand.vmem [shape: f32[4,10], index: 15, kind: input, shape index: {}]   ;;  %s9453_s16 = inlined_call_operand.vmem [shape: f32[10,10], index: 16, kind: input, shape index: {}]   ;;  %s9454_s17 = inlined_call_operand.vmem [shape: f32[200,42], index: 17, kind: output, shape index: {}]  }
   0x1   :  { %9455 = sst [smem:[#allocation4_spill]] %s9437_s0 }
   0x2   :  { %9456 = sst [smem:[#allocation5_spill]] %s9438_s1 }
   0x3   :  { %9457 = sst [smem:[#allocation6_spill]] %s9439_s2 }
   0x4   :  { %9458 = sst [smem:[#allocation7_spill]] %s9440_s3 }
   0x5   :  { %9459 = sst [smem:[#allocation8_spill]] %s9441_s4 }
   0x6   :  { %9460 = sst [smem:[#allocation9_spill]] %s9443_s6 }
   0x7   :  { %s7189_s24 = smov 0   ;;  %s7191_s25 = smov 0  }
   0x8   :  { %s7193_s26 = smov 0  }
   0x9 LB: > { %s7202_s27 = sadd.s32 4294967295, %s7059_s26   ;;  %s7204_s28 = sadd.s32 1, %s7059_s26   ;;  %s7059_s26 = sphi %s7193_s26, %s9477_s26   ;;  %s7055_s25 = sphi %s7191_s25, %s9476_s25   ;;  %s7051_s24 = sphi %s7189_s24, %s9475_s24  }
   0xa   : > { %s398_s29 = ssub.s32 %s7059_s26, %s7204_s28  ;;  %s401_s0 = sadd.s32 1, %s7055_s25 }
   0xb   : > { %p399_p0 = scmp.eq.s32.totalorder %s398_s29, 0  ;;  %p411_p1 = scmp.ne.s32.totalorder %s7055_s25, %s7051_s24 }
   0xc   : > { %p412_p2 = scmp.eq.s32.totalorder %s7202_s27, 1  ;;  %p4960_p3 = scmp.ge.s32.totalorder %s7059_s26, 1 }
   0xd   : > { %s7212_s30 = scalar_select %p399_p0, %s7055_s25, %s401_s0  }
   0xe   : > { %p7214_p4 = por %p412_p2, %p411_p1  ;;  %p515_p5 = scmp.lt.s32.totalorder %s7059_s26, 3 }
   0xf   : > { %9461 = sst [smem:[#allocation3_spill]] %s7212_s30 }
  0x10   : > { %p516_p6 = pnand %p4960_p3, %p515_p5 }
  0x11   : > { %s9463_s6 = sld [smem:[#allocation9_spill]] (!%p516_p6)  ;;  %v7093_v2 = vmov (!%p516_p6), 0.0|0.0   ;;  %s7226_s22 = smul.u32 (!%p516_p6), 13, %s7202_s27  ;;  %vm7094_vm0 = vmmov (!%p516_p6), 0   ;;  %v7095_v4 = vmov (!%p516_p6), 0.0   ;;  %vm719_vm1 = vcmask (!%p516_p6), 1043456  }
  0x12   : > { %519 = sbr.rel (%p516_p6) target bundleno = 3803 (0xedb), region = 88  ;;  %6676 = vmatprep.subr.bf16.mxu0 (!%p516_p6), %v7093_v2  ;;  %6849 = vmatprep.subr.bf16.mxu1 (!%p516_p6), %v7093_v2  ;;  %v645_v6 = vld [vmem:[%s9444_s7] sm:$0xff] (!%p516_p6)  ;;  %v646_v7 = vld [vmem:[%s9444_s7 + $0x8] sm:$0xff] (!%p516_p6)  ;;  %vm679_vm2 = vcmask (!%p516_p6), 162816   ;;  %v647_v10 = vld [vmem:[%s9444_s7 + $0x10] sm:$0xff] (!%p516_p6)  ;;  %vm872_vm3 = vcmask (!%p516_p6), 261120  }
  0x13   : > { %5633 = vmatprep.mubr.msk.f32.mxu0 (!%p516_p6), %vm7094_vm0, %v7095_v4  ;;  %5654 = vmatprep.mubr.msk.f32.mxu1 (!%p516_p6), %vm7094_vm0, %v7095_v4  ;;  %p584_p7 = scmp.lt.s32.totalorder (!%p516_p6), %s7226_s22, 24  ;;  %v6680_v9 = vpack.c.bf16 (!%p516_p6), %v646_v7, %v645_v6  ;;  %v648_v11 = vld [vmem:[%s9444_s7 + $0x18] sm:$0xff] (!%p516_p6)  ;;  %v649_v25 = vld [vmem:[%s9445_s8] sm:$0xff] (!%p516_p6)  ;;  %v650_v26 = vld [vmem:[%s9445_s8 + $0x8] sm:$0xff] (!%p516_p6)  ;;  %vm1061_vm4 = vcmask (!%p516_p6), 130048   ;;  %vm1251_vm8 = vcmask (!%p516_p6), 80896  }
  0x14   : > { %v6683_v15 = vpack.c.bf16 (!%p516_p6), %v648_v11, %v647_v10  ;;  %v6686_v27 = vpack.c.bf16 (!%p516_p6), %v650_v26, %v649_v25  ;;  %v7330_v28 = vld [vmem:[%s9446_s9] ss:$0 sm:$0xff] (!%p516_p6)  ;;  %vm1462_vm11 = vcmask (!%p516_p6), 7168   ;;  %vm1476_vm12 = vcmask (!%p516_p6), 15360   ;;  %s9467_s2 = sld [smem:[#allocation6_spill]] (!%p516_p6)  ;;  %s9468_s1 = sld [smem:[#allocation4_spill]] (!%p516_p6) }
  0x15   : > { %vm1490_vm13 = vcmask (!%p516_p6), 23552   ;;  %vm1504_vm14 = vcmask (!%p516_p6), 31744   ;;  %vm1755_vm15 = vcmask (!%p516_p6), 1041408   ;;  %s9469_s3 = sld [smem:[#allocation7_spill]] (!%p516_p6)  ;;  %s9470_s4 = sld [smem:[#allocation8_spill]] (!%p516_p6) }
  0x17   : > { %v642_v0 = vld [vmem:[%s9463_s6] sm:$0xff] (!%p516_p6)  ;;  %v643_v1 = vld [vmem:[%s9463_s6 + $0x8] sm:$0xff] (!%p516_p6)  ;;  %v644_v5 = vld [vmem:[%s9463_s6 + $0x10] sm:$0xf] (!%p516_p6)  ;;  %s9464_s6 = sld [smem:[#allocation5_spill]] (!%p516_p6) }
  0x18   : > { %v6677_v3 = vpack.c.bf16 (!%p516_p6), %v643_v1, %v642_v0 }
  0x19   : > { %s7240_s29 = scalar_select %p584_p7, %s7226_s22, 24 }
  0x1a   : > { %6678 = vmatpush3.bf16.msra.mxu0 %v6677_v3  ;;  %6851 = vmatpush3.bf16.msra.mxu1 %v6677_v3  ;;  %s5238_s23 = smul.u32 (%p7214_p4), 104, %s7202_s27 }
  0x1b   : > { %5631 = vmatprep.subr.mxu0 %v7095_v4  ;;  %6850 = vmatprep.subr.mxu1 %v7095_v4  ;;  %s4961_s21 = sshll.u32 %s7240_s29, 3 }
  0x1d   : > { %s7256_s30 = scalar_lea.vmem %s9464_s6, %s4961_s21  ;;  %s7812_s6 = scalar_lea.vmem %s9468_s1, %s4961_s21 }
  0x1e   : > { %5632 = vmatpush3.msk.msra.mxu0 %vm719_vm1, %v644_v5  ;;  %6852 = vmatpush3.msk.msra.mxu1 %vm719_vm1, %v644_v5  ;;  %v625_v8 = vld [vmem:[%s7256_s30] sm:$0xff]  ;;  %v626_v12 = vld [vmem:[%s7256_s30 + $0x8] sm:$0xff]  ;;  %v632_v13 = vld [vmem:[%s7256_s30 + $0x38] sm:$0xff]  ;;  %s576_s1 = sand.u32 1, %s7051_s24   ;;  %s4688_s24 = ssub.s32 (%p7214_p4), 25, %s7226_s22 }
  0x1f   : > { %6679 = vmatprep.subr.bf16.mxu1 %v7093_v2  ;;  %6685 = vmatprep.subr.bf16.mxu0 %v7093_v2  ;;  %v633_v14 = vld [vmem:[%s7256_s30 + $0x40] sm:$0xff]  ;;  %v627_v16 = vld [vmem:[%s7256_s30 + $0x10] sm:$0xff]  ;;  %v634_v17 = vld [vmem:[%s7256_s30 + $0x48] sm:$0xff]  ;;  %p4689_p8 = scmp.lt.s32.totalorder (%p7214_p4), %s4688_s24, 13  ;;  %s9355_s21 = scalar_lea.vmem (%p7214_p4), %s9454_s17, %s5238_s23  }
  0x20   : > { %5634 = vmatmul.mubr.msk.f32.vlgmr.msra.gmra.mrb[0].mxu0 %vm679_vm2, %v625_v8  ;;  %5655 = vmatmul.mubr.msk.f32.vlgmr.msra.gmra.mrb[0].mxu1 %vm679_vm2, %v632_v13  ;;  %v628_v18 = vld [vmem:[%s7256_s30 + $0x18] sm:$0xff]  ;;  %v635_v19 = vld [vmem:[%s7256_s30 + $0x50] sm:$0xff]  ;;  %v629_v20 = vld [vmem:[%s7256_s30 + $0x20] sm:$0xff] }
  0x21   : > { %5636 = vmatprep.mubr.msk.f32.mxu0 %vm7094_vm0, %v7095_v4  ;;  %5657 = vmatprep.mubr.msk.f32.mxu1 %vm7094_vm0, %v7095_v4  ;;  %v636_v21 = vld [vmem:[%s7256_s30 + $0x58] sm:$0xff]  ;;  %v630_v22 = vld [vmem:[%s7256_s30 + $0x28] sm:$0xff]  ;;  %v637_v23 = vld [vmem:[%s7256_s30 + $0x60] sm:$0xff] }
  0x22   : > { %6681 = vmatpush3.bf16.msra.mxu1 %v6680_v9  ;;  %v631_v24 = vld [vmem:[%s7256_s30 + $0x30] sm:$0xff]  ;;  %6687 = vmatpush3.bf16.msra.mxu0 %v6686_v27  ;;  %s7098_s30 = smov 32  }
  0x23   : > { %6682 = vmatprep.subr.bf16.mxu1 %v7093_v2  ;;  %6688 = vmatprep.subr.bf16.mxu0 %v7093_v2 }
  0x24   : > { %5637 = vmatmul.mubr.msk.f32.gmra.mrb[2].mxu0 %vm679_vm2, %v626_v12  ;;  %5658 = vmatmul.mubr.msk.f32.gmra.mrb[2].mxu1 %vm679_vm2, %v633_v14 }
  0x25   : > { %5639 = vmatprep.mubr.msk.f32.mxu0 %vm7094_vm0, %v7095_v4  ;;  %5660 = vmatprep.mubr.msk.f32.mxu1 %vm7094_vm0, %v7095_v4 }
  0x26   : > { %6684 = vmatpush3.bf16.msra.mxu1 %v6683_v15 }
  0x27   : > { %5762 = vmatprep.subr.mxu1 %v7095_v4 }
  0x28   : > { %5640 = vmatmul.mubr.msk.f32.gmra.mrb[4].mxu0 %vm679_vm2, %v627_v16  ;;  %5661 = vmatmul.mubr.msk.f32.gmra.mrb[4].mxu1 %vm679_vm2, %v634_v17 }
  0x29   : > { %5642 = vmatprep.mubr.msk.f32.mxu0 %vm7094_vm0, %v7095_v4  ;;  %5663 = vmatprep.mubr.msk.f32.mxu1 %vm7094_vm0, %v7095_v4 }
  0x2c   : > { %5643 = vmatmul.mubr.msk.f32.gmra.mrb[6].mxu0 %vm679_vm2, %v628_v18  ;;  %5664 = vmatmul.mubr.msk.f32.gmra.mrb[6].mxu1 %vm679_vm2, %v635_v19  ;;  %v7387_v19 = vld [vmem:[%s9447_s10] ss:$0 sm:$0xff] }
  0x2d   : > { %5645 = vmatprep.mubr.msk.f32.mxu0 %vm7094_vm0, %v7095_v4  ;;  %5666 = vmatprep.mubr.msk.f32.mxu1 %vm7094_vm0, %v7095_v4 }
  0x30   : > { %5646 = vmatmul.mubr.msk.f32.gmra.mrb[8].mxu0 %vm679_vm2, %v629_v20  ;;  %5667 = vmatmul.mubr.msk.f32.gmra.mrb[8].mxu1 %vm679_vm2, %v636_v21 }
  0x31   : > { %5648 = vmatprep.mubr.msk.f32.mxu0 %vm7094_vm0, %v7095_v4  ;;  %5669 = vmatprep.mubr.msk.f32.mxu1 %vm7094_vm0, %v7095_v4 }
  0x34   : > { %5649 = vmatmul.mubr.msk.f32.gmra.mrb[10].mxu0 %vm679_vm2, %v630_v22  ;;  %5670 = vmatmul.mubr.msk.f32.gmra.mrb[10].mxu1 %vm679_vm2, %v637_v23 }
  0x35   : > { %5651 = vmatprep.mubr.msk.f32.mxu0 %vm7094_vm0, %v7095_v4  ;;  %5680 = vmatprep.mubr.msk.f32.mxu1 %vm7094_vm0, %v7095_v4 }
  0x38   : > { %5652 = vmatmul.mubr.msk.f32.gmra.mrb[12].mxu0 %vm679_vm2, %v631_v24 }
  0x39   : > { %5723 = vmatprep.mubr.msk.f32.mxu0 %vm7094_vm0, %v7095_v4 }
  0xf3   : > { %v789_v29 = vpop.f32.mrb[0].mxu0  ;;  %v824_v32 = vpop.f32.mrb[0].mxu1 }
  0xf4   : > { %v790_v30 = vadd.f32 %v7330_v28, %v789_v29  ;;  %v5635_v31 = vpop.f32.mrb[1].mxu0  ;;  %v5656_v34 = vpop.f32.mrb[1].mxu1  ;;  %v825_v6 = vadd.f32 %v7330_v28, %v824_v32 }
  0xf6   : > { %v853_v33 = vmax.f32 %v790_v30, 0.0  ;;  %v860_v8 = vmax.f32 %v825_v6, 0.0 }
  0xf7   : > { %v794_v35 = vpop.f32.mrb[2].mxu0  ;;  %v829_v38 = vpop.f32.mrb[2].mxu1 }
  0xf8   : > { %5681 = vmatmul.mubr.msk.f32.vlgmr.msra.gmra.mrb[12].mxu1 %vm872_vm3, %v853_v33  ;;  %v795_v36 = vadd.f32 %v7330_v28, %v794_v35  ;;  %v5638_v37 = vpop.f32.mrb[3].mxu0  ;;  %v5659_v40 = vpop.f32.mrb[3].mxu1  ;;  %v830_v9 = vadd.f32 %v7330_v28, %v829_v38 }
  0xf9   : > { %5683 = vmatprep.mubr.msk.f32.mxu1 %vm7094_vm0, %v7095_v4 }
  0xfa   : > { %v854_v39 = vmax.f32 %v795_v36, 0.0  ;;  %v861_v10 = vmax.f32 %v830_v9, 0.0 }
  0xfb   : > { %v799_v41 = vpop.f32.mrb[4].mxu0  ;;  %v834_v44 = vpop.f32.mrb[4].mxu1 }
  0xfc   : > { %5684 = vmatmul.mubr.msk.f32.gmra.mrb[14].mxu1 %vm872_vm3, %v854_v39  ;;  %v800_v42 = vadd.f32 %v7330_v28, %v799_v41  ;;  %v5641_v43 = vpop.f32.mrb[5].mxu0  ;;  %v5662_v46 = vpop.f32.mrb[5].mxu1  ;;  %v835_v11 = vadd.f32 %v7330_v28, %v834_v44 }
  0xfd   : > { %5686 = vmatprep.mubr.msk.f32.mxu1 %vm7094_vm0, %v7095_v4 }
  0xfe   : > { %v855_v45 = vmax.f32 %v800_v42, 0.0  ;;  %v862_v12 = vmax.f32 %v835_v11, 0.0  ;;  %v1233_v11 = vlaneseq }
  0xff   : > { %v804_v47 = vpop.f32.mrb[6].mxu0  ;;  %v839_v50 = vpop.f32.mrb[6].mxu1 }
 0x100   : > { %5687 = vmatmul.mubr.msk.f32.gmra.mrb[16].mxu1 %vm872_vm3, %v855_v45  ;;  %v805_v48 = vadd.f32 %v7330_v28, %v804_v47  ;;  %v5644_v49 = vpop.f32.mrb[7].mxu0  ;;  %v5665_v52 = vpop.f32.mrb[7].mxu1  ;;  %v840_v13 = vadd.f32 %v7330_v28, %v839_v50 }
 0x101   : > { %5689 = vmatprep.mubr.msk.f32.mxu1 %vm7094_vm0, %v7095_v4 }
 0x102   : > { %v856_v51 = vmax.f32 %v805_v48, 0.0  ;;  %v863_v14 = vmax.f32 %v840_v13, 0.0 }
 0x103   : > { %v809_v53 = vpop.f32.mrb[8].mxu0  ;;  %v844_v56 = vpop.f32.mrb[8].mxu1 }
 0x104   : > { %5690 = vmatmul.mubr.msk.f32.gmra.mrb[18].mxu1 %vm872_vm3, %v856_v51  ;;  %v810_v54 = vadd.f32 %v7330_v28, %v809_v53  ;;  %v5647_v55 = vpop.f32.mrb[9].mxu0  ;;  %v5668_v58 = vpop.f32.mrb[9].mxu1  ;;  %v845_v15 = vadd.f32 %v7330_v28, %v844_v56 }
 0x105   : > { %5692 = vmatprep.mubr.msk.f32.mxu1 %vm7094_vm0, %v7095_v4 }
 0x106   : > { %v857_v57 = vmax.f32 %v810_v54, 0.0  ;;  %v864_v16 = vmax.f32 %v845_v15, 0.0  ;;  %v7096_v15 = vmov 0  }
 0x107   : > { %v814_v59 = vpop.f32.mrb[10].mxu0  ;;  %v849_v62 = vpop.f32.mrb[10].mxu1 }
 0x108   : > { %5693 = vmatmul.mubr.msk.f32.gmra.mrb[20].mxu1 %vm872_vm3, %v857_v57  ;;  %v815_v60 = vadd.f32 %v7330_v28, %v814_v59  ;;  %v5650_v61 = vpop.f32.mrb[11].mxu0  ;;  %v5671_v0 = vpop.f32.mrb[11].mxu1  ;;  %v850_v17 = vadd.f32 %v7330_v28, %v849_v62 }
 0x109   : > { %5695 = vmatprep.mubr.msk.f32.mxu1 %vm7094_vm0, %v7095_v4 }
 0x10a   : > { %v858_v63 = vmax.f32 %v815_v60, 0.0  ;;  %v865_v18 = vmax.f32 %v850_v17, 0.0 }
 0x10b   : > { %v819_v1 = vpop.f32.mrb[12].mxu0 }
 0x10c   : > { %5696 = vmatmul.mubr.msk.f32.gmra.mrb[22].mxu1 %vm872_vm3, %v858_v63  ;;  %v820_v3 = vadd.f32 %v7330_v28, %v819_v1  ;;  %v5653_v5 = vpop.f32.mrb[13].mxu0 }
 0x10d   : > { %5698 = vmatprep.mubr.msk.f32.mxu1 %vm7094_vm0, %v7095_v4 }
 0x10e   : > { %v859_v7 = vmax.f32 %v820_v3, 0.0 }
 0x110   : > { %5699 = vmatmul.mubr.msk.f32.gmra.mrb[24].mxu1 %vm872_vm3, %v859_v7 }
 0x111   : > { %5701 = vmatprep.mubr.msk.f32.mxu1 %vm7094_vm0, %v7095_v4 }
 0x114   : > { %5702 = vmatmul.mubr.msk.f32.gmra.mrb[26].mxu1 %vm872_vm3, %v860_v8 }
 0x115   : > { %5704 = vmatprep.mubr.msk.f32.mxu1 %vm7094_vm0, %v7095_v4 }
 0x118   : > { %5705 = vmatmul.mubr.msk.f32.gmra.mrb[28].mxu1 %vm872_vm3, %v861_v10  ;;  %v670_v10 = vld [vmem:[%s9452_s15] sm:$0xf] }
 0x119   : > { %5707 = vmatprep.mubr.msk.f32.mxu1 %vm7094_vm0, %v7095_v4  ;;  %5763 = vmatpush3.msk.msra.mxu1 %vm719_vm1, %v670_v10  ;;  %vm1231_vm5 = vcmp.gt.f32.partialorder %v670_v10, 0.5  ;;  %vm7097_vm1 = vmmov 1  }
 0x11a   : > { %6692 = vmatprep.subr.bf16.mxu1 %v7093_v2  ;;  %vm7792_vm2 = vmpackc.low %vm1755_vm15, %vm7097_vm1 }
 0x11c   : > { %5708 = vmatmul.mubr.msk.f32.gmra.mrb[30].mxu1 %vm872_vm3, %v862_v12  ;;  %v1234_v12 = vshrl.u32 %v1233_v11, 7 }
 0x11d   : > { %5710 = vmatprep.mubr.msk.f32.mxu1 %vm7094_vm0, %v7095_v4 }
 0x11e   : > { %v1350_v13 = vsub.s32 2, %v1234_v12  ;;  %v1407_v17 = vsub.s32 3, %v1234_v12 }
 0x120   : > { %5711 = vmatmul.mubr.msk.f32.gmra.mrb[32].mxu1 %vm872_vm3, %v863_v14  ;;  %v1235_v14 = vsub.s32 0, %v1234_v12 }
 0x121   : > { %5713 = vmatprep.mubr.msk.f32.mxu1 %vm7094_vm0, %v7095_v4 }
 0x124   : > { %5714 = vmatmul.mubr.msk.f32.gmra.mrb[34].mxu1 %vm872_vm3, %v864_v16  ;;  %v1232_v16 = vsel %vm1231_vm5, 1, %v7096_v15  ;;  %vm4666_vm5 = vcmask 343040  }
 0x125   : > { %5716 = vmatprep.mubr.msk.f32.mxu1 %vm7094_vm0, %v7095_v4 }
 0x128   : > { %5717 = vmatmul.mubr.msk.f32.gmra.mrb[36].mxu1 %vm872_vm3, %v865_v18  ;;  %v1293_v18 = vsub.s32 1, %v1234_v12 }
 0x129   : > { %5764 = vmatprep.mubr.msk.f32.mxu1 %vm7094_vm0, %v7095_v4 }
 0x1cb   : > { %v978_v20 = vpop.f32.mrb[12].mxu1 }
 0x1cc   : > { %v979_v21 = vadd.f32 %v7387_v19, %v978_v20  ;;  %v5682_v22 = vpop.f32.mrb[13].mxu1  ;;  %v7448_v20 = vrot.slane %v1232_v16, %v1235_v14 }
 0x1cd   : > { %v7455_v22 = vrot.slane %v1232_v16, %v1407_v17 }
 0x1ce   : > { %v1042_v23 = vmax.f32 %v979_v21, 0.0  ;;  %v7453_v21 = vld [vmem:[%s9448_s11] ss:$0 sm:$0xff]  ;;  %vm1237_vm7 = vcmp.eq.s32.totalorder %v7448_v20, 1 }
 0x1cf   : > { %v983_v24 = vpop.f32.mrb[14].mxu1  ;;  %vm1409_vm9 = vcmp.eq.s32.totalorder %v7455_v22, 1 }
 0x1d0   : > { %5724 = vmatmul.mubr.msk.f32.vlgmr.msra.gmra.mrb[14].mxu0 %vm1061_vm4, %v1042_v23  ;;  %v984_v25 = vadd.f32 %v7387_v19, %v983_v24  ;;  %v5685_v26 = vpop.f32.mrb[15].mxu1  ;;  %v7457_v23 = vrot.slane %v1232_v16, %v1293_v18 }
 0x1d1   : > { %5726 = vmatprep.mubr.msk.f32.mxu0 %vm7094_vm0, %v7095_v4 }
 0x1d2   : > { %v1043_v27 = vmax.f32 %v984_v25, 0.0  ;;  %vm1295_vm10 = vcmp.eq.s32.totalorder %v7457_v23, 1 }
 0x1d3   : > { %v988_v28 = vpop.f32.mrb[16].mxu1 }
 0x1d4   : > { %5727 = vmatmul.mubr.msk.f32.gmra.mrb[16].mxu0 %vm1061_vm4, %v1043_v27  ;;  %v989_v29 = vadd.f32 %v7387_v19, %v988_v28  ;;  %v5688_v30 = vpop.f32.mrb[17].mxu1 }
 0x1d5   : > { %5729 = vmatprep.mubr.msk.f32.mxu0 %vm7094_vm0, %v7095_v4 }
 0x1d6   : > { %v1044_v31 = vmax.f32 %v989_v29, 0.0 }
 0x1d7   : > { %v993_v32 = vpop.f32.mrb[18].mxu1 }
 0x1d8   : > { %5730 = vmatmul.mubr.msk.f32.gmra.mrb[18].mxu0 %vm1061_vm4, %v1044_v31  ;;  %v994_v33 = vadd.f32 %v7387_v19, %v993_v32  ;;  %v5691_v34 = vpop.f32.mrb[19].mxu1 }
 0x1d9   : > { %5732 = vmatprep.mubr.msk.f32.mxu0 %vm7094_vm0, %v7095_v4 }
 0x1da   : > { %v1045_v35 = vmax.f32 %v994_v33, 0.0 }
 0x1db   : > { %v998_v36 = vpop.f32.mrb[20].mxu1 }
 0x1dc   : > { %5733 = vmatmul.mubr.msk.f32.gmra.mrb[20].mxu0 %vm1061_vm4, %v1045_v35  ;;  %v999_v37 = vadd.f32 %v7387_v19, %v998_v36  ;;  %v5694_v38 = vpop.f32.mrb[21].mxu1 }
 0x1dd   : > { %5735 = vmatprep.mubr.msk.f32.mxu0 %vm7094_vm0, %v7095_v4 }
 0x1de   : > { %v1046_v39 = vmax.f32 %v999_v37, 0.0 }
 0x1df   : > { %v1003_v40 = vpop.f32.mrb[22].mxu1 }
 0x1e0   : > { %5736 = vmatmul.mubr.msk.f32.gmra.mrb[22].mxu0 %vm1061_vm4, %v1046_v39  ;;  %v1004_v41 = vadd.f32 %v7387_v19, %v1003_v40  ;;  %v5697_v42 = vpop.f32.mrb[23].mxu1 }
 0x1e1   : > { %5738 = vmatprep.mubr.msk.f32.mxu0 %vm7094_vm0, %v7095_v4 }
 0x1e2   : > { %v1047_v43 = vmax.f32 %v1004_v41, 0.0 }
 0x1e3   : > { %v1008_v44 = vpop.f32.mrb[24].mxu1 }
 0x1e4   : > { %5739 = vmatmul.mubr.msk.f32.gmra.mrb[24].mxu0 %vm1061_vm4, %v1047_v43  ;;  %v1009_v45 = vadd.f32 %v7387_v19, %v1008_v44  ;;  %v5700_v46 = vpop.f32.mrb[25].mxu1 }
 0x1e5   : > { %5741 = vmatprep.mubr.msk.f32.mxu0 %vm7094_vm0, %v7095_v4 }
 0x1e6   : > { %v1048_v47 = vmax.f32 %v1009_v45, 0.0 }
 0x1e7   : > { %v1013_v48 = vpop.f32.mrb[26].mxu1 }
 0x1e8   : > { %5742 = vmatmul.mubr.msk.f32.gmra.mrb[26].mxu0 %vm1061_vm4, %v1048_v47  ;;  %v1014_v49 = vadd.f32 %v7387_v19, %v1013_v48  ;;  %v5703_v50 = vpop.f32.mrb[27].mxu1 }
 0x1e9   : > { %5744 = vmatprep.mubr.msk.f32.mxu0 %vm7094_vm0, %v7095_v4 }
 0x1ea   : > { %v1049_v51 = vmax.f32 %v1014_v49, 0.0 }
 0x1eb   : > { %v1018_v52 = vpop.f32.mrb[28].mxu1 }
 0x1ec   : > { %5745 = vmatmul.mubr.msk.f32.gmra.mrb[28].mxu0 %vm1061_vm4, %v1049_v51  ;;  %v1019_v53 = vadd.f32 %v7387_v19, %v1018_v52  ;;  %v5706_v54 = vpop.f32.mrb[29].mxu1 }
 0x1ed   : > { %5747 = vmatprep.mubr.msk.f32.mxu0 %vm7094_vm0, %v7095_v4 }
 0x1ee   : > { %v1050_v55 = vmax.f32 %v1019_v53, 0.0 }
 0x1ef   : > { %v1023_v56 = vpop.f32.mrb[30].mxu1 }
 0x1f0   : > { %5748 = vmatmul.mubr.msk.f32.gmra.mrb[30].mxu0 %vm1061_vm4, %v1050_v55  ;;  %v1024_v57 = vadd.f32 %v7387_v19, %v1023_v56  ;;  %v5709_v58 = vpop.f32.mrb[31].mxu1 }
 0x1f1   : > { %5750 = vmatprep.mubr.msk.f32.mxu0 %vm7094_vm0, %v7095_v4 }
 0x1f2   : > { %v1051_v59 = vmax.f32 %v1024_v57, 0.0 }
 0x1f3   : > { %v1028_v60 = vpop.f32.mrb[32].mxu1 }
 0x1f4   : > { %5751 = vmatmul.mubr.msk.f32.gmra.mrb[32].mxu0 %vm1061_vm4, %v1051_v59  ;;  %v1029_v61 = vadd.f32 %v7387_v19, %v1028_v60  ;;  %v5712_v62 = vpop.f32.mrb[33].mxu1 }
 0x1f5   : > { %5753 = vmatprep.mubr.msk.f32.mxu0 %vm7094_vm0, %v7095_v4 }
 0x1f6   : > { %v1052_v63 = vmax.f32 %v1029_v61, 0.0 }
 0x1f7   : > { %v1033_v0 = vpop.f32.mrb[34].mxu1 }
 0x1f8   : > { %5754 = vmatmul.mubr.msk.f32.gmra.mrb[34].mxu0 %vm1061_vm4, %v1052_v63  ;;  %v1034_v1 = vadd.f32 %v7387_v19, %v1033_v0  ;;  %v5715_v3 = vpop.f32.mrb[35].mxu1 }
 0x1f9   : > { %5756 = vmatprep.mubr.msk.f32.mxu0 %vm7094_vm0, %v7095_v4 }
 0x1fa   : > { %v1053_v5 = vmax.f32 %v1034_v1, 0.0 }
 0x1fb   : > { %v1038_v6 = vpop.f32.mrb[36].mxu1 }
 0x1fc   : > { %5757 = vmatmul.mubr.msk.f32.gmra.mrb[36].mxu0 %vm1061_vm4, %v1053_v5  ;;  %v1039_v7 = vadd.f32 %v7387_v19, %v1038_v6  ;;  %v5718_v8 = vpop.f32.mrb[37].mxu1  ;;  %v7446_v19 = vrot.slane %v1232_v16, %v1350_v13 }
 0x1fd   : > { %5759 = vmatprep.mubr.msk.f32.mxu0 %vm7094_vm0, %v7095_v4 }
 0x1fe   : > { %v1054_v9 = vmax.f32 %v1039_v7, 0.0  ;;  %vm1352_vm6 = vcmp.eq.s32.totalorder %v7446_v19, 1 }
 0x200   : > { %5760 = vmatmul.mubr.msk.f32.gmra.mrb[38].mxu0 %vm1061_vm4, %v1054_v9  ;;  %vm1921_vm4 = vcmask 195584  }
 0x201   : > { %5807 = vmatprep.mubr.msk.f32.mxu0 %vm7094_vm0, %v7095_v4 }
 0x2a3   : > { %v1167_v24 = vpop.f32.mrb[14].mxu0 }
 0x2a4   : > { %v7462_v25 = vadd.f32 %v7453_v21, %v1167_v24  ;;  %v5725_v26 = vpop.f32.mrb[15].mxu0 }
 0x2a6   : > { %v1353_v27 = vsel %vm1352_vm6, %v7462_v25, -1e+30  ;;  %v1238_v28 = vsel %vm1237_vm7, %v7462_v25, -1e+30  ;;  %v1410_v34 = vsel %vm1409_vm9, %v7462_v25, -1e+30 }
 0x2a7   : > { %v1366_v29 = vsel %vm1251_vm8, %v1353_v27, -inf  ;;  %v1252_v30 = vsel %vm1251_vm8, %v1238_v28, -inf  ;;  %v1172_v31 = vpop.f32.mrb[16].mxu0  ;;  %v1296_v35 = vsel %vm1295_vm10, %v7462_v25, -1e+30  ;;  %v1423_v38 = vsel %vm1251_vm8, %v1410_v34, -inf }
 0x2a8   : > { %1367 = vmax.xlane.f32.xlu1 %v1366_v29  ;;  %1253 = vmax.xlane.f32.xlu0 %v1252_v30  ;;  %v7475_v32 = vadd.f32 %v7453_v21, %v1172_v31  ;;  %v5728_v33 = vpop.f32.mrb[17].mxu0  ;;  %v1309_v39 = vsel %vm1251_vm8, %v1296_v35, -inf }
 0x2aa   : > { %v1297_v36 = vsel %vm1295_vm10, %v7475_v32, -1e+30  ;;  %v1239_v37 = vsel %vm1237_vm7, %v7475_v32, -1e+30  ;;  %v1411_v46 = vsel %vm1409_vm9, %v7475_v32, -1e+30 }
 0x2ab   : > { %v1177_v40 = vpop.f32.mrb[18].mxu0  ;;  %v1312_v42 = vsel %vm1251_vm8, %v1297_v36, -inf  ;;  %v1255_v43 = vsel %vm1251_vm8, %v1239_v37, -inf  ;;  %v1354_v47 = vsel %vm1352_vm6, %v7475_v32, -1e+30  ;;  %v1426_v51 = vsel %vm1251_vm8, %v1411_v46, -inf }
 0x2ac   : > { %1424 = vmax.xlane.f32.xlu1 %v1423_v38  ;;  %1310 = vmax.xlane.f32.xlu0 %v1309_v39  ;;  %v5731_v41 = vpop.f32.mrb[19].mxu0  ;;  %v7494_v44 = vadd.f32 %v7453_v21, %v1177_v40  ;;  %v1369_v52 = vsel %vm1251_vm8, %v1354_v47, -inf }
 0x2ae   : > { %v1298_v49 = vsel %vm1295_vm10, %v7494_v44, -1e+30  ;;  %v1240_v50 = vsel %vm1237_vm7, %v7494_v44, -1e+30  ;;  %v1412_v59 = vsel %vm1409_vm9, %v7494_v44, -1e+30 }
 0x2af   : > { %v1182_v45 = vpop.f32.mrb[20].mxu0  ;;  %v1315_v55 = vsel %vm1251_vm8, %v1298_v49, -inf  ;;  %v1258_v56 = vsel %vm1251_vm8, %v1240_v50, -inf  ;;  %v1355_v60 = vsel %vm1352_vm6, %v7494_v44, -1e+30  ;;  %v1429_v0 = vsel %vm1251_vm8, %v1412_v59, -inf }
 0x2b0   : > { %1313 = vmax.xlane.f32.xlu1 %v1312_v42  ;;  %1256 = vmax.xlane.f32.xlu0 %v1255_v43  ;;  %v5734_v48 = vpop.f32.mrb[21].mxu0  ;;  %v7513_v57 = vadd.f32 %v7453_v21, %v1182_v45  ;;  %v1372_v1 = vsel %vm1251_vm8, %v1355_v60, -inf }
 0x2b2   : > { %v1299_v62 = vsel %vm1295_vm10, %v7513_v57, -1e+30  ;;  %v1241_v63 = vsel %vm1237_vm7, %v7513_v57, -1e+30  ;;  %v1413_v10 = vsel %vm1409_vm9, %v7513_v57, -1e+30 }
 0x2b3   : > { %v1187_v53 = vpop.f32.mrb[22].mxu0  ;;  %v1318_v6 = vsel %vm1251_vm8, %v1299_v62, -inf  ;;  %v1261_v7 = vsel %vm1251_vm8, %v1241_v63, -inf  ;;  %v1356_v11 = vsel %vm1352_vm6, %v7513_v57, -1e+30  ;;  %v1432_v15 = vsel %vm1251_vm8, %v1413_v10, -inf }
 0x2b4   : > { %1427 = vmax.xlane.f32.xlu1 %v1426_v51  ;;  %1370 = vmax.xlane.f32.xlu0 %v1369_v52  ;;  %v5737_v54 = vpop.f32.mrb[23].mxu0  ;;  %v7532_v8 = vadd.f32 %v7453_v21, %v1187_v53  ;;  %v1375_v16 = vsel %vm1251_vm8, %v1356_v11, -inf }
 0x2b6   : > { %v1300_v13 = vsel %vm1295_vm10, %v7532_v8, -1e+30  ;;  %v1242_v14 = vsel %vm1237_vm7, %v7532_v8, -1e+30  ;;  %v1414_v30 = vsel %vm1409_vm9, %v7532_v8, -1e+30 }
 0x2b7   : > { %v1192_v58 = vpop.f32.mrb[24].mxu0  ;;  %v1321_v26 = vsel %vm1251_vm8, %v1300_v13, -inf  ;;  %v1264_v27 = vsel %vm1251_vm8, %v1242_v14, -inf  ;;  %v1357_v31 = vsel %vm1352_vm6, %v7532_v8, -1e+30  ;;  %v1435_v37 = vsel %vm1251_vm8, %v1414_v30, -inf }
 0x2b8   : > { %1316 = vmax.xlane.f32.xlu1 %v1315_v55  ;;  %1259 = vmax.xlane.f32.xlu0 %v1258_v56  ;;  %v5740_v61 = vpop.f32.mrb[25].mxu0  ;;  %v7554_v28 = vadd.f32 %v7453_v21, %v1192_v58  ;;  %v1378_v38 = vsel %vm1251_vm8, %v1357_v31, -inf }
 0x2ba   : > { %v1301_v35 = vsel %vm1295_vm10, %v7554_v28, -1e+30  ;;  %v1243_v36 = vsel %vm1237_vm7, %v7554_v28, -1e+30  ;;  %v1415_v47 = vsel %vm1409_vm9, %v7554_v28, -1e+30 }
 0x2bb   : > { %v1197_v3 = vpop.f32.mrb[26].mxu0  ;;  %v1324_v42 = vsel %vm1251_vm8, %v1301_v35, -inf  ;;  %v1267_v43 = vsel %vm1251_vm8, %v1243_v36, -inf  ;;  %v1358_v48 = vsel %vm1352_vm6, %v7554_v28, -1e+30  ;;  %v1438_v53 = vsel %vm1251_vm8, %v1415_v47, -inf }
 0x2bc   : > { %1430 = vmax.xlane.f32.xlu1 %v1429_v0  ;;  %1373 = vmax.xlane.f32.xlu0 %v1372_v1  ;;  %v5743_v5 = vpop.f32.mrb[27].mxu0  ;;  %v7579_v45 = vadd.f32 %v7453_v21, %v1197_v3  ;;  %v1381_v54 = vsel %vm1251_vm8, %v1358_v48, -inf }
 0x2be   : > { %v1302_v51 = vsel %vm1295_vm10, %v7579_v45, -1e+30  ;;  %v1244_v52 = vsel %vm1237_vm7, %v7579_v45, -1e+30  ;;  %v1416_v62 = vsel %vm1409_vm9, %v7579_v45, -1e+30 }
 0x2bf   : > { %v1202_v9 = vpop.f32.mrb[28].mxu0  ;;  %v1327_v59 = vsel %vm1251_vm8, %v1302_v51, -inf  ;;  %v1270_v60 = vsel %vm1251_vm8, %v1244_v52, -inf  ;;  %v1359_v63 = vsel %vm1352_vm6, %v7579_v45, -1e+30 }
 0x2c0   : > { %1319 = vmax.xlane.f32.xlu1 %v1318_v6  ;;  %1262 = vmax.xlane.f32.xlu0 %v1261_v7  ;;  %v5746_v12 = vpop.f32.mrb[29].mxu0  ;;  %v7604_v61 = vadd.f32 %v7453_v21, %v1202_v9  ;;  %v1384_v3 = vsel %vm1251_vm8, %v1359_v63, -inf }
 0x2c2   : > { %v1303_v0 = vsel %vm1295_vm10, %v7604_v61, -1e+30  ;;  %v1245_v1 = vsel %vm1237_vm7, %v7604_v61, -1e+30  ;;  %v1417_v7 = vsel %vm1409_vm9, %v7604_v61, -1e+30 }
 0x2c3   : > { %v1207_v17 = vpop.f32.mrb[30].mxu0  ;;  %v1330_v5 = vsel %vm1251_vm8, %v1303_v0, -inf  ;;  %v1273_v6 = vsel %vm1251_vm8, %v1245_v1, -inf  ;;  %v1360_v9 = vsel %vm1352_vm6, %v7604_v61, -1e+30  ;;  %v1444_v12 = vsel %vm1251_vm8, %v1417_v7, -inf }
 0x2c4   : > { %1433 = vmax.xlane.f32.xlu1 %v1432_v15  ;;  %1376 = vmax.xlane.f32.xlu0 %v1375_v16  ;;  %v7549_v18 = vadd.f32 %v7453_v21, %v1207_v17  ;;  %v5749_v24 = vpop.f32.mrb[31].mxu0  ;;  %v1387_v13 = vsel %vm1251_vm8, %v1360_v9, -inf }
 0x2c6   : > { %v1304_v10 = vsel %vm1295_vm10, %v7549_v18, -1e+30  ;;  %v1246_v11 = vsel %vm1237_vm7, %v7549_v18, -1e+30  ;;  %v1418_v16 = vsel %vm1409_vm9, %v7549_v18, -1e+30 }
 0x2c7   : > { %v1212_v29 = vpop.f32.mrb[32].mxu0  ;;  %v1333_v14 = vsel %vm1251_vm8, %v1304_v10, -inf  ;;  %v1276_v15 = vsel %vm1251_vm8, %v1246_v11, -inf  ;;  %v1361_v17 = vsel %vm1352_vm6, %v7549_v18, -1e+30 }
 0x2c8   : > { %1322 = vmax.xlane.f32.xlu1 %v1321_v26  ;;  %1265 = vmax.xlane.f32.xlu0 %v1264_v27  ;;  %v7563_v33 = vadd.f32 %v7453_v21, %v1212_v29  ;;  %v5752_v34 = vpop.f32.mrb[33].mxu0  ;;  %v1447_v27 = vsel %vm1251_vm8, %v1418_v16, -inf  ;;  %v1390_v29 = vsel %vm1251_vm8, %v1361_v17, -inf }
 0x2ca   : > { %v1305_v24 = vsel %vm1295_vm10, %v7563_v33, -1e+30  ;;  %v1247_v26 = vsel %vm1237_vm7, %v7563_v33, -1e+30  ;;  %v1419_v34 = vsel %vm1409_vm9, %v7563_v33, -1e+30 }
 0x2cb   : > { %v1217_v39 = vpop.f32.mrb[34].mxu0  ;;  %v1336_v30 = vsel %vm1251_vm8, %v1305_v24, -inf  ;;  %v1279_v31 = vsel %vm1251_vm8, %v1247_v26, -inf  ;;  %v1362_v35 = vsel %vm1352_vm6, %v7563_v33, -1e+30 }
 0x2cc   : > { %1436 = vmax.xlane.f32.xlu1 %v1435_v37  ;;  %1379 = vmax.xlane.f32.xlu0 %v1378_v38  ;;  %v7574_v40 = vadd.f32 %v7453_v21, %v1217_v39  ;;  %v5755_v41 = vpop.f32.mrb[35].mxu0  ;;  %v1450_v38 = vsel %vm1251_vm8, %v1419_v34, -inf  ;;  %v1393_v39 = vsel %vm1251_vm8, %v1362_v35, -inf }
 0x2ce   : > { %v1306_v36 = vsel %vm1295_vm10, %v7574_v40, -1e+30  ;;  %v1248_v37 = vsel %vm1237_vm7, %v7574_v40, -1e+30 }
 0x2cf   : > { %v1222_v46 = vpop.f32.mrb[36].mxu0  ;;  %v1339_v41 = vsel %vm1251_vm8, %v1306_v36, -inf }
 0x2d0   : > { %1325 = vmax.xlane.f32.xlu1 %v1324_v42  ;;  %1268 = vmax.xlane.f32.xlu0 %v1267_v43  ;;  %v7588_v49 = vadd.f32 %v7453_v21, %v1222_v46  ;;  %v5758_v50 = vpop.f32.mrb[37].mxu0  ;;  %v1282_v42 = vsel %vm1251_vm8, %v1248_v37, -inf  ;;  %v1420_v43 = vsel %vm1409_vm9, %v7574_v40, -1e+30  ;;  %v1363_v46 = vsel %vm1352_vm6, %v7574_v40, -1e+30 }
 0x2d1   : > { %v1453_v50 = vsel %vm1251_vm8, %v1420_v43, -inf  ;;  %v1396_v51 = vsel %vm1251_vm8, %v1363_v46, -inf }
 0x2d2   : > { %v1307_v47 = vsel %vm1295_vm10, %v7588_v49, -1e+30  ;;  %v1249_v48 = vsel %vm1237_vm7, %v7588_v49, -1e+30 }
 0x2d3   : > { %v1227_v55 = vpop.f32.mrb[38].mxu0  ;;  %v1342_v52 = vsel %vm1251_vm8, %v1307_v47, -inf }
 0x2d4   : > { %1439 = vmax.xlane.f32.xlu1 %v1438_v53  ;;  %1382 = vmax.xlane.f32.xlu0 %v1381_v54  ;;  %v7599_v56 = vadd.f32 %v7453_v21, %v1227_v55  ;;  %v5761_v58 = vpop.f32.mrb[39].mxu0  ;;  %v1441_v21 = vsel %vm1251_vm8, %v1416_v62, -inf  ;;  %v1285_v53 = vsel %vm1251_vm8, %v1249_v48, -inf  ;;  %v1421_v54 = vsel %vm1409_vm9, %v7588_v49, -1e+30 }
 0x2d5   : > { %v1364_v55 = vsel %vm1352_vm6, %v7588_v49, -1e+30 }
 0x2d6   : > { %v1308_v58 = vsel %vm1295_vm10, %v7599_v56, -1e+30  ;;  %v1399_v62 = vsel %vm1251_vm8, %v1364_v55, -inf  ;;  %v1422_v23 = vsel %vm1409_vm9, %v7599_v56, -1e+30 }
 0x2d7   : > { %v1345_v63 = vsel %vm1251_vm8, %v1308_v58, -inf  ;;  %v1365_v20 = vsel %vm1352_vm6, %v7599_v56, -1e+30  ;;  %v1459_v1 = vsel %vm1251_vm8, %v1422_v23, -inf }
 0x2d8   : > { %1328 = vmax.xlane.f32.xlu1 %v1327_v59  ;;  %1271 = vmax.xlane.f32.xlu0 %v1270_v60  ;;  %v1250_v59 = vsel %vm1237_vm7, %v7599_v56, -1e+30  ;;  %v1456_v60 = vsel %vm1251_vm8, %v1421_v54, -inf }
 0x2d9   : > { %v1288_v0 = vsel %vm1251_vm8, %v1250_v59, -inf }
 0x2dc   : > { %1442 = vmax.xlane.f32.xlu1 %v1441_v21  ;;  %1385 = vmax.xlane.f32.xlu0 %v1384_v3  ;;  %v1402_v21 = vsel %vm1251_vm8, %v1365_v20, -inf }
 0x2e0   : > { %1331 = vmax.xlane.f32.xlu1 %v1330_v5  ;;  %1274 = vmax.xlane.f32.xlu0 %v1273_v6 }
 0x2e4   : > { %1445 = vmax.xlane.f32.xlu1 %v1444_v12  ;;  %1388 = vmax.xlane.f32.xlu0 %v1387_v13 }
 0x2e8   : > { %1334 = vmax.xlane.f32.xlu1 %v1333_v14  ;;  %1277 = vmax.xlane.f32.xlu0 %v1276_v15 }
 0x2ec   : > { %1448 = vmax.xlane.f32.xlu1 %v1447_v27  ;;  %1391 = vmax.xlane.f32.xlu0 %v1390_v29 }
 0x2f0   : > { %1337 = vmax.xlane.f32.xlu1 %v1336_v30  ;;  %1280 = vmax.xlane.f32.xlu0 %v1279_v31 }
 0x2f4   : > { %1451 = vmax.xlane.f32.xlu1 %v1450_v38  ;;  %1394 = vmax.xlane.f32.xlu0 %v1393_v39 }
 0x2f8   : > { %1340 = vmax.xlane.f32.xlu1 %v1339_v41  ;;  %1283 = vmax.xlane.f32.xlu0 %v1282_v42 }
 0x2fc   : > { %1454 = vmax.xlane.f32.xlu1 %v1453_v50  ;;  %1397 = vmax.xlane.f32.xlu0 %v1396_v51 }
 0x300   : > { %1343 = vmax.xlane.f32.xlu1 %v1342_v52  ;;  %1286 = vmax.xlane.f32.xlu0 %v1285_v53 }
 0x304   : > { %1457 = vmax.xlane.f32.xlu1 %v1456_v60  ;;  %1400 = vmax.xlane.f32.xlu0 %v1399_v62 }
 0x308   : > { %1346 = vmax.xlane.f32.xlu1 %v1345_v63  ;;  %1289 = vmax.xlane.f32.xlu0 %v1288_v0 }
 0x30c   : > { %1460 = vmax.xlane.f32.xlu1 %v1459_v1  ;;  %1403 = vmax.xlane.f32.xlu0 %v1402_v21 }
 0x335   : > { %v1368_v3 = vpop.xlane.xlu1 %1367  ;;  %v1254_v5 = vpop.xlane.xlu0 %1253 }
 0x339   : > { %v1425_v6 = vpop.xlane.xlu1 %1424  ;;  %v1311_v7 = vpop.xlane.xlu0 %1310 }
 0x33a   : > { %v1463_v22 = vsel %vm1462_vm11, %v1254_v5, %v1311_v7 }
 0x33b   : > { %v1477_v9 = vsel %vm1476_vm12, %v1463_v22, %v1368_v3 }
 0x33c   : > { %v1491_v19 = vsel %vm1490_vm13, %v1477_v9, %v1425_v6 }
 0x33d   : > { %5765 = vmatmul.mubr.msk.f32.vlgmr.msra.gmra.mrb[38].mxu1 %vm1504_vm14, %v1491_v19  ;;  %v1314_v10 = vpop.xlane.xlu1 %1313  ;;  %v1257_v11 = vpop.xlane.xlu0 %1256 }
 0x33e   : > { %5767 = vmatprep.mubr.msk.f32.mxu1 %vm7094_vm0, %v7095_v4  ;;  %v1464_v12 = vsel %vm1462_vm11, %v1257_v11, %v1314_v10 }
 0x341   : > { %v1428_v13 = vpop.xlane.xlu1 %1427  ;;  %v1371_v14 = vpop.xlane.xlu0 %1370 }
 0x342   : > { %v1478_v15 = vsel %vm1476_vm12, %v1464_v12, %v1371_v14 }
 0x343   : > { %v1492_v16 = vsel %vm1490_vm13, %v1478_v15, %v1428_v13 }
 0x344   : > { %5768 = vmatmul.mubr.msk.f32.gmra.mrb[40].mxu1 %vm1504_vm14, %v1492_v16 }
 0x345   : > { %v1317_v17 = vpop.xlane.xlu1 %1316  ;;  %v1260_v24 = vpop.xlane.xlu0 %1259  ;;  %5770 = vmatprep.mubr.msk.f32.mxu1 %vm7094_vm0, %v7095_v4 }
 0x346   : > { %v1465_v26 = vsel %vm1462_vm11, %v1260_v24, %v1317_v17 }
 0x349   : > { %v1431_v27 = vpop.xlane.xlu1 %1430  ;;  %v1374_v29 = vpop.xlane.xlu0 %1373 }
 0x34a   : > { %v1479_v30 = vsel %vm1476_vm12, %v1465_v26, %v1374_v29 }
 0x34b   : > { %v1493_v31 = vsel %vm1490_vm13, %v1479_v30, %v1431_v27 }
 0x34c   : > { %5771 = vmatmul.mubr.msk.f32.gmra.mrb[42].mxu1 %vm1504_vm14, %v1493_v31 }
 0x34d   : > { %v1320_v34 = vpop.xlane.xlu1 %1319  ;;  %v1263_v35 = vpop.xlane.xlu0 %1262  ;;  %5773 = vmatprep.mubr.msk.f32.mxu1 %vm7094_vm0, %v7095_v4 }
 0x34e   : > { %v1466_v36 = vsel %vm1462_vm11, %v1263_v35, %v1320_v34 }
 0x351   : > { %v1434_v37 = vpop.xlane.xlu1 %1433  ;;  %v1377_v38 = vpop.xlane.xlu0 %1376 }
 0x352   : > { %v1480_v39 = vsel %vm1476_vm12, %v1466_v36, %v1377_v38 }
 0x353   : > { %v1494_v41 = vsel %vm1490_vm13, %v1480_v39, %v1434_v37 }
 0x354   : > { %5774 = vmatmul.mubr.msk.f32.gmra.mrb[44].mxu1 %vm1504_vm14, %v1494_v41 }
 0x355   : > { %v1323_v42 = vpop.xlane.xlu1 %1322  ;;  %v1266_v43 = vpop.xlane.xlu0 %1265  ;;  %5776 = vmatprep.mubr.msk.f32.mxu1 %vm7094_vm0, %v7095_v4 }
 0x356   : > { %v1467_v46 = vsel %vm1462_vm11, %v1266_v43, %v1323_v42 }
 0x359   : > { %v1437_v47 = vpop.xlane.xlu1 %1436  ;;  %v1380_v48 = vpop.xlane.xlu0 %1379 }
 0x35a   : > { %v1481_v50 = vsel %vm1476_vm12, %v1467_v46, %v1380_v48 }
 0x35b   : > { %v1495_v51 = vsel %vm1490_vm13, %v1481_v50, %v1437_v47 }
 0x35c   : > { %5777 = vmatmul.mubr.msk.f32.gmra.mrb[46].mxu1 %vm1504_vm14, %v1495_v51 }
 0x35d   : > { %v1326_v52 = vpop.xlane.xlu1 %1325  ;;  %v1269_v53 = vpop.xlane.xlu0 %1268  ;;  %5779 = vmatprep.mubr.msk.f32.mxu1 %vm7094_vm0, %v7095_v4 }
 0x35e   : > { %v1468_v54 = vsel %vm1462_vm11, %v1269_v53, %v1326_v52 }
 0x361   : > { %v1440_v55 = vpop.xlane.xlu1 %1439  ;;  %v1383_v58 = vpop.xlane.xlu0 %1382 }
 0x362   : > { %v1482_v59 = vsel %vm1476_vm12, %v1468_v54, %v1383_v58 }
 0x363   : > { %v1496_v60 = vsel %vm1490_vm13, %v1482_v59, %v1440_v55 }
 0x364   : > { %5780 = vmatmul.mubr.msk.f32.gmra.mrb[48].mxu1 %vm1504_vm14, %v1496_v60 }
 0x365   : > { %v1329_v62 = vpop.xlane.xlu1 %1328  ;;  %v1272_v63 = vpop.xlane.xlu0 %1271  ;;  %5782 = vmatprep.mubr.msk.f32.mxu1 %vm7094_vm0, %v7095_v4 }
 0x366   : > { %v1469_v0 = vsel %vm1462_vm11, %v1272_v63, %v1329_v62  ;;  %v671_v62 = vld [vmem:[%s9453_s16] sm:$0xff]  ;;  %v672_v63 = vld [vmem:[%s9453_s16 + $0x8] sm:$0x3] }
 0x369   : > { %v1443_v23 = vpop.xlane.xlu1 %1442  ;;  %v1386_v20 = vpop.xlane.xlu0 %1385 }
 0x36a   : > { %v1483_v1 = vsel %vm1476_vm12, %v1469_v0, %v1386_v20  ;;  %v6689_v0 = vpack.c.bf16 %v672_v63, %v671_v62  ;;  %v638_v20 = vld [vmem:[%s9467_s2] sm:$0xff] }
 0x36b   : > { %v1497_v21 = vsel %vm1490_vm13, %v1483_v1, %v1443_v23  ;;  %v639_v1 = vld [vmem:[%s9467_s2 + $0x8] sm:$0xff] }
 0x36c   : > { %5783 = vmatmul.mubr.msk.f32.gmra.mrb[50].mxu1 %vm1504_vm14, %v1497_v21  ;;  %6691 = vmatpush3.bf16.msk.msra.mxu0 %vm7792_vm2, %v6689_v0  ;;  %v6693_v21 = vpack.c.bf16 %v639_v1, %v638_v20 }
 0x36d   : > { %v1332_v3 = vpop.xlane.xlu1 %1331  ;;  %v1275_v5 = vpop.xlane.xlu0 %1274  ;;  %5785 = vmatprep.mubr.msk.f32.mxu1 %vm7094_vm0, %v7095_v4  ;;  %6695 = vmatprep.subr.bf16.mxu0 %v7093_v2 }
 0x36e   : > { %v1470_v6 = vsel %vm1462_vm11, %v1275_v5, %v1332_v3  ;;  %6694 = vmatpush3.bf16.msra.mxu1 %v6693_v21  ;;  %v640_v3 = vld [vmem:[%s9467_s2 + $0x10] sm:$0xff]  ;;  %v612_v5 = vld [vmem:[%s7812_s6] sm:$0xff] }
 0x36f   : > { %5850 = vmatprep.subr.mxu1 %v7095_v4 }
 0x371   : > { %v1446_v7 = vpop.xlane.xlu1 %1445  ;;  %v1389_v22 = vpop.xlane.xlu0 %1388 }
 0x372   : > { %v1484_v9 = vsel %vm1476_vm12, %v1470_v6, %v1389_v22  ;;  %5851 = vmatpush3.msra.mxu1 %v640_v3  ;;  %v613_v6 = vld [vmem:[%s7812_s6 + $0x8] sm:$0xff]  ;;  %v615_v22 = vld [vmem:[%s7812_s6 + $0x18] sm:$0xff] }
 0x373   : > { %v1498_v19 = vsel %vm1490_vm13, %v1484_v9, %v1446_v7  ;;  %6701 = vmatprep.subr.bf16.mxu1 %v7093_v2  ;;  %v614_v7 = vld [vmem:[%s7812_s6 + $0x10] sm:$0xff]  ;;  %v616_v9 = vld [vmem:[%s7812_s6 + $0x20] sm:$0xff] }
 0x374   : > { %5786 = vmatmul.mubr.msk.f32.gmra.mrb[52].mxu1 %vm1504_vm14, %v1498_v19  ;;  %v617_v19 = vld [vmem:[%s7812_s6 + $0x28] sm:$0xff] }
 0x375   : > { %v1335_v10 = vpop.xlane.xlu1 %1334  ;;  %v1278_v11 = vpop.xlane.xlu0 %1277  ;;  %5788 = vmatprep.mubr.msk.f32.mxu1 %vm7094_vm0, %v7095_v4 }
 0x376   : > { %v1471_v12 = vsel %vm1462_vm11, %v1278_v11, %v1335_v10  ;;  %v618_v10 = vld [vmem:[%s7812_s6 + $0x30] sm:$0xff]  ;;  %v619_v11 = vld [vmem:[%s7812_s6 + $0x38] sm:$0xff] }
 0x379   : > { %v1449_v13 = vpop.xlane.xlu1 %1448  ;;  %v1392_v14 = vpop.xlane.xlu0 %1391 }
 0x37a   : > { %v1485_v15 = vsel %vm1476_vm12, %v1471_v12, %v1392_v14  ;;  %v620_v12 = vld [vmem:[%s7812_s6 + $0x40] sm:$0xff]  ;;  %v622_v14 = vld [vmem:[%s7812_s6 + $0x50] sm:$0xff] }
 0x37b   : > { %v1499_v16 = vsel %vm1490_vm13, %v1485_v15, %v1449_v13  ;;  %v621_v13 = vld [vmem:[%s7812_s6 + $0x48] sm:$0xff]  ;;  %v623_v15 = vld [vmem:[%s7812_s6 + $0x58] sm:$0xff] }
 0x37c   : > { %5789 = vmatmul.mubr.msk.f32.gmra.mrb[54].mxu1 %vm1504_vm14, %v1499_v16  ;;  %v624_v16 = vld [vmem:[%s7812_s6 + $0x60] sm:$0xff]  ;;  %s6853_s6 = smul.u32 104, %s576_s1 }
 0x37d   : > { %v1338_v17 = vpop.xlane.xlu1 %1337  ;;  %v1281_v24 = vpop.xlane.xlu0 %1280  ;;  %5791 = vmatprep.mubr.msk.f32.mxu1 %vm7094_vm0, %v7095_v4 }
 0x37e   : > { %v1472_v26 = vsel %vm1462_vm11, %v1281_v24, %v1338_v17  ;;  %s9308_s20 = scalar_lea.vmem [#allocation2], %s6853_s6  }
 0x381   : > { %v1452_v27 = vpop.xlane.xlu1 %1451  ;;  %v1395_v29 = vpop.xlane.xlu0 %1394 }
 0x382   : > { %v1486_v30 = vsel %vm1476_vm12, %v1472_v26, %v1395_v29 }
 0x383   : > { %v1500_v31 = vsel %vm1490_vm13, %v1486_v30, %v1452_v27 }
 0x384   : > { %5792 = vmatmul.mubr.msk.f32.gmra.mrb[56].mxu1 %vm1504_vm14, %v1500_v31 }
 0x385   : > { %v1341_v34 = vpop.xlane.xlu1 %1340  ;;  %v1284_v35 = vpop.xlane.xlu0 %1283  ;;  %5794 = vmatprep.mubr.msk.f32.mxu1 %vm7094_vm0, %v7095_v4 }
 0x386   : > { %v1473_v36 = vsel %vm1462_vm11, %v1284_v35, %v1341_v34 }
 0x389   : > { %v1455_v37 = vpop.xlane.xlu1 %1454  ;;  %v1398_v38 = vpop.xlane.xlu0 %1397 }
 0x38a   : > { %v1487_v39 = vsel %vm1476_vm12, %v1473_v36, %v1398_v38 }
 0x38b   : > { %v1501_v41 = vsel %vm1490_vm13, %v1487_v39, %v1455_v37 }
 0x38c   : > { %5795 = vmatmul.mubr.msk.f32.gmra.mrb[58].mxu1 %vm1504_vm14, %v1501_v41 }
 0x38d   : > { %v1344_v42 = vpop.xlane.xlu1 %1343  ;;  %v1287_v43 = vpop.xlane.xlu0 %1286  ;;  %5797 = vmatprep.mubr.msk.f32.mxu1 %vm7094_vm0, %v7095_v4 }
 0x38e   : > { %v1474_v46 = vsel %vm1462_vm11, %v1287_v43, %v1344_v42 }
 0x391   : > { %v1458_v47 = vpop.xlane.xlu1 %1457  ;;  %v1401_v48 = vpop.xlane.xlu0 %1400 }
 0x392   : > { %v1488_v50 = vsel %vm1476_vm12, %v1474_v46, %v1401_v48 }
 0x393   : > { %v1502_v51 = vsel %vm1490_vm13, %v1488_v50, %v1458_v47 }
 0x394   : > { %5798 = vmatmul.mubr.msk.f32.gmra.mrb[60].mxu1 %vm1504_vm14, %v1502_v51 }
 0x395   : > { %v1347_v52 = vpop.xlane.xlu1 %1346  ;;  %v1290_v53 = vpop.xlane.xlu0 %1289  ;;  %5800 = vmatprep.mubr.msk.f32.mxu1 %vm7094_vm0, %v7095_v4 }
 0x396   : > { %v1475_v54 = vsel %vm1462_vm11, %v1290_v53, %v1347_v52 }
 0x399   : > { %v1461_v55 = vpop.xlane.xlu1 %1460  ;;  %v1404_v58 = vpop.xlane.xlu0 %1403 }
 0x39a   : > { %v1489_v59 = vsel %vm1476_vm12, %v1475_v54, %v1404_v58 }
 0x39b   : > { %v1503_v60 = vsel %vm1490_vm13, %v1489_v59, %v1461_v55 }
 0x39c   : > { %5801 = vmatmul.mubr.msk.f32.gmra.mrb[62].mxu1 %vm1504_vm14, %v1503_v60 }
 0x39d   : > { %5852 = vmatprep.mubr.msk.f32.mxu1 %vm7094_vm0, %v7095_v4 }
 0x3a0   : > { %5853 = vmatmul.mubr.msk.f32.vlgmr.msra.gmra.mrb[64].mxu1 %vm1921_vm4, %v612_v5 }
 0x3a1   : > { %5855 = vmatprep.mubr.msk.f32.mxu1 %vm7094_vm0, %v7095_v4 }
 0x3a4   : > { %5856 = vmatmul.mubr.msk.f32.gmra.mrb[66].mxu1 %vm1921_vm4, %v613_v6 }
 0x3a5   : > { %5858 = vmatprep.mubr.msk.f32.mxu1 %vm7094_vm0, %v7095_v4 }
 0x3a8   : > { %5859 = vmatmul.mubr.msk.f32.gmra.mrb[68].mxu1 %vm1921_vm4, %v614_v7 }
 0x3a9   : > { %5861 = vmatprep.mubr.msk.f32.mxu1 %vm7094_vm0, %v7095_v4 }
 0x3ac   : > { %5862 = vmatmul.mubr.msk.f32.gmra.mrb[70].mxu1 %vm1921_vm4, %v615_v22 }
 0x3ad   : > { %5864 = vmatprep.mubr.msk.f32.mxu1 %vm7094_vm0, %v7095_v4 }
 0x3b0   : > { %5865 = vmatmul.mubr.msk.f32.gmra.mrb[72].mxu1 %vm1921_vm4, %v616_v9 }
 0x3b1   : > { %5867 = vmatprep.mubr.msk.f32.mxu1 %vm7094_vm0, %v7095_v4 }
 0x3b4   : > { %5868 = vmatmul.mubr.msk.f32.gmra.mrb[74].mxu1 %vm1921_vm4, %v617_v19 }
 0x3b5   : > { %5870 = vmatprep.mubr.msk.f32.mxu1 %vm7094_vm0, %v7095_v4 }
 0x3b8   : > { %5871 = vmatmul.mubr.msk.f32.gmra.mrb[76].mxu1 %vm1921_vm4, %v618_v10 }
 0x3b9   : > { %5873 = vmatprep.mubr.msk.f32.mxu1 %vm7094_vm0, %v7095_v4 }
 0x3bc   : > { %5874 = vmatmul.mubr.msk.f32.gmra.mrb[78].mxu1 %vm1921_vm4, %v619_v11 }
 0x3bd   : > { %5876 = vmatprep.mubr.msk.f32.mxu1 %vm7094_vm0, %v7095_v4 }
 0x3c0   : > { %5877 = vmatmul.mubr.msk.f32.gmra.mrb[80].mxu1 %vm1921_vm4, %v620_v12 }
 0x3c1   : > { %5879 = vmatprep.mubr.msk.f32.mxu1 %vm7094_vm0, %v7095_v4 }
 0x3c4   : > { %5880 = vmatmul.mubr.msk.f32.gmra.mrb[82].mxu1 %vm1921_vm4, %v621_v13 }
 0x3c5   : > { %5882 = vmatprep.mubr.msk.f32.mxu1 %vm7094_vm0, %v7095_v4 }
 0x3c8   : > { %5883 = vmatmul.mubr.msk.f32.gmra.mrb[84].mxu1 %vm1921_vm4, %v622_v14 }
 0x3c9   : > { %5885 = vmatprep.mubr.msk.f32.mxu1 %vm7094_vm0, %v7095_v4 }
 0x3cc   : > { %5886 = vmatmul.mubr.msk.f32.gmra.mrb[86].mxu1 %vm1921_vm4, %v623_v15 }
 0x3cd   : > { %5888 = vmatprep.mubr.msk.f32.mxu1 %vm7094_vm0, %v7095_v4 }
 0x3d0   : > { %5889 = vmatmul.mubr.msk.f32.gmra.mrb[88].mxu1 %vm1921_vm4, %v624_v16 }
 0x3d1   : > { %5942 = vmatprep.mubr.msk.f32.mxu1 %vm7094_vm0, %v7095_v4 }
 0x410   : > { %v1613_v17 = vpop.f32.mrb[38].mxu1 }
 0x411   : > { %v1677_v24 = vsub.f32 %v7462_v25, %v1613_v17  ;;  %v5766_v26 = vpop.f32.mrb[39].mxu1 }
 0x413   : > { %v1690_v27 = vmul.f32 1.442695, %v1677_v24 }
 0x415   : > { %6949 = vpow2.f32 %v1690_v27 }
 0x417   : > { %v1618_v29 = vpop.f32.mrb[40].mxu1 }
 0x418   : > { %v1678_v30 = vsub.f32 %v7475_v32, %v1618_v29  ;;  %v5769_v31 = vpop.f32.mrb[41].mxu1  ;;  %v2104_v29 = vld [vmem:[%s9450_s13] sm:$0xff] }
 0x419   : > { %v2277_v31 = vld [vmem:[%s9449_s12] sm:$0xff] }
 0x41a   : > { %v1692_v34 = vmul.f32 1.442695, %v1678_v30 }
 0x41c   : > { %6951 = vpow2.f32 %v1692_v34  ;;  %v2278_v34 = vld [vmem:[%s9449_s12 + $0x8] sm:$0x3] }
 0x41f   : > { %v7873_v35 = vpop.eup %6949  ;;  %v1623_v36 = vpop.f32.mrb[42].mxu1 }
 0x420   : > { %v1679_v37 = vsub.f32 %v7494_v44, %v1623_v36  ;;  %v5772_v38 = vpop.f32.mrb[43].mxu1  ;;  %5808 = vmatmul.mubr.msk.f32.vlgmr.msra.gmra.mrb[40].mxu0 %vm1251_vm8, %v7873_v35  ;;  %v2106_v36 = vld [vmem:[%s9450_s13 + $0x10] sm:$0xff] }
 0x421   : > { %5810 = vmatprep.mubr.msk.f32.mxu0 %vm7094_vm0, %v7095_v4 }
 0x422   : > { %v1694_v25 = vmul.f32 1.442695, %v1679_v37  ;;  %v7975_v37 = vld [vmem:[%s9469_s3] ss:$0 sm:$0xff] }
 0x424   : > { %6953 = vpow2.f32 %v1694_v25  ;;  %v6702_v25 = vpack.c.bf16 %v2278_v34, %v2277_v31 }
 0x426   : > { %v7880_v39 = vpop.eup %6951  ;;  %6704 = vmatpush3.bf16.msk.msra.mxu1 %vm7792_vm2, %v6702_v25 }
 0x427   : > { %v1628_v32 = vpop.f32.mrb[44].mxu1  ;;  %5811 = vmatmul.mubr.msk.f32.gmra.mrb[42].mxu0 %vm1251_vm8, %v7880_v39  ;;  %6729 = vmatprep.subr.bf16.mxu1 %v7093_v2 }
 0x428   : > { %v1680_v41 = vsub.f32 %v7513_v57, %v1628_v32  ;;  %v5775_v42 = vpop.f32.mrb[45].mxu1  ;;  %5813 = vmatprep.mubr.msk.f32.mxu0 %vm7094_vm0, %v7095_v4  ;;  %v2107_v32 = vld [vmem:[%s9450_s13 + $0x18] sm:$0xff] }
 0x42a   : > { %v1696_v44 = vmul.f32 1.442695, %v1680_v41 }
 0x42c   : > { %6955 = vpow2.f32 %v1696_v44  ;;  %v6699_v44 = vpack.c.bf16 %v2107_v32, %v2106_v36 }
 0x42e   : > { %v7887_v43 = vpop.eup %6953 }
 0x42f   : > { %v1633_v46 = vpop.f32.mrb[46].mxu1  ;;  %5814 = vmatmul.mubr.msk.f32.gmra.mrb[44].mxu0 %vm1251_vm8, %v7887_v43 }
 0x430   : > { %v1681_v47 = vsub.f32 %v7532_v8, %v1633_v46  ;;  %v5778_v48 = vpop.f32.mrb[47].mxu1  ;;  %5816 = vmatprep.mubr.msk.f32.mxu0 %vm7094_vm0, %v7095_v4 }
 0x432   : > { %v1698_v50 = vmul.f32 1.442695, %v1681_v47 }
 0x434   : > { %6957 = vpow2.f32 %v1698_v50 }
 0x436   : > { %v7894_v57 = vpop.eup %6955 }
 0x437   : > { %v1638_v51 = vpop.f32.mrb[48].mxu1  ;;  %5817 = vmatmul.mubr.msk.f32.gmra.mrb[46].mxu0 %vm1251_vm8, %v7894_v57 }
 0x438   : > { %v1682_v52 = vsub.f32 %v7554_v28, %v1638_v51  ;;  %v5781_v53 = vpop.f32.mrb[49].mxu1  ;;  %5819 = vmatprep.mubr.msk.f32.mxu0 %vm7094_vm0, %v7095_v4 }
 0x43a   : > { %v1700_v54 = vmul.f32 1.442695, %v1682_v52 }
 0x43c   : > { %6959 = vpow2.f32 %v1700_v54 }
 0x43e   : > { %v7901_v8 = vpop.eup %6957 }
 0x43f   : > { %v1643_v55 = vpop.f32.mrb[50].mxu1  ;;  %5820 = vmatmul.mubr.msk.f32.gmra.mrb[48].mxu0 %vm1251_vm8, %v7901_v8 }
 0x440   : > { %v1683_v58 = vsub.f32 %v7579_v45, %v1643_v55  ;;  %v5784_v59 = vpop.f32.mrb[51].mxu1  ;;  %5822 = vmatprep.mubr.msk.f32.mxu0 %vm7094_vm0, %v7095_v4 }
 0x442   : > { %v1702_v60 = vmul.f32 1.442695, %v1683_v58 }
 0x444   : > { %6961 = vpow2.f32 %v1702_v60 }
 0x446   : > { %v7908_v28 = vpop.eup %6959 }
 0x447   : > { %v1648_v62 = vpop.f32.mrb[52].mxu1  ;;  %5823 = vmatmul.mubr.msk.f32.gmra.mrb[50].mxu0 %vm1251_vm8, %v7908_v28 }
 0x448   : > { %v1684_v63 = vsub.f32 %v7604_v61, %v1648_v62  ;;  %v5787_v0 = vpop.f32.mrb[53].mxu1  ;;  %5825 = vmatprep.mubr.msk.f32.mxu0 %vm7094_vm0, %v7095_v4 }
 0x44a   : > { %v1704_v20 = vmul.f32 1.442695, %v1684_v63 }
 0x44c   : > { %6963 = vpow2.f32 %v1704_v20 }
 0x44e   : > { %v7915_v45 = vpop.eup %6961 }
 0x44f   : > { %v1653_v1 = vpop.f32.mrb[54].mxu1  ;;  %5826 = vmatmul.mubr.msk.f32.gmra.mrb[52].mxu0 %vm1251_vm8, %v7915_v45 }
 0x450   : > { %v1685_v21 = vsub.f32 %v7549_v18, %v1653_v1  ;;  %v5790_v3 = vpop.f32.mrb[55].mxu1  ;;  %5828 = vmatprep.mubr.msk.f32.mxu0 %vm7094_vm0, %v7095_v4 }
 0x452   : > { %v1706_v5 = vmul.f32 1.442695, %v1685_v21 }
 0x454   : > { %6965 = vpow2.f32 %v1706_v5 }
 0x456   : > { %v7922_v61 = vpop.eup %6963 }
 0x457   : > { %v1658_v6 = vpop.f32.mrb[56].mxu1  ;;  %5829 = vmatmul.mubr.msk.f32.gmra.mrb[54].mxu0 %vm1251_vm8, %v7922_v61 }
 0x458   : > { %v1686_v7 = vsub.f32 %v7563_v33, %v1658_v6  ;;  %v5793_v22 = vpop.f32.mrb[57].mxu1  ;;  %5831 = vmatprep.mubr.msk.f32.mxu0 %vm7094_vm0, %v7095_v4 }
 0x45a   : > { %v1708_v9 = vmul.f32 1.442695, %v1686_v7 }
 0x45c   : > { %6967 = vpow2.f32 %v1708_v9 }
 0x45e   : > { %v7929_v18 = vpop.eup %6965 }
 0x45f   : > { %v1663_v19 = vpop.f32.mrb[58].mxu1  ;;  %5832 = vmatmul.mubr.msk.f32.gmra.mrb[56].mxu0 %vm1251_vm8, %v7929_v18 }
 0x460   : > { %v1687_v10 = vsub.f32 %v7574_v40, %v1663_v19  ;;  %v5796_v11 = vpop.f32.mrb[59].mxu1  ;;  %5834 = vmatprep.mubr.msk.f32.mxu0 %vm7094_vm0, %v7095_v4 }
 0x462   : > { %v1710_v12 = vmul.f32 1.442695, %v1687_v10 }
 0x464   : > { %6969 = vpow2.f32 %v1710_v12 }
 0x466   : > { %v7936_v33 = vpop.eup %6967 }
 0x467   : > { %v1668_v13 = vpop.f32.mrb[60].mxu1  ;;  %5835 = vmatmul.mubr.msk.f32.gmra.mrb[58].mxu0 %vm1251_vm8, %v7936_v33 }
 0x468   : > { %v1688_v14 = vsub.f32 %v7588_v49, %v1668_v13  ;;  %v5799_v15 = vpop.f32.mrb[61].mxu1  ;;  %5837 = vmatprep.mubr.msk.f32.mxu0 %vm7094_vm0, %v7095_v4 }
 0x46a   : > { %v1712_v16 = vmul.f32 1.442695, %v1688_v14 }
 0x46c   : > { %6971 = vpow2.f32 %v1712_v16 }
 0x46e   : > { %v7943_v40 = vpop.eup %6969 }
 0x46f   : > { %v1673_v17 = vpop.f32.mrb[62].mxu1  ;;  %5838 = vmatmul.mubr.msk.f32.gmra.mrb[60].mxu0 %vm1251_vm8, %v7943_v40 }
 0x470   : > { %v1689_v24 = vsub.f32 %v7599_v56, %v1673_v17  ;;  %v5802_v26 = vpop.f32.mrb[63].mxu1  ;;  %5840 = vmatprep.mubr.msk.f32.mxu0 %vm7094_vm0, %v7095_v4  ;;  %v2105_v56 = vld [vmem:[%s9450_s13 + $0x8] sm:$0xff] }
 0x471   : > { %v6696_v30 = vpack.c.bf16 %v2105_v56, %v2104_v29 }
 0x472   : > { %v1714_v27 = vmul.f32 1.442695, %v1689_v24 }
 0x473   : > { %6697 = vmatpush3.bf16.msra.mxu0 %v6696_v30  ;;  %v2027_v38 = vpop.f32.mrb[64].mxu1 }
 0x474   : > { %6973 = vpow2.f32 %v1714_v27  ;;  %6698 = vmatprep.subr.bf16.mxu0 %v7093_v2  ;;  %v2028_v42 = vadd.f32 %v7975_v37, %v2027_v38  ;;  %v5854_v46 = vpop.f32.mrb[65].mxu1 }
 0x476   : > { %v7950_v49 = vpop.eup %6971  ;;  %v2091_v47 = vmax.f32 %v2028_v42, 0.0 }
 0x477   : > { %5841 = vmatmul.mubr.msk.f32.gmra.mrb[62].mxu0 %vm1251_vm8, %v7950_v49  ;;  %v2032_v48 = vpop.f32.mrb[66].mxu1 }
 0x478   : > { %5843 = vmatprep.mubr.msk.f32.mxu0 %vm7094_vm0, %v7095_v4  ;;  %6700 = vmatpush3.bf16.msra.mxu0 %v6699_v44  ;;  %v2033_v50 = vadd.f32 %v7975_v37, %v2032_v48  ;;  %v5857_v51 = vpop.f32.mrb[67].mxu1 }
 0x479   : > { %6705 = vmatprep.subr.bf16.mxu0 %v7093_v2 }
 0x47a   : > { %v2092_v52 = vmax.f32 %v2033_v50, 0.0 }
 0x47b   : > { %v2037_v53 = vpop.f32.mrb[68].mxu1 }
 0x47c   : > { %v2038_v54 = vadd.f32 %v7975_v37, %v2037_v53  ;;  %v5860_v55 = vpop.f32.mrb[69].mxu1 }
 0x47e   : > { %v7980_v41 = vpop.eup %6973  ;;  %v2093_v58 = vmax.f32 %v2038_v54, 0.0 }
 0x47f   : > { %5844 = vmatmul.mubr.msk.f32.gmra.mrb[64].mxu0 %vm1251_vm8, %v7980_v41  ;;  %v2042_v59 = vpop.f32.mrb[70].mxu1 }
 0x480   : > { %5899 = vmatprep.mubr.msk.f32.mxu0 %vm7094_vm0, %v7095_v4  ;;  %v2043_v60 = vadd.f32 %v7975_v37, %v2042_v59  ;;  %v5863_v62 = vpop.f32.mrb[71].mxu1 }
 0x482   : > { %v2094_v63 = vmax.f32 %v2043_v60, 0.0 }
 0x483   : > { %5900 = vmatmul.mubr.msk.f32.vlgmr.msra.gmra.mrb[66].mxu0 %vm872_vm3, %v2091_v47  ;;  %v2047_v0 = vpop.f32.mrb[72].mxu1 }
 0x484   : > { %5902 = vmatprep.mubr.msk.f32.mxu0 %vm7094_vm0, %v7095_v4  ;;  %v2048_v20 = vadd.f32 %v7975_v37, %v2047_v0  ;;  %v5866_v1 = vpop.f32.mrb[73].mxu1 }
 0x486   : > { %v2095_v21 = vmax.f32 %v2048_v20, 0.0 }
 0x487   : > { %5903 = vmatmul.mubr.msk.f32.gmra.mrb[68].mxu0 %vm872_vm3, %v2092_v52  ;;  %v2052_v3 = vpop.f32.mrb[74].mxu1 }
 0x488   : > { %5905 = vmatprep.mubr.msk.f32.mxu0 %vm7094_vm0, %v7095_v4  ;;  %v2053_v5 = vadd.f32 %v7975_v37, %v2052_v3  ;;  %v5869_v6 = vpop.f32.mrb[75].mxu1 }
 0x48a   : > { %v2096_v7 = vmax.f32 %v2053_v5, 0.0 }
 0x48b   : > { %5906 = vmatmul.mubr.msk.f32.gmra.mrb[70].mxu0 %vm872_vm3, %v2093_v58  ;;  %v2057_v22 = vpop.f32.mrb[76].mxu1 }
 0x48c   : > { %5908 = vmatprep.mubr.msk.f32.mxu0 %vm7094_vm0, %v7095_v4  ;;  %v2058_v9 = vadd.f32 %v7975_v37, %v2057_v22  ;;  %v5872_v19 = vpop.f32.mrb[77].mxu1 }
 0x48e   : > { %v2097_v10 = vmax.f32 %v2058_v9, 0.0 }
 0x48f   : > { %5909 = vmatmul.mubr.msk.f32.gmra.mrb[72].mxu0 %vm872_vm3, %v2094_v63  ;;  %v2062_v11 = vpop.f32.mrb[78].mxu1 }
 0x490   : > { %5911 = vmatprep.mubr.msk.f32.mxu0 %vm7094_vm0, %v7095_v4  ;;  %v2063_v12 = vadd.f32 %v7975_v37, %v2062_v11  ;;  %v5875_v13 = vpop.f32.mrb[79].mxu1 }
 0x491   : > { %v655_v13 = vld [vmem:[%s9451_s14 + $0x8] sm:$0xff] }
 0x492   : > { %v2098_v14 = vmax.f32 %v2063_v12, 0.0  ;;  %v654_v12 = vld [vmem:[%s9451_s14] sm:$0xff] }
 0x493   : > { %5912 = vmatmul.mubr.msk.f32.gmra.mrb[74].mxu0 %vm872_vm3, %v2095_v21  ;;  %v2067_v15 = vpop.f32.mrb[80].mxu1 }
 0x494   : > { %5914 = vmatprep.mubr.msk.f32.mxu0 %vm7094_vm0, %v7095_v4  ;;  %v2068_v16 = vadd.f32 %v7975_v37, %v2067_v15  ;;  %v5878_v17 = vpop.f32.mrb[81].mxu1 }
 0x496   : > { %v2099_v24 = vmax.f32 %v2068_v16, 0.0 }
 0x497   : > { %5915 = vmatmul.mubr.msk.f32.gmra.mrb[76].mxu0 %vm872_vm3, %v2096_v7  ;;  %v2072_v26 = vpop.f32.mrb[82].mxu1 }
 0x498   : > { %5917 = vmatprep.mubr.msk.f32.mxu0 %vm7094_vm0, %v7095_v4  ;;  %v2073_v27 = vadd.f32 %v7975_v37, %v2072_v26  ;;  %v5881_v29 = vpop.f32.mrb[83].mxu1  ;;  %v658_v26 = vld [vmem:[%s9451_s14 + $0x20] sm:$0xff] }
 0x49a   : > { %v2100_v56 = vmax.f32 %v2073_v27, 0.0 }
 0x49b   : > { %5918 = vmatmul.mubr.msk.f32.gmra.mrb[78].mxu0 %vm872_vm3, %v2097_v10  ;;  %v2077_v30 = vpop.f32.mrb[84].mxu1 }
 0x49c   : > { %5920 = vmatprep.mubr.msk.f32.mxu0 %vm7094_vm0, %v7095_v4  ;;  %v2078_v31 = vadd.f32 %v7975_v37, %v2077_v30  ;;  %v5884_v34 = vpop.f32.mrb[85].mxu1 }
 0x49e   : > { %v2101_v36 = vmax.f32 %v2078_v31, 0.0 }
 0x49f   : > { %5921 = vmatmul.mubr.msk.f32.gmra.mrb[80].mxu0 %vm872_vm3, %v2098_v14  ;;  %v2082_v38 = vpop.f32.mrb[86].mxu1  ;;  %v8111_v14 = vpack.c.bf16 %v655_v13, %v654_v12 }
 0x4a0   : > { %5923 = vmatprep.mubr.msk.f32.mxu0 %vm7094_vm0, %v7095_v4  ;;  %v2083_v25 = vadd.f32 %v7975_v37, %v2082_v38  ;;  %v5887_v32 = vpop.f32.mrb[87].mxu1  ;;  %v661_v38 = vld [vmem:[%s9451_s14 + $0x38] sm:$0xff] }
 0x4a1   : > { %6707 = vmatpush3.bf16.msra.mxu0 %v8111_v14 }
 0x4a2   : > { %v2102_v42 = vmax.f32 %v2083_v25, 0.0  ;;  %6708 = vmatprep.subr.bf16.mxu0 %v7093_v2  ;;  %v662_v25 = vld [vmem:[%s9451_s14 + $0x40] sm:$0xff] }
 0x4a3   : > { %5924 = vmatmul.mubr.msk.f32.gmra.mrb[82].mxu0 %vm872_vm3, %v2099_v24  ;;  %v2087_v44 = vpop.f32.mrb[88].mxu1  ;;  %v656_v24 = vld [vmem:[%s9451_s14 + $0x10] sm:$0xff] }
 0x4a4   : > { %5926 = vmatprep.mubr.msk.f32.mxu0 %vm7094_vm0, %v7095_v4  ;;  %v2088_v46 = vadd.f32 %v7975_v37, %v2087_v44  ;;  %v5890_v47 = vpop.f32.mrb[89].mxu1  ;;  %v663_v44 = vld [vmem:[%s9451_s14 + $0x48] sm:$0xff] }
 0x4a5   : > { %v8168_v47 = vpack.c.bf16 %v663_v44, %v662_v25 }
 0x4a6   : > { %v2103_v48 = vmax.f32 %v2088_v46, 0.0 }
 0x4a7   : > { %5927 = vmatmul.mubr.msk.f32.gmra.mrb[84].mxu0 %vm872_vm3, %v2100_v56  ;;  %v659_v56 = vld [vmem:[%s9451_s14 + $0x28] sm:$0xff] }
 0x4a8   : > { %5929 = vmatprep.mubr.msk.f32.mxu0 %vm7094_vm0, %v7095_v4  ;;  %v8139_v31 = vpack.c.bf16 %v659_v56, %v658_v26 }
 0x4ab   : > { %5930 = vmatmul.mubr.msk.f32.gmra.mrb[86].mxu0 %vm872_vm3, %v2101_v36 }
 0x4ac   : > { %5932 = vmatprep.mubr.msk.f32.mxu0 %vm7094_vm0, %v7095_v4 }
 0x4af   : > { %5933 = vmatmul.mubr.msk.f32.gmra.mrb[88].mxu0 %vm872_vm3, %v2102_v42 }
 0x4b0   : > { %5935 = vmatprep.mubr.msk.f32.mxu0 %vm7094_vm0, %v7095_v4 }
 0x4b3   : > { %5936 = vmatmul.mubr.msk.f32.gmra.mrb[90].mxu0 %vm872_vm3, %v2103_v48 }
 0x4b4   : > { %6013 = vmatprep.mubr.msk.f32.mxu0 %vm7094_vm0, %v7095_v4 }
 0x4f3   : > { %v1825_v50 = vpop.f32.mrb[40].mxu0 }
 0x4f4   : > { %6975 = vrcp.f32 %v1825_v50  ;;  %v5809_v51 = vpop.f32.mrb[41].mxu0 }
 0x4f5   : > { %v665_v51 = vld [vmem:[%s9451_s14 + $0x58] sm:$0xff] }
 0x4fa   : > { %v1830_v52 = vpop.f32.mrb[42].mxu0 }
 0x4fb   : > { %6977 = vrcp.f32 %v1830_v52  ;;  %v5812_v53 = vpop.f32.mrb[43].mxu0  ;;  %v666_v52 = vld [vmem:[%s9451_s14 + $0x60] sm:$0xff] }
 0x4fe   : > { %v6976_v54 = vpop.eup %6975 }
 0x4ff   : > { %v8043_v55 = vmul.f32 %v6976_v54, %v7873_v35 }
 0x501   : > { %4614 = vrot.lane.b32.xlu0 %v8043_v55, %s7098_s30  ;;  %5943 = vmatmul.mubr.msk.f32.vlgmr.msra.gmra.mrb[90].mxu1 %vm1251_vm8, %v8043_v55 }
 0x502   : > { %v1835_v37 = vpop.f32.mrb[44].mxu0  ;;  %5945 = vmatprep.mubr.msk.f32.mxu1 %vm7094_vm0, %v7095_v4 }
 0x503   : > { %6979 = vrcp.f32 %v1835_v37  ;;  %v5815_v58 = vpop.f32.mrb[45].mxu0  ;;  %v667_v37 = vld [vmem:[%s9451_s14 + $0x68] sm:$0xff] }
 0x505   : > { %v6978_v59 = vpop.eup %6977 }
 0x506   : > { %v8052_v60 = vmul.f32 %v6978_v59, %v7880_v39  ;;  %v8197_v59 = vpack.c.bf16 %v667_v37, %v666_v52  ;;  %v2597_v52 = vld [vmem:[%s9470_s4 + $0x18] sm:$0xff] }
 0x508   : > { %4616 = vrot.lane.b32.xlu1 %v8052_v60, %s7098_s30  ;;  %5946 = vmatmul.mubr.msk.f32.gmra.mrb[92].mxu1 %vm1251_vm8, %v8052_v60 }
 0x509   : > { %5948 = vmatprep.mubr.msk.f32.mxu1 %vm7094_vm0, %v7095_v4 }
 0x50a   : > { %v1840_v35 = vpop.f32.mrb[46].mxu0 }
 0x50b   : > { %6981 = vrcp.f32 %v1840_v35  ;;  %v5818_v62 = vpop.f32.mrb[47].mxu0 }
 0x50d   : > { %v6980_v63 = vpop.eup %6979 }
 0x50e   : > { %v8061_v0 = vmul.f32 %v6980_v63, %v7887_v43  ;;  %v669_v63 = vld [vmem:[%s9451_s14 + $0x78] sm:$0xff] }
 0x510   : > { %4618 = vrot.lane.b32.xlu1 %v8061_v0, %s7098_s30  ;;  %5949 = vmatmul.mubr.msk.f32.gmra.mrb[94].mxu1 %vm1251_vm8, %v8061_v0 }
 0x511   : > { %5951 = vmatprep.mubr.msk.f32.mxu1 %vm7094_vm0, %v7095_v4 }
 0x512   : > { %v1845_v39 = vpop.f32.mrb[48].mxu0 }
 0x513   : > { %6983 = vrcp.f32 %v1845_v39  ;;  %v5821_v20 = vpop.f32.mrb[49].mxu0 }
 0x515   : > { %v6982_v1 = vpop.eup %6981 }
 0x516   : > { %v8070_v21 = vmul.f32 %v6982_v1, %v7894_v57 }
 0x518   : > { %4620 = vrot.lane.b32.xlu1 %v8070_v21, %s7098_s30  ;;  %5952 = vmatmul.mubr.msk.f32.gmra.mrb[96].mxu1 %vm1251_vm8, %v8070_v21 }
 0x519   : > { %5954 = vmatprep.mubr.msk.f32.mxu1 %vm7094_vm0, %v7095_v4 }
 0x51a   : > { %v1850_v43 = vpop.f32.mrb[50].mxu0 }
 0x51b   : > { %6985 = vrcp.f32 %v1850_v43  ;;  %v5824_v3 = vpop.f32.mrb[51].mxu0 }
 0x51d   : > { %v6984_v5 = vpop.eup %6983 }
 0x51e   : > { %v8079_v6 = vmul.f32 %v6984_v5, %v7901_v8 }
 0x520   : > { %4622 = vrot.lane.b32.xlu0 %v8079_v6, %s7098_s30  ;;  %5955 = vmatmul.mubr.msk.f32.gmra.mrb[98].mxu1 %vm1251_vm8, %v8079_v6 }
 0x521   : > { %5957 = vmatprep.mubr.msk.f32.mxu1 %vm7094_vm0, %v7095_v4 }
 0x522   : > { %v1855_v57 = vpop.f32.mrb[52].mxu0 }
 0x523   : > { %6987 = vrcp.f32 %v1855_v57  ;;  %v5827_v7 = vpop.f32.mrb[53].mxu0 }
 0x525   : > { %v6986_v22 = vpop.eup %6985 }
 0x526   : > { %v8088_v9 = vmul.f32 %v6986_v22, %v7908_v28 }
 0x528   : > { %4624 = vrot.lane.b32.xlu1 %v8088_v9, %s7098_s30  ;;  %5958 = vmatmul.mubr.msk.f32.gmra.mrb[100].mxu1 %vm1251_vm8, %v8088_v9 }
 0x529   : > { %5960 = vmatprep.mubr.msk.f32.mxu1 %vm7094_vm0, %v7095_v4 }
 0x52a   : > { %v1860_v8 = vpop.f32.mrb[54].mxu0 }
 0x52b   : > { %6989 = vrcp.f32 %v1860_v8  ;;  %v5830_v19 = vpop.f32.mrb[55].mxu0 }
 0x52d   : > { %v6988_v10 = vpop.eup %6987 }
 0x52e   : > { %v8097_v11 = vmul.f32 %v6988_v10, %v7915_v45 }
 0x530   : > { %4626 = vrot.lane.b32.xlu0 %v8097_v11, %s7098_s30  ;;  %5961 = vmatmul.mubr.msk.f32.gmra.mrb[102].mxu1 %vm1251_vm8, %v8097_v11 }
 0x531   : > { %5963 = vmatprep.mubr.msk.f32.mxu1 %vm7094_vm0, %v7095_v4 }
 0x532   : > { %v1865_v28 = vpop.f32.mrb[56].mxu0 }
 0x533   : > { %6991 = vrcp.f32 %v1865_v28  ;;  %v5833_v45 = vpop.f32.mrb[57].mxu0 }
 0x535   : > { %v6990_v15 = vpop.eup %6989 }
 0x536   : > { %v8115_v16 = vmul.f32 %v6990_v15, %v7922_v61  ;;  %v657_v61 = vld [vmem:[%s9451_s14 + $0x18] sm:$0xff] }
 0x537   : > { %v8133_v29 = vpack.c.bf16 %v657_v61, %v656_v24 }
 0x538   : > { %4628 = vrot.lane.b32.xlu1 %v8115_v16, %s7098_s30  ;;  %5964 = vmatmul.mubr.msk.f32.gmra.mrb[104].mxu1 %vm1251_vm8, %v8115_v16 }
 0x539   : > { %5966 = vmatprep.mubr.msk.f32.mxu1 %vm7094_vm0, %v7095_v4  ;;  %6710 = vmatpush3.bf16.msra.mxu0 %v8133_v29 }
 0x53a   : > { %v1870_v17 = vpop.f32.mrb[58].mxu0  ;;  %6711 = vmatprep.subr.bf16.mxu0 %v7093_v2 }
 0x53b   : > { %6993 = vrcp.f32 %v1870_v17  ;;  %v5836_v27 = vpop.f32.mrb[59].mxu0 }
 0x53d   : > { %v6992_v30 = vpop.eup %6991  ;;  %6713 = vmatpush3.bf16.msra.mxu0 %v8139_v31 }
 0x53e   : > { %v8142_v34 = vmul.f32 %v6992_v30, %v7929_v18  ;;  %6714 = vmatprep.subr.bf16.mxu0 %v7093_v2  ;;  %v660_v18 = vld [vmem:[%s9451_s14 + $0x30] sm:$0xff] }
 0x53f   : > { %v8162_v42 = vpack.c.bf16 %v661_v38, %v660_v18 }
 0x540   : > { %4630 = vrot.lane.b32.xlu0 %v8142_v34, %s7098_s30  ;;  %5967 = vmatmul.mubr.msk.f32.gmra.mrb[106].mxu1 %vm1251_vm8, %v8142_v34 }
 0x541   : > { %5969 = vmatprep.mubr.msk.f32.mxu1 %vm7094_vm0, %v7095_v4  ;;  %6716 = vmatpush3.bf16.msra.mxu0 %v8162_v42 }
 0x542   : > { %v1875_v36 = vpop.f32.mrb[60].mxu0  ;;  %6717 = vmatprep.subr.bf16.mxu0 %v7093_v2 }
 0x543   : > { %6995 = vrcp.f32 %v1875_v36  ;;  %v5839_v32 = vpop.f32.mrb[61].mxu0 }
 0x545   : > { %v6994_v46 = vpop.eup %6993  ;;  %6719 = vmatpush3.bf16.msra.mxu0 %v8168_v47 }
 0x546   : > { %v8171_v48 = vmul.f32 %v6994_v46, %v7936_v33  ;;  %6720 = vmatprep.subr.bf16.mxu0 %v7093_v2  ;;  %v664_v33 = vld [vmem:[%s9451_s14 + $0x50] sm:$0xff]  ;;  %v2594_v46 = vld [vmem:[%s9470_s4] sm:$0xff] }
 0x547   : > { %v8191_v54 = vpack.c.bf16 %v665_v51, %v664_v33  ;;  %v2596_v33 = vld [vmem:[%s9470_s4 + $0x10] sm:$0xff] }
 0x548   : > { %4632 = vrot.lane.b32.xlu1 %v8171_v48, %s7098_s30  ;;  %5970 = vmatmul.mubr.msk.f32.gmra.mrb[108].mxu1 %vm1251_vm8, %v8171_v48 }
 0x549   : > { %5972 = vmatprep.mubr.msk.f32.mxu1 %vm7094_vm0, %v7095_v4  ;;  %6722 = vmatpush3.bf16.msra.mxu0 %v8191_v54 }
 0x54a   : > { %v1880_v50 = vpop.f32.mrb[62].mxu0  ;;  %6723 = vmatprep.subr.bf16.mxu0 %v7093_v2 }
 0x54b   : > { %6997 = vrcp.f32 %v1880_v50  ;;  %v5842_v53 = vpop.f32.mrb[63].mxu0  ;;  %v2595_v50 = vld [vmem:[%s9470_s4 + $0x8] sm:$0xff] }
 0x54c   : > { %v6730_v51 = vpack.c.bf16 %v2595_v50, %v2594_v46  ;;  %v6733_v53 = vpack.c.bf16 %v2597_v52, %v2596_v33 }
 0x54d   : > { %v6996_v58 = vpop.eup %6995  ;;  %6725 = vmatpush3.bf16.msra.mxu0 %v8197_v59 }
 0x54e   : > { %v8200_v35 = vmul.f32 %v6996_v58, %v7943_v40  ;;  %6726 = vmatprep.subr.bf16.mxu0 %v7093_v2  ;;  %v668_v40 = vld [vmem:[%s9451_s14 + $0x70] sm:$0xff]  ;;  %6731 = vmatpush3.bf16.msra.mxu1 %v6730_v51 }
 0x54f   : > { %v8217_v20 = vpack.c.bf16 %v669_v63, %v668_v40  ;;  %6732 = vmatprep.subr.bf16.mxu1 %v7093_v2 }
 0x550   : > { %4634 = vrot.lane.b32.xlu0 %v8200_v35, %s7098_s30  ;;  %5973 = vmatmul.mubr.msk.f32.gmra.mrb[110].mxu1 %vm1251_vm8, %v8200_v35 }
 0x551   : > { %5975 = vmatprep.mubr.msk.f32.mxu1 %vm7094_vm0, %v7095_v4  ;;  %6728 = vmatpush3.bf16.msra.mxu0 %v8217_v20 }
 0x552   : > { %v1885_v62 = vpop.f32.mrb[64].mxu0  ;;  %6735 = vmatprep.subr.bf16.mxu0 %v7093_v2  ;;  %6734 = vmatpush3.bf16.msra.mxu1 %v6733_v53 }
 0x553   : > { %6999 = vrcp.f32 %v1885_v62  ;;  %v5845_v39 = vpop.f32.mrb[65].mxu0  ;;  %6741 = vmatprep.subr.bf16.mxu1 %v7093_v2 }
 0x555   : > { %v6998_v1 = vpop.eup %6997 }
 0x556   : > { %v8221_v43 = vmul.f32 %v6998_v1, %v7950_v49  ;;  %v8223_v3 = vpop.f32.mrb[66].mxu0 }
 0x557   : > { %v5901_v5 = vpop.f32.mrb[67].mxu0 }
 0x558   : > { %4636 = vrot.lane.b32.xlu1 %v8221_v43, %s7098_s30  ;;  %5976 = vmatmul.mubr.msk.f32.gmra.mrb[112].mxu1 %vm1251_vm8, %v8221_v43 }
 0x559   : > { %5978 = vmatprep.mubr.msk.f32.mxu1 %vm7094_vm0, %v7095_v4 }
 0x55a   : > { %v8232_v57 = vpop.f32.mrb[68].mxu0 }
 0x55b   : > { %v5904_v22 = vpop.f32.mrb[69].mxu0 }
 0x55d   : > { %v7000_v7 = vpop.eup %6999 }
 0x55e   : > { %v8235_v49 = vmul.f32 %v7000_v7, %v7980_v41  ;;  %v8243_v8 = vpop.f32.mrb[70].mxu0 }
 0x55f   : > { %v5907_v19 = vpop.f32.mrb[71].mxu0 }
 0x560   : > { %4638 = vrot.lane.b32.xlu0 %v8235_v49, %s7098_s30  ;;  %5979 = vmatmul.mubr.msk.f32.gmra.mrb[114].mxu1 %vm1251_vm8, %v8235_v49 }
 0x561   : > { %6060 = vmatprep.mubr.msk.f32.mxu1 %vm7094_vm0, %v7095_v4 }
 0x562   : > { %v8245_v10 = vpop.f32.mrb[72].mxu0 }
 0x563   : > { %v5910_v28 = vpop.f32.mrb[73].mxu0 }
 0x566   : > { %v8247_v12 = vpop.f32.mrb[74].mxu0 }
 0x567   : > { %v5913_v13 = vpop.f32.mrb[75].mxu0 }
 0x56a   : > { %v8249_v41 = vpop.f32.mrb[76].mxu0 }
 0x56b   : > { %v5916_v45 = vpop.f32.mrb[77].mxu0 }
 0x56e   : > { %v8251_v15 = vpop.f32.mrb[78].mxu0 }
 0x56f   : > { %v5919_v17 = vpop.f32.mrb[79].mxu0 }
 0x572   : > { %v8253_v24 = vpop.f32.mrb[80].mxu0 }
 0x573   : > { %v5922_v61 = vpop.f32.mrb[81].mxu0 }
 0x576   : > { %v8255_v26 = vpop.f32.mrb[82].mxu0 }
 0x577   : > { %v5925_v27 = vpop.f32.mrb[83].mxu0 }
 0x57a   : > { %v8257_v56 = vpop.f32.mrb[84].mxu0 }
 0x57b   : > { %v5928_v30 = vpop.f32.mrb[85].mxu0 }
 0x57e   : > { %v8259_v36 = vpop.f32.mrb[86].mxu0 }
 0x57f   : > { %v5931_v18 = vpop.f32.mrb[87].mxu0 }
 0x582   : > { %v8261_v38 = vpop.f32.mrb[88].mxu0 }
 0x583   : > { %v5934_v25 = vpop.f32.mrb[89].mxu0 }
 0x586   : > { %v8263_v32 = vpop.f32.mrb[90].mxu0 }
 0x587   : > { %v5937_v44 = vpop.f32.mrb[91].mxu0 }
 0x5d4   : > { %v2387_v37 = vpop.f32.mrb[90].mxu1 }
 0x5d5   : > { %v2451_v58 = vmul.f32 %v2387_v37, %v8223_v3  ;;  %v5944_v62 = vpop.f32.mrb[91].mxu1 }
 0x5d7   : > { %6014 = vmatmul.mubr.f32.vlgmr.msra.gmra.mrb[92].mxu0 %v2451_v58 }
 0x5d8   : > { %6016 = vmatprep.mubr.msk.f32.mxu0 %vm7094_vm0, %v7095_v4 }
 0x5db   : > { %v2392_v40 = vpop.f32.mrb[92].mxu1 }
 0x5dc   : > { %v2452_v63 = vmul.f32 %v2392_v40, %v8232_v57  ;;  %v5947_v39 = vpop.f32.mrb[93].mxu1 }
 0x5de   : > { %6017 = vmatmul.mubr.f32.gmra.mrb[94].mxu0 %v2452_v63 }
 0x5df   : > { %6019 = vmatprep.mubr.msk.f32.mxu0 %vm7094_vm0, %v7095_v4 }
 0x5e3   : > { %v2397_v1 = vpop.f32.mrb[94].mxu1 }
 0x5e4   : > { %v2453_v5 = vmul.f32 %v2397_v1, %v8243_v8  ;;  %v5950_v7 = vpop.f32.mrb[95].mxu1 }
 0x5e6   : > { %6020 = vmatmul.mubr.f32.gmra.mrb[96].mxu0 %v2453_v5 }
 0x5e7   : > { %6022 = vmatprep.mubr.msk.f32.mxu0 %vm7094_vm0, %v7095_v4 }
 0x5eb   : > { %v2402_v22 = vpop.f32.mrb[96].mxu1 }
 0x5ec   : > { %v2454_v19 = vmul.f32 %v2402_v22, %v8245_v10  ;;  %v5953_v28 = vpop.f32.mrb[97].mxu1 }
 0x5ee   : > { %6023 = vmatmul.mubr.f32.gmra.mrb[98].mxu0 %v2454_v19 }
 0x5ef   : > { %6025 = vmatprep.mubr.msk.f32.mxu0 %vm7094_vm0, %v7095_v4 }
 0x5f3   : > { %v2407_v13 = vpop.f32.mrb[98].mxu1 }
 0x5f4   : > { %v2455_v45 = vmul.f32 %v2407_v13, %v8247_v12  ;;  %v5956_v17 = vpop.f32.mrb[99].mxu1  ;;  %v5106_v13 = vld [vmem:[%s9449_s12 + $0x10] sm:$0xff] }
 0x5f6   : > { %6026 = vmatmul.mubr.f32.gmra.mrb[100].mxu0 %v2455_v45  ;;  %v5107_v45 = vld [vmem:[%s9449_s12 + $0x18] sm:$0x3] }
 0x5f7   : > { %6028 = vmatprep.mubr.msk.f32.mxu0 %vm7094_vm0, %v7095_v4  ;;  %v6742_v17 = vpack.c.bf16 %v5107_v45, %v5106_v13  ;;  %v5091_v45 = vld [vmem:[%s9450_s13 + $0x30] sm:$0xff] }
 0x5fb   : > { %v2412_v61 = vpop.f32.mrb[100].mxu1 }
 0x5fc   : > { %v2456_v27 = vmul.f32 %v2412_v61, %v8249_v41  ;;  %v5959_v30 = vpop.f32.mrb[101].mxu1 }
 0x5fe   : > { %6029 = vmatmul.mubr.f32.gmra.mrb[102].mxu0 %v2456_v27 }
 0x5ff   : > { %6031 = vmatprep.mubr.msk.f32.mxu0 %vm7094_vm0, %v7095_v4 }
 0x603   : > { %v2417_v18 = vpop.f32.mrb[102].mxu1 }
 0x604   : > { %v2457_v25 = vmul.f32 %v2417_v18, %v8251_v15  ;;  %v5962_v44 = vpop.f32.mrb[103].mxu1 }
 0x606   : > { %6032 = vmatmul.mubr.f32.gmra.mrb[104].mxu0 %v2457_v25 }
 0x607   : > { %6034 = vmatprep.mubr.msk.f32.mxu0 %vm7094_vm0, %v7095_v4 }
 0x60b   : > { %v2422_v46 = vpop.f32.mrb[104].mxu1 }
 0x60c   : > { %v2458_v50 = vmul.f32 %v2422_v46, %v8253_v24  ;;  %v5965_v33 = vpop.f32.mrb[105].mxu1 }
 0x60e   : > { %6035 = vmatmul.mubr.f32.gmra.mrb[106].mxu0 %v2458_v50 }
 0x60f   : > { %6037 = vmatprep.mubr.msk.f32.mxu0 %vm7094_vm0, %v7095_v4 }
 0x613   : > { %v2427_v51 = vpop.f32.mrb[106].mxu1 }
 0x614   : > { %v2459_v52 = vmul.f32 %v2427_v51, %v8255_v26  ;;  %v5968_v53 = vpop.f32.mrb[107].mxu1 }
 0x616   : > { %6038 = vmatmul.mubr.f32.gmra.mrb[108].mxu0 %v2459_v52 }
 0x617   : > { %6040 = vmatprep.mubr.msk.f32.mxu0 %vm7094_vm0, %v7095_v4 }
 0x61b   : > { %v2432_v37 = vpop.f32.mrb[108].mxu1 }
 0x61c   : > { %v2460_v58 = vmul.f32 %v2432_v37, %v8257_v56  ;;  %v5971_v62 = vpop.f32.mrb[109].mxu1 }
 0x61e   : > { %6041 = vmatmul.mubr.f32.gmra.mrb[110].mxu0 %v2460_v58 }
 0x61f   : > { %6043 = vmatprep.mubr.msk.f32.mxu0 %vm7094_vm0, %v7095_v4 }
 0x623   : > { %v2437_v40 = vpop.f32.mrb[110].mxu1 }
 0x624   : > { %v2461_v63 = vmul.f32 %v2437_v40, %v8259_v36  ;;  %v5974_v39 = vpop.f32.mrb[111].mxu1 }
 0x626   : > { %6044 = vmatmul.mubr.f32.gmra.mrb[112].mxu0 %v2461_v63 }
 0x627   : > { %6046 = vmatprep.mubr.msk.f32.mxu0 %vm7094_vm0, %v7095_v4 }
 0x62b   : > { %v2442_v1 = vpop.f32.mrb[112].mxu1 }
 0x62c   : > { %v2462_v5 = vmul.f32 %v2442_v1, %v8261_v38  ;;  %v5977_v7 = vpop.f32.mrb[113].mxu1 }
 0x62e   : > { %6047 = vmatmul.mubr.f32.gmra.mrb[114].mxu0 %v2462_v5 }
 0x62f   : > { %6049 = vmatprep.mubr.msk.f32.mxu0 %vm7094_vm0, %v7095_v4 }
 0x633   : > { %v2447_v22 = vpop.f32.mrb[114].mxu1 }
 0x634   : > { %v2463_v19 = vmul.f32 %v2447_v22, %v8263_v32  ;;  %v5980_v28 = vpop.f32.mrb[115].mxu1 }
 0x635   : > { %v5090_v28 = vld [vmem:[%s9450_s13 + $0x28] sm:$0xff] }
 0x636   : > { %6050 = vmatmul.mubr.f32.gmra.mrb[116].mxu0 %v2463_v19  ;;  %v5089_v19 = vld [vmem:[%s9450_s13 + $0x20] sm:$0xff] }
 0x637   : > { %6107 = vmatprep.mubr.msk.f32.mxu0 %vm7094_vm0, %v7095_v4  ;;  %v6736_v13 = vpack.c.bf16 %v5090_v28, %v5089_v19 }
 0x639   : > { %6737 = vmatpush3.bf16.msra.mxu0 %v6736_v13 }
 0x63a   : > { %6738 = vmatprep.subr.bf16.mxu0 %v7093_v2 }
 0x6aa   : > { %v8324_v61 = vpop.f32.mrb[92].mxu0 }
 0x6ab   : > { %v6015_v27 = vpop.f32.mrb[93].mxu0  ;;  %6061 = vmatmul.mubr.msk.f32.vlgmr.msra.gmra.mrb[116].mxu1 %vm872_vm3, %v8324_v61 }
 0x6ac   : > { %6063 = vmatprep.mubr.msk.f32.mxu1 %vm7094_vm0, %v7095_v4  ;;  %6744 = vmatpush3.bf16.msk.msra.mxu1 %vm7792_vm2, %v6742_v17  ;;  %v5092_v17 = vld [vmem:[%s9450_s13 + $0x38] sm:$0xff] }
 0x6ad   : > { %6769 = vmatprep.subr.bf16.mxu1 %v7093_v2 }
 0x6b1   : > { %v8333_v30 = vpop.f32.mrb[94].mxu0 }
 0x6b2   : > { %v6018_v18 = vpop.f32.mrb[95].mxu0  ;;  %6064 = vmatmul.mubr.msk.f32.gmra.mrb[118].mxu1 %vm872_vm3, %v8333_v30 }
 0x6b3   : > { %6066 = vmatprep.mubr.msk.f32.mxu1 %vm7094_vm0, %v7095_v4  ;;  %v6739_v18 = vpack.c.bf16 %v5092_v17, %v5091_v45 }
 0x6b5   : > { %6740 = vmatpush3.bf16.msra.mxu0 %v6739_v18 }
 0x6b6   : > { %6745 = vmatprep.subr.bf16.mxu0 %v7093_v2 }
 0x6b9   : > { %v8339_v25 = vpop.f32.mrb[96].mxu0 }
 0x6ba   : > { %v6021_v44 = vpop.f32.mrb[97].mxu0  ;;  %6067 = vmatmul.mubr.msk.f32.gmra.mrb[120].mxu1 %vm872_vm3, %v8339_v25 }
 0x6bb   : > { %6069 = vmatprep.mubr.msk.f32.mxu1 %vm7094_vm0, %v7095_v4 }
 0x6c1   : > { %v8345_v46 = vpop.f32.mrb[98].mxu0 }
 0x6c2   : > { %v6024_v50 = vpop.f32.mrb[99].mxu0  ;;  %6070 = vmatmul.mubr.msk.f32.gmra.mrb[122].mxu1 %vm872_vm3, %v8345_v46 }
 0x6c3   : > { %6072 = vmatprep.mubr.msk.f32.mxu1 %vm7094_vm0, %v7095_v4 }
 0x6c9   : > { %v8351_v33 = vpop.f32.mrb[100].mxu0 }
 0x6ca   : > { %v6027_v51 = vpop.f32.mrb[101].mxu0  ;;  %6073 = vmatmul.mubr.msk.f32.gmra.mrb[124].mxu1 %vm872_vm3, %v8351_v33 }
 0x6cb   : > { %6075 = vmatprep.mubr.msk.f32.mxu1 %vm7094_vm0, %v7095_v4 }
 0x6d1   : > { %v8357_v52 = vpop.f32.mrb[102].mxu0 }
 0x6d2   : > { %v6030_v53 = vpop.f32.mrb[103].mxu0  ;;  %6076 = vmatmul.mubr.msk.f32.gmra.mrb[126].mxu1 %vm872_vm3, %v8357_v52 }
 0x6d3   : > { %6078 = vmatprep.mubr.msk.f32.mxu1 %vm7094_vm0, %v7095_v4  ;;  %v8474_v53 = vld [vmem:[%s9442_s5] ss:$0 sm:$0xff] }
 0x6d9   : > { %v8363_v37 = vpop.f32.mrb[104].mxu0 }
 0x6da   : > { %v6033_v58 = vpop.f32.mrb[105].mxu0  ;;  %6079 = vmatmul.mubr.msk.f32.gmra.mrb[128].mxu1 %vm872_vm3, %v8363_v37 }
 0x6db   : > { %6081 = vmatprep.mubr.msk.f32.mxu1 %vm7094_vm0, %v7095_v4 }
 0x6e1   : > { %v8369_v62 = vpop.f32.mrb[106].mxu0 }
 0x6e2   : > { %v6036_v40 = vpop.f32.mrb[107].mxu0  ;;  %6082 = vmatmul.mubr.msk.f32.gmra.mrb[130].mxu1 %vm872_vm3, %v8369_v62 }
 0x6e3   : > { %6084 = vmatprep.mubr.msk.f32.mxu1 %vm7094_vm0, %v7095_v4 }
 0x6e9   : > { %v8375_v63 = vpop.f32.mrb[108].mxu0 }
 0x6ea   : > { %v6039_v39 = vpop.f32.mrb[109].mxu0  ;;  %6085 = vmatmul.mubr.msk.f32.gmra.mrb[132].mxu1 %vm872_vm3, %v8375_v63 }
 0x6eb   : > { %6087 = vmatprep.mubr.msk.f32.mxu1 %vm7094_vm0, %v7095_v4 }
 0x6f1   : > { %v8381_v1 = vpop.f32.mrb[110].mxu0 }
 0x6f2   : > { %v6042_v5 = vpop.f32.mrb[111].mxu0  ;;  %6088 = vmatmul.mubr.msk.f32.gmra.mrb[134].mxu1 %vm872_vm3, %v8381_v1 }
 0x6f3   : > { %6090 = vmatprep.mubr.msk.f32.mxu1 %vm7094_vm0, %v7095_v4 }
 0x6f9   : > { %v8387_v7 = vpop.f32.mrb[112].mxu0 }
 0x6fa   : > { %v6045_v22 = vpop.f32.mrb[113].mxu0  ;;  %6091 = vmatmul.mubr.msk.f32.gmra.mrb[136].mxu1 %vm872_vm3, %v8387_v7 }
 0x6fb   : > { %6093 = vmatprep.mubr.msk.f32.mxu1 %vm7094_vm0, %v7095_v4 }
 0x701   : > { %v8406_v27 = vpop.f32.mrb[114].mxu0 }
 0x702   : > { %v6048_v44 = vpop.f32.mrb[115].mxu0  ;;  %6094 = vmatmul.mubr.msk.f32.gmra.mrb[138].mxu1 %vm872_vm3, %v8406_v27 }
 0x703   : > { %6096 = vmatprep.mubr.msk.f32.mxu1 %vm7094_vm0, %v7095_v4 }
 0x709   : > { %v8413_v50 = vpop.f32.mrb[116].mxu0 }
 0x70a   : > { %v6051_v51 = vpop.f32.mrb[117].mxu0  ;;  %6097 = vmatmul.mubr.msk.f32.gmra.mrb[140].mxu1 %vm872_vm3, %v8413_v50 }
 0x70b   : > { %6150 = vmatprep.mubr.msk.f32.mxu1 %vm7094_vm0, %v7095_v4 }
 0x70e   : > { %6151 = vmatmul.mubr.msk.f32.vlgmr.msra.gmra.mrb[142].mxu1 %vm1251_vm8, %v8043_v55 }
 0x70f   : > { %6153 = vmatprep.mubr.msk.f32.mxu1 %vm7094_vm0, %v7095_v4 }
 0x712   : > { %6154 = vmatmul.mubr.msk.f32.gmra.mrb[144].mxu1 %vm1251_vm8, %v8052_v60 }
 0x713   : > { %6156 = vmatprep.mubr.msk.f32.mxu1 %vm7094_vm0, %v7095_v4 }
 0x716   : > { %6157 = vmatmul.mubr.msk.f32.gmra.mrb[146].mxu1 %vm1251_vm8, %v8061_v0 }
 0x717   : > { %6159 = vmatprep.mubr.msk.f32.mxu1 %vm7094_vm0, %v7095_v4 }
 0x71a   : > { %6160 = vmatmul.mubr.msk.f32.gmra.mrb[148].mxu1 %vm1251_vm8, %v8070_v21 }
 0x71b   : > { %6162 = vmatprep.mubr.msk.f32.mxu1 %vm7094_vm0, %v7095_v4 }
 0x71e   : > { %6163 = vmatmul.mubr.msk.f32.gmra.mrb[150].mxu1 %vm1251_vm8, %v8079_v6 }
 0x71f   : > { %6165 = vmatprep.mubr.msk.f32.mxu1 %vm7094_vm0, %v7095_v4 }
 0x722   : > { %6166 = vmatmul.mubr.msk.f32.gmra.mrb[152].mxu1 %vm1251_vm8, %v8088_v9 }
 0x723   : > { %6168 = vmatprep.mubr.msk.f32.mxu1 %vm7094_vm0, %v7095_v4 }
 0x726   : > { %6169 = vmatmul.mubr.msk.f32.gmra.mrb[154].mxu1 %vm1251_vm8, %v8097_v11 }
 0x727   : > { %6171 = vmatprep.mubr.msk.f32.mxu1 %vm7094_vm0, %v7095_v4 }
 0x72a   : > { %6172 = vmatmul.mubr.msk.f32.gmra.mrb[156].mxu1 %vm1251_vm8, %v8115_v16 }
 0x72b   : > { %6174 = vmatprep.mubr.msk.f32.mxu1 %vm7094_vm0, %v7095_v4 }
 0x72e   : > { %6175 = vmatmul.mubr.msk.f32.gmra.mrb[158].mxu1 %vm1251_vm8, %v8142_v34 }
 0x72f   : > { %6177 = vmatprep.mubr.msk.f32.mxu1 %vm7094_vm0, %v7095_v4 }
 0x732   : > { %6178 = vmatmul.mubr.msk.f32.gmra.mrb[160].mxu1 %vm1251_vm8, %v8171_v48 }
 0x733   : > { %6180 = vmatprep.mubr.msk.f32.mxu1 %vm7094_vm0, %v7095_v4 }
 0x736   : > { %6181 = vmatmul.mubr.msk.f32.gmra.mrb[162].mxu1 %vm1251_vm8, %v8200_v35 }
 0x737   : > { %6183 = vmatprep.mubr.msk.f32.mxu1 %vm7094_vm0, %v7095_v4 }
 0x73a   : > { %6184 = vmatmul.mubr.msk.f32.gmra.mrb[164].mxu1 %vm1251_vm8, %v8221_v43 }
 0x73b   : > { %6186 = vmatprep.mubr.msk.f32.mxu1 %vm7094_vm0, %v7095_v4 }
 0x73e   : > { %6187 = vmatmul.mubr.msk.f32.gmra.mrb[166].mxu1 %vm1251_vm8, %v8235_v49 }
 0x73f   : > { %6268 = vmatprep.mubr.msk.f32.mxu1 %vm7094_vm0, %v7095_v4 }
 0x77e   : > { %v2710_v58 = vpop.f32.mrb[116].mxu1 }
 0x77f   : > { %v2711_v40 = vadd.f32 %v8474_v53, %v2710_v58  ;;  %v6062_v39 = vpop.f32.mrb[117].mxu1 }
 0x781   : > { %v2774_v5 = vmax.f32 %v2711_v40, 0.0 }
 0x783   : > { %v2787_v22 = vadd.f32 %v2774_v5, %v8324_v61 }
 0x785   : > { %v2715_v19 = vpop.f32.mrb[118].mxu1  ;;  %6108 = vmatmul.mubr.msk.f32.vlgmr.msra.gmra.mrb[118].mxu0 %vm872_vm3, %v2787_v22 }
 0x786   : > { %v2716_v28 = vadd.f32 %v8474_v53, %v2715_v19  ;;  %v6065_v13 = vpop.f32.mrb[119].mxu1  ;;  %6110 = vmatprep.mubr.msk.f32.mxu0 %vm7094_vm0, %v7095_v4  ;;  %6747 = vmatpush3.bf16.msra.mxu0 %v8111_v14 }
 0x787   : > { %6748 = vmatprep.subr.bf16.mxu0 %v7093_v2 }
 0x788   : > { %v2775_v45 = vmax.f32 %v2716_v28, 0.0 }
 0x78a   : > { %v2788_v17 = vadd.f32 %v2775_v45, %v8333_v30  ;;  %6750 = vmatpush3.bf16.msra.mxu0 %v8133_v29 }
 0x78b   : > { %6751 = vmatprep.subr.bf16.mxu0 %v7093_v2 }
 0x78c   : > { %6111 = vmatmul.mubr.msk.f32.gmra.mrb[120].mxu0 %vm872_vm3, %v2788_v17 }
 0x78d   : > { %v2720_v61 = vpop.f32.mrb[120].mxu1  ;;  %6113 = vmatprep.mubr.msk.f32.mxu0 %vm7094_vm0, %v7095_v4 }
 0x78e   : > { %v2721_v18 = vadd.f32 %v8474_v53, %v2720_v61  ;;  %v6068_v44 = vpop.f32.mrb[121].mxu1  ;;  %6753 = vmatpush3.bf16.msra.mxu0 %v8139_v31 }
 0x78f   : > { %6754 = vmatprep.subr.bf16.mxu0 %v7093_v2 }
 0x790   : > { %v2776_v51 = vmax.f32 %v2721_v18, 0.0 }
 0x792   : > { %v2789_v30 = vadd.f32 %v2776_v51, %v8339_v25  ;;  %6756 = vmatpush3.bf16.msra.mxu0 %v8162_v42 }
 0x793   : > { %6757 = vmatprep.subr.bf16.mxu0 %v7093_v2 }
 0x794   : > { %6114 = vmatmul.mubr.msk.f32.gmra.mrb[122].mxu0 %vm872_vm3, %v2789_v30 }
 0x795   : > { %v2725_v58 = vpop.f32.mrb[122].mxu1  ;;  %6116 = vmatprep.mubr.msk.f32.mxu0 %vm7094_vm0, %v7095_v4 }
 0x796   : > { %v2726_v40 = vadd.f32 %v8474_v53, %v2725_v58  ;;  %v6071_v39 = vpop.f32.mrb[123].mxu1  ;;  %6759 = vmatpush3.bf16.msra.mxu0 %v8168_v47 }
 0x797   : > { %6760 = vmatprep.subr.bf16.mxu0 %v7093_v2 }
 0x798   : > { %v2777_v5 = vmax.f32 %v2726_v40, 0.0 }
 0x79a   : > { %v2790_v25 = vadd.f32 %v2777_v5, %v8345_v46  ;;  %6762 = vmatpush3.bf16.msra.mxu0 %v8191_v54 }
 0x79b   : > { %6763 = vmatprep.subr.bf16.mxu0 %v7093_v2 }
 0x79c   : > { %6117 = vmatmul.mubr.msk.f32.gmra.mrb[124].mxu0 %vm872_vm3, %v2790_v25 }
 0x79d   : > { %v2730_v22 = vpop.f32.mrb[124].mxu1  ;;  %6119 = vmatprep.mubr.msk.f32.mxu0 %vm7094_vm0, %v7095_v4 }
 0x79e   : > { %v2731_v19 = vadd.f32 %v8474_v53, %v2730_v22  ;;  %v6074_v28 = vpop.f32.mrb[125].mxu1  ;;  %6765 = vmatpush3.bf16.msra.mxu0 %v8197_v59 }
 0x79f   : > { %6766 = vmatprep.subr.bf16.mxu0 %v7093_v2 }
 0x7a0   : > { %v2778_v13 = vmax.f32 %v2731_v19, 0.0 }
 0x7a2   : > { %v2791_v46 = vadd.f32 %v2778_v13, %v8351_v33  ;;  %6768 = vmatpush3.bf16.msra.mxu0 %v8217_v20 }
 0x7a3   : > { %6775 = vmatprep.subr.bf16.mxu0 %v7093_v2 }
 0x7a4   : > { %6120 = vmatmul.mubr.msk.f32.gmra.mrb[126].mxu0 %vm872_vm3, %v2791_v46 }
 0x7a5   : > { %v2735_v45 = vpop.f32.mrb[126].mxu1  ;;  %6122 = vmatprep.mubr.msk.f32.mxu0 %vm7094_vm0, %v7095_v4 }
 0x7a6   : > { %v2736_v17 = vadd.f32 %v8474_v53, %v2735_v45  ;;  %v6077_v61 = vpop.f32.mrb[127].mxu1 }
 0x7a8   : > { %v2779_v18 = vmax.f32 %v2736_v17, 0.0 }
 0x7aa   : > { %v2792_v44 = vadd.f32 %v2779_v18, %v8357_v52 }
 0x7ac   : > { %6123 = vmatmul.mubr.msk.f32.gmra.mrb[128].mxu0 %vm872_vm3, %v2792_v44 }
 0x7ad   : > { %v2740_v51 = vpop.f32.mrb[128].mxu1  ;;  %6125 = vmatprep.mubr.msk.f32.mxu0 %vm7094_vm0, %v7095_v4 }
 0x7ae   : > { %v2741_v33 = vadd.f32 %v8474_v53, %v2740_v51  ;;  %v6080_v30 = vpop.f32.mrb[129].mxu1 }
 0x7b0   : > { %v2780_v58 = vmax.f32 %v2741_v33, 0.0 }
 0x7b2   : > { %v2793_v40 = vadd.f32 %v2780_v58, %v8363_v37 }
 0x7b4   : > { %6126 = vmatmul.mubr.msk.f32.gmra.mrb[130].mxu0 %vm872_vm3, %v2793_v40 }
 0x7b5   : > { %v2745_v39 = vpop.f32.mrb[130].mxu1  ;;  %6128 = vmatprep.mubr.msk.f32.mxu0 %vm7094_vm0, %v7095_v4 }
 0x7b6   : > { %v2746_v52 = vadd.f32 %v8474_v53, %v2745_v39  ;;  %v6083_v5 = vpop.f32.mrb[131].mxu1 }
 0x7b8   : > { %v2781_v25 = vmax.f32 %v2746_v52, 0.0 }
 0x7ba   : > { %v2794_v22 = vadd.f32 %v2781_v25, %v8369_v62 }
 0x7bc   : > { %6129 = vmatmul.mubr.msk.f32.gmra.mrb[132].mxu0 %vm872_vm3, %v2794_v22 }
 0x7bd   : > { %v2750_v19 = vpop.f32.mrb[132].mxu1  ;;  %6131 = vmatprep.mubr.msk.f32.mxu0 %vm7094_vm0, %v7095_v4 }
 0x7be   : > { %v2751_v37 = vadd.f32 %v8474_v53, %v2750_v19  ;;  %v6086_v28 = vpop.f32.mrb[133].mxu1 }
 0x7c0   : > { %v2782_v13 = vmax.f32 %v2751_v37, 0.0 }
 0x7c2   : > { %v2795_v46 = vadd.f32 %v2782_v13, %v8375_v63 }
 0x7c4   : > { %6132 = vmatmul.mubr.msk.f32.gmra.mrb[134].mxu0 %vm872_vm3, %v2795_v46 }
 0x7c5   : > { %v2755_v45 = vpop.f32.mrb[134].mxu1  ;;  %6134 = vmatprep.mubr.msk.f32.mxu0 %vm7094_vm0, %v7095_v4 }
 0x7c6   : > { %v2756_v62 = vadd.f32 %v8474_v53, %v2755_v45  ;;  %v6089_v17 = vpop.f32.mrb[135].mxu1 }
 0x7c8   : > { %v2783_v61 = vmax.f32 %v2756_v62, 0.0 }
 0x7ca   : > { %v2796_v18 = vadd.f32 %v2783_v61, %v8381_v1 }
 0x7cc   : > { %6135 = vmatmul.mubr.msk.f32.gmra.mrb[136].mxu0 %vm872_vm3, %v2796_v18 }
 0x7cd   : > { %v2760_v44 = vpop.f32.mrb[136].mxu1  ;;  %6137 = vmatprep.mubr.msk.f32.mxu0 %vm7094_vm0, %v7095_v4 }
 0x7ce   : > { %v2761_v63 = vadd.f32 %v8474_v53, %v2760_v44  ;;  %v6092_v51 = vpop.f32.mrb[137].mxu1 }
 0x7d0   : > { %v2784_v33 = vmax.f32 %v2761_v63, 0.0 }
 0x7d2   : > { %v2797_v30 = vadd.f32 %v2784_v33, %v8387_v7 }
 0x7d4   : > { %6138 = vmatmul.mubr.msk.f32.gmra.mrb[138].mxu0 %vm872_vm3, %v2797_v30 }
 0x7d5   : > { %v2765_v58 = vpop.f32.mrb[138].mxu1  ;;  %6140 = vmatprep.mubr.msk.f32.mxu0 %vm7094_vm0, %v7095_v4 }
 0x7d6   : > { %v2766_v1 = vadd.f32 %v8474_v53, %v2765_v58  ;;  %v6095_v40 = vpop.f32.mrb[139].mxu1 }
 0x7d8   : > { %v2785_v39 = vmax.f32 %v2766_v1, 0.0 }
 0x7da   : > { %v2798_v52 = vadd.f32 %v2785_v39, %v8406_v27 }
 0x7dc   : > { %6141 = vmatmul.mubr.msk.f32.gmra.mrb[140].mxu0 %vm872_vm3, %v2798_v52 }
 0x7dd   : > { %v2770_v5 = vpop.f32.mrb[140].mxu1  ;;  %6143 = vmatprep.mubr.msk.f32.mxu0 %vm7094_vm0, %v7095_v4 }
 0x7de   : > { %v2771_v7 = vadd.f32 %v8474_v53, %v2770_v5  ;;  %v6098_v25 = vpop.f32.mrb[141].mxu1 }
 0x7e0   : > { %v2786_v22 = vmax.f32 %v2771_v7, 0.0 }
 0x7e1   : > { %v3059_v19 = vpop.f32.mrb[142].mxu1 }
 0x7e2   : > { %v2799_v37 = vadd.f32 %v2786_v22, %v8413_v50  ;;  %v6152_v28 = vpop.f32.mrb[143].mxu1 }
 0x7e3   : > { %v5123_v28 = vld [vmem:[%s9470_s4 + $0x28] sm:$0xff] }
 0x7e4   : > { %6144 = vmatmul.mubr.msk.f32.gmra.mrb[142].mxu0 %vm872_vm3, %v2799_v37  ;;  %v5122_v37 = vld [vmem:[%s9470_s4 + $0x20] sm:$0xff] }
 0x7e5   : > { %v3064_v13 = vpop.f32.mrb[144].mxu1  ;;  %6221 = vmatprep.mubr.msk.f32.mxu0 %vm7094_vm0, %v7095_v4 }
 0x7e6   : > { %v6155_v27 = vpop.f32.mrb[145].mxu1 }
 0x7e7   : > { %v5124_v27 = vld [vmem:[%s9470_s4 + $0x30] sm:$0xff] }
 0x7e9   : > { %v3069_v46 = vpop.f32.mrb[146].mxu1 }
 0x7ea   : > { %v6158_v45 = vpop.f32.mrb[147].mxu1 }
 0x7eb   : > { %v6770_v45 = vpack.c.bf16 %v5123_v28, %v5122_v37 }
 0x7ed   : > { %v3074_v62 = vpop.f32.mrb[148].mxu1  ;;  %6771 = vmatpush3.bf16.msra.mxu1 %v6770_v45 }
 0x7ee   : > { %v6161_v17 = vpop.f32.mrb[149].mxu1  ;;  %6772 = vmatprep.subr.bf16.mxu1 %v7093_v2 }
 0x7ef   : > { %v5125_v17 = vld [vmem:[%s9470_s4 + $0x38] sm:$0xff] }
 0x7f1   : > { %v3079_v61 = vpop.f32.mrb[150].mxu1 }
 0x7f2   : > { %v6164_v18 = vpop.f32.mrb[151].mxu1 }
 0x7f3   : > { %v6773_v18 = vpack.c.bf16 %v5125_v17, %v5124_v27 }
 0x7f5   : > { %v3084_v53 = vpop.f32.mrb[152].mxu1  ;;  %6774 = vmatpush3.bf16.msra.mxu1 %v6773_v18 }
 0x7f6   : > { %v6167_v44 = vpop.f32.mrb[153].mxu1  ;;  %6781 = vmatprep.subr.bf16.mxu1 %v7093_v2 }
 0x7f9   : > { %v8557_v63 = vpop.f32.mrb[154].mxu1 }
 0x7fa   : > { %v6170_v51 = vpop.f32.mrb[155].mxu1 }
 0x7fd   : > { %v8559_v50 = vpop.f32.mrb[156].mxu1 }
 0x7fe   : > { %v6173_v33 = vpop.f32.mrb[157].mxu1 }
 0x801   : > { %v8561_v30 = vpop.f32.mrb[158].mxu1 }
 0x802   : > { %v6176_v58 = vpop.f32.mrb[159].mxu1 }
 0x805   : > { %v8563_v1 = vpop.f32.mrb[160].mxu1 }
 0x806   : > { %v6179_v40 = vpop.f32.mrb[161].mxu1 }
 0x809   : > { %v8565_v39 = vpop.f32.mrb[162].mxu1 }
 0x80a   : > { %v6182_v52 = vpop.f32.mrb[163].mxu1 }
 0x80d   : > { %v8567_v5 = vpop.f32.mrb[164].mxu1 }
 0x80e   : > { %v6185_v7 = vpop.f32.mrb[165].mxu1 }
 0x811   : > { %v8569_v25 = vpop.f32.mrb[166].mxu1 }
 0x812   : > { %v6188_v22 = vpop.f32.mrb[167].mxu1 }
 0x858   : > { %v2910_v44 = vpop.f32.mrb[118].mxu0 }
 0x859   : > { %v8586_v51 = vadd.f32 %v2910_v44, %v8223_v3  ;;  %v6109_v33 = vpop.f32.mrb[119].mxu0 }
 0x85b   : > { %v3123_v58 = vmul.f32 %v3059_v19, %v8586_v51 }
 0x85d   : > { %6222 = vmatmul.mubr.f32.vlgmr.msra.gmra.mrb[144].mxu0 %v3123_v58 }
 0x85e   : > { %6224 = vmatprep.mubr.msk.f32.mxu0 %vm7094_vm0, %v7095_v4 }
 0x85f   : > { %v2915_v40 = vpop.f32.mrb[120].mxu0 }
 0x860   : > { %v8592_v52 = vadd.f32 %v2915_v40, %v8232_v57  ;;  %v6112_v7 = vpop.f32.mrb[121].mxu0 }
 0x862   : > { %v3124_v22 = vmul.f32 %v3064_v13, %v8592_v52 }
 0x864   : > { %6225 = vmatmul.mubr.f32.gmra.mrb[146].mxu0 %v3124_v22 }
 0x865   : > { %6227 = vmatprep.mubr.msk.f32.mxu0 %vm7094_vm0, %v7095_v4 }
 0x867   : > { %v2920_v3 = vpop.f32.mrb[122].mxu0 }
 0x868   : > { %v8598_v37 = vadd.f32 %v2920_v3, %v8243_v8  ;;  %v6115_v19 = vpop.f32.mrb[123].mxu0 }
 0x86a   : > { %v3125_v28 = vmul.f32 %v3069_v46, %v8598_v37 }
 0x86c   : > { %6228 = vmatmul.mubr.f32.gmra.mrb[148].mxu0 %v3125_v28 }
 0x86d   : > { %6230 = vmatprep.mubr.msk.f32.mxu0 %vm7094_vm0, %v7095_v4 }
 0x86f   : > { %v2925_v57 = vpop.f32.mrb[124].mxu0 }
 0x870   : > { %v8604_v27 = vadd.f32 %v2925_v57, %v8245_v10  ;;  %v6118_v13 = vpop.f32.mrb[125].mxu0 }
 0x872   : > { %v3126_v45 = vmul.f32 %v3074_v62, %v8604_v27 }
 0x874   : > { %6231 = vmatmul.mubr.f32.gmra.mrb[150].mxu0 %v3126_v45 }
 0x875   : > { %6233 = vmatprep.mubr.msk.f32.mxu0 %vm7094_vm0, %v7095_v4 }
 0x877   : > { %v2930_v8 = vpop.f32.mrb[126].mxu0 }
 0x878   : > { %v8610_v17 = vadd.f32 %v2930_v8, %v8247_v12  ;;  %v6121_v46 = vpop.f32.mrb[127].mxu0 }
 0x87a   : > { %v3127_v18 = vmul.f32 %v3079_v61, %v8610_v17 }
 0x87c   : > { %6234 = vmatmul.mubr.f32.gmra.mrb[152].mxu0 %v3127_v18 }
 0x87d   : > { %6236 = vmatprep.mubr.msk.f32.mxu0 %vm7094_vm0, %v7095_v4 }
 0x87f   : > { %v2935_v10 = vpop.f32.mrb[128].mxu0 }
 0x880   : > { %v8616_v44 = vadd.f32 %v2935_v10, %v8249_v41  ;;  %v6124_v62 = vpop.f32.mrb[129].mxu0 }
 0x882   : > { %v3128_v33 = vmul.f32 %v3084_v53, %v8616_v44 }
 0x884   : > { %6237 = vmatmul.mubr.f32.gmra.mrb[154].mxu0 %v3128_v33 }
 0x885   : > { %6239 = vmatprep.mubr.msk.f32.mxu0 %vm7094_vm0, %v7095_v4 }
 0x887   : > { %v2940_v12 = vpop.f32.mrb[130].mxu0 }
 0x888   : > { %v8622_v58 = vadd.f32 %v2940_v12, %v8251_v15  ;;  %v6127_v61 = vpop.f32.mrb[131].mxu0 }
 0x88a   : > { %v3129_v40 = vmul.f32 %v8557_v63, %v8622_v58 }
 0x88c   : > { %6240 = vmatmul.mubr.f32.gmra.mrb[156].mxu0 %v3129_v40 }
 0x88d   : > { %6242 = vmatprep.mubr.msk.f32.mxu0 %vm7094_vm0, %v7095_v4 }
 0x88f   : > { %v2945_v41 = vpop.f32.mrb[132].mxu0 }
 0x890   : > { %v8629_v7 = vadd.f32 %v2945_v41, %v8253_v24  ;;  %v6130_v53 = vpop.f32.mrb[133].mxu0 }
 0x892   : > { %v3130_v22 = vmul.f32 %v8559_v50, %v8629_v7 }
 0x894   : > { %6243 = vmatmul.mubr.f32.gmra.mrb[158].mxu0 %v3130_v22 }
 0x895   : > { %6245 = vmatprep.mubr.msk.f32.mxu0 %vm7094_vm0, %v7095_v4 }
 0x897   : > { %v2950_v15 = vpop.f32.mrb[134].mxu0 }
 0x898   : > { %v8636_v3 = vadd.f32 %v2950_v15, %v8255_v26  ;;  %v6133_v63 = vpop.f32.mrb[135].mxu0 }
 0x89a   : > { %v3131_v19 = vmul.f32 %v8561_v30, %v8636_v3 }
 0x89c   : > { %6246 = vmatmul.mubr.f32.gmra.mrb[160].mxu0 %v3131_v19 }
 0x89d   : > { %6248 = vmatprep.mubr.msk.f32.mxu0 %vm7094_vm0, %v7095_v4 }
 0x89f   : > { %v2955_v24 = vpop.f32.mrb[136].mxu0 }
 0x8a0   : > { %v8643_v28 = vadd.f32 %v2955_v24, %v8257_v56  ;;  %v6136_v50 = vpop.f32.mrb[137].mxu0 }
 0x8a2   : > { %v3132_v57 = vmul.f32 %v8563_v1, %v8643_v28 }
 0x8a4   : > { %6249 = vmatmul.mubr.f32.gmra.mrb[162].mxu0 %v3132_v57 }
 0x8a5   : > { %6251 = vmatprep.mubr.msk.f32.mxu0 %vm7094_vm0, %v7095_v4 }
 0x8a7   : > { %v2960_v26 = vpop.f32.mrb[138].mxu0 }
 0x8a8   : > { %v8650_v13 = vadd.f32 %v2960_v26, %v8259_v36  ;;  %v6139_v30 = vpop.f32.mrb[139].mxu0 }
 0x8aa   : > { %v3133_v45 = vmul.f32 %v8565_v39, %v8650_v13 }
 0x8ac   : > { %6252 = vmatmul.mubr.f32.gmra.mrb[164].mxu0 %v3133_v45 }
 0x8ad   : > { %6254 = vmatprep.mubr.msk.f32.mxu0 %vm7094_vm0, %v7095_v4 }
 0x8af   : > { %v2965_v56 = vpop.f32.mrb[140].mxu0 }
 0x8b0   : > { %v8657_v8 = vadd.f32 %v2965_v56, %v8261_v38  ;;  %v6142_v1 = vpop.f32.mrb[141].mxu0  ;;  %v5158_v38 = vld [vmem:[%s9449_s12 + $0x20] sm:$0xff] }
 0x8b2   : > { %v3134_v46 = vmul.f32 %v8567_v5, %v8657_v8  ;;  %v5159_v5 = vld [vmem:[%s9449_s12 + $0x28] sm:$0x3] }
 0x8b3   : > { %v6782_v62 = vpack.c.bf16 %v5159_v5, %v5158_v38  ;;  %v5143_v5 = vld [vmem:[%s9450_s13 + $0x50] sm:$0xff] }
 0x8b4   : > { %6255 = vmatmul.mubr.f32.gmra.mrb[166].mxu0 %v3134_v46 }
 0x8b5   : > { %6257 = vmatprep.mubr.msk.f32.mxu0 %vm7094_vm0, %v7095_v4 }
 0x8b7   : > { %v2970_v36 = vpop.f32.mrb[142].mxu0 }
 0x8b8   : > { %v8664_v18 = vadd.f32 %v2970_v36, %v8263_v32  ;;  %v6145_v39 = vpop.f32.mrb[143].mxu0 }
 0x8b9   : > { %v5141_v39 = vld [vmem:[%s9450_s13 + $0x40] sm:$0xff] }
 0x8ba   : > { %v3135_v10 = vmul.f32 %v8569_v25, %v8664_v18 }
 0x8bc   : > { %6258 = vmatmul.mubr.f32.gmra.mrb[168].mxu0 %v3135_v10  ;;  %v5142_v10 = vld [vmem:[%s9450_s13 + $0x48] sm:$0xff] }
 0x8bd   : > { %6315 = vmatprep.mubr.msk.f32.mxu0 %vm7094_vm0, %v7095_v4  ;;  %v6776_v38 = vpack.c.bf16 %v5142_v10, %v5141_v39 }
 0x8bf   : > { %6777 = vmatpush3.bf16.msra.mxu0 %v6776_v38 }
 0x8c0   : > { %6778 = vmatprep.subr.bf16.mxu0 %v7093_v2 }
 0x930   : > { %v8676_v33 = vpop.f32.mrb[144].mxu0 }
 0x931   : > { %v6223_v32 = vpop.f32.mrb[145].mxu0  ;;  %6269 = vmatmul.mubr.msk.f32.vlgmr.msra.gmra.mrb[168].mxu1 %vm872_vm3, %v8676_v33 }
 0x932   : > { %6271 = vmatprep.mubr.msk.f32.mxu1 %vm7094_vm0, %v7095_v4  ;;  %6784 = vmatpush3.bf16.msk.msra.mxu1 %vm7792_vm2, %v6782_v62  ;;  %v5144_v62 = vld [vmem:[%s9450_s13 + $0x58] sm:$0xff] }
 0x933   : > { %6809 = vmatprep.subr.bf16.mxu1 %v7093_v2 }
 0x937   : > { %v8685_v25 = vpop.f32.mrb[146].mxu0 }
 0x938   : > { %v6226_v12 = vpop.f32.mrb[147].mxu0  ;;  %6272 = vmatmul.mubr.msk.f32.gmra.mrb[170].mxu1 %vm872_vm3, %v8685_v25 }
 0x939   : > { %6274 = vmatprep.mubr.msk.f32.mxu1 %vm7094_vm0, %v7095_v4  ;;  %v6779_v12 = vpack.c.bf16 %v5144_v62, %v5143_v5 }
 0x93b   : > { %6780 = vmatpush3.bf16.msra.mxu0 %v6779_v12 }
 0x93c   : > { %6785 = vmatprep.subr.bf16.mxu0 %v7093_v2 }
 0x93f   : > { %v8691_v61 = vpop.f32.mrb[148].mxu0 }
 0x940   : > { %v6229_v40 = vpop.f32.mrb[149].mxu0  ;;  %6275 = vmatmul.mubr.msk.f32.gmra.mrb[172].mxu1 %vm872_vm3, %v8691_v61 }
 0x941   : > { %6277 = vmatprep.mubr.msk.f32.mxu1 %vm7094_vm0, %v7095_v4 }
 0x947   : > { %v8697_v41 = vpop.f32.mrb[150].mxu0 }
 0x948   : > { %v6232_v53 = vpop.f32.mrb[151].mxu0  ;;  %6278 = vmatmul.mubr.msk.f32.gmra.mrb[174].mxu1 %vm872_vm3, %v8697_v41 }
 0x949   : > { %6280 = vmatprep.mubr.msk.f32.mxu1 %vm7094_vm0, %v7095_v4 }
 0x94f   : > { %v8703_v22 = vpop.f32.mrb[152].mxu0 }
 0x950   : > { %v6235_v15 = vpop.f32.mrb[153].mxu0  ;;  %6281 = vmatmul.mubr.msk.f32.gmra.mrb[176].mxu1 %vm872_vm3, %v8703_v22 }
 0x951   : > { %6283 = vmatprep.mubr.msk.f32.mxu1 %vm7094_vm0, %v7095_v4 }
 0x957   : > { %v8709_v63 = vpop.f32.mrb[154].mxu0 }
 0x958   : > { %v6238_v19 = vpop.f32.mrb[155].mxu0  ;;  %6284 = vmatmul.mubr.msk.f32.gmra.mrb[178].mxu1 %vm872_vm3, %v8709_v63 }
 0x959   : > { %6286 = vmatprep.mubr.msk.f32.mxu1 %vm7094_vm0, %v7095_v4  ;;  %v8826_v19 = vld [vmem:[%s9442_s5 + $0x1] ss:$0 sm:$0xff] }
 0x95f   : > { %v8715_v24 = vpop.f32.mrb[156].mxu0 }
 0x960   : > { %v6241_v50 = vpop.f32.mrb[157].mxu0  ;;  %6287 = vmatmul.mubr.msk.f32.gmra.mrb[180].mxu1 %vm872_vm3, %v8715_v24 }
 0x961   : > { %6289 = vmatprep.mubr.msk.f32.mxu1 %vm7094_vm0, %v7095_v4 }
 0x967   : > { %v8721_v57 = vpop.f32.mrb[158].mxu0 }
 0x968   : > { %v6244_v26 = vpop.f32.mrb[159].mxu0  ;;  %6290 = vmatmul.mubr.msk.f32.gmra.mrb[182].mxu1 %vm872_vm3, %v8721_v57 }
 0x969   : > { %6292 = vmatprep.mubr.msk.f32.mxu1 %vm7094_vm0, %v7095_v4 }
 0x96f   : > { %v8727_v30 = vpop.f32.mrb[160].mxu0 }
 0x970   : > { %v6247_v45 = vpop.f32.mrb[161].mxu0  ;;  %6293 = vmatmul.mubr.msk.f32.gmra.mrb[184].mxu1 %vm872_vm3, %v8727_v30 }
 0x971   : > { %6295 = vmatprep.mubr.msk.f32.mxu1 %vm7094_vm0, %v7095_v4 }
 0x977   : > { %v8733_v56 = vpop.f32.mrb[162].mxu0 }
 0x978   : > { %v6250_v1 = vpop.f32.mrb[163].mxu0  ;;  %6296 = vmatmul.mubr.msk.f32.gmra.mrb[186].mxu1 %vm872_vm3, %v8733_v56 }
 0x979   : > { %6298 = vmatprep.mubr.msk.f32.mxu1 %vm7094_vm0, %v7095_v4 }
 0x97f   : > { %v8739_v46 = vpop.f32.mrb[164].mxu0 }
 0x980   : > { %v6253_v36 = vpop.f32.mrb[165].mxu0  ;;  %6299 = vmatmul.mubr.msk.f32.gmra.mrb[188].mxu1 %vm872_vm3, %v8739_v46 }
 0x981   : > { %6301 = vmatprep.mubr.msk.f32.mxu1 %vm7094_vm0, %v7095_v4 }
 0x987   : > { %v8758_v32 = vpop.f32.mrb[166].mxu0 }
 0x988   : > { %v6256_v40 = vpop.f32.mrb[167].mxu0  ;;  %6302 = vmatmul.mubr.msk.f32.gmra.mrb[190].mxu1 %vm872_vm3, %v8758_v32 }
 0x989   : > { %6304 = vmatprep.mubr.msk.f32.mxu1 %vm7094_vm0, %v7095_v4 }
 0x98f   : > { %v8765_v53 = vpop.f32.mrb[168].mxu0 }
 0x990   : > { %v6259_v15 = vpop.f32.mrb[169].mxu0  ;;  %6305 = vmatmul.mubr.msk.f32.gmra.mrb[192].mxu1 %vm872_vm3, %v8765_v53 }
 0x991   : > { %6358 = vmatprep.mubr.msk.f32.mxu1 %vm7094_vm0, %v7095_v4 }
 0x994   : > { %6359 = vmatmul.mubr.msk.f32.vlgmr.msra.gmra.mrb[194].mxu1 %vm1251_vm8, %v8043_v55 }
 0x995   : > { %6361 = vmatprep.mubr.msk.f32.mxu1 %vm7094_vm0, %v7095_v4 }
 0x998   : > { %6362 = vmatmul.mubr.msk.f32.gmra.mrb[196].mxu1 %vm1251_vm8, %v8052_v60 }
 0x999   : > { %6364 = vmatprep.mubr.msk.f32.mxu1 %vm7094_vm0, %v7095_v4 }
 0x99c   : > { %6365 = vmatmul.mubr.msk.f32.gmra.mrb[198].mxu1 %vm1251_vm8, %v8061_v0 }
 0x99d   : > { %6367 = vmatprep.mubr.msk.f32.mxu1 %vm7094_vm0, %v7095_v4 }
 0x9a0   : > { %6368 = vmatmul.mubr.msk.f32.gmra.mrb[200].mxu1 %vm1251_vm8, %v8070_v21 }
 0x9a1   : > { %6370 = vmatprep.mubr.msk.f32.mxu1 %vm7094_vm0, %v7095_v4 }
 0x9a4   : > { %6371 = vmatmul.mubr.msk.f32.gmra.mrb[202].mxu1 %vm1251_vm8, %v8079_v6 }
 0x9a5   : > { %6373 = vmatprep.mubr.msk.f32.mxu1 %vm7094_vm0, %v7095_v4 }
 0x9a8   : > { %6374 = vmatmul.mubr.msk.f32.gmra.mrb[204].mxu1 %vm1251_vm8, %v8088_v9 }
 0x9a9   : > { %6376 = vmatprep.mubr.msk.f32.mxu1 %vm7094_vm0, %v7095_v4 }
 0x9ac   : > { %6377 = vmatmul.mubr.msk.f32.gmra.mrb[206].mxu1 %vm1251_vm8, %v8097_v11 }
 0x9ad   : > { %6379 = vmatprep.mubr.msk.f32.mxu1 %vm7094_vm0, %v7095_v4 }
 0x9b0   : > { %6380 = vmatmul.mubr.msk.f32.gmra.mrb[208].mxu1 %vm1251_vm8, %v8115_v16 }
 0x9b1   : > { %6382 = vmatprep.mubr.msk.f32.mxu1 %vm7094_vm0, %v7095_v4 }
 0x9b4   : > { %6383 = vmatmul.mubr.msk.f32.gmra.mrb[210].mxu1 %vm1251_vm8, %v8142_v34 }
 0x9b5   : > { %6385 = vmatprep.mubr.msk.f32.mxu1 %vm7094_vm0, %v7095_v4 }
 0x9b8   : > { %6386 = vmatmul.mubr.msk.f32.gmra.mrb[212].mxu1 %vm1251_vm8, %v8171_v48 }
 0x9b9   : > { %6388 = vmatprep.mubr.msk.f32.mxu1 %vm7094_vm0, %v7095_v4 }
 0x9bc   : > { %6389 = vmatmul.mubr.msk.f32.gmra.mrb[214].mxu1 %vm1251_vm8, %v8200_v35 }
 0x9bd   : > { %6391 = vmatprep.mubr.msk.f32.mxu1 %vm7094_vm0, %v7095_v4 }
 0x9c0   : > { %6392 = vmatmul.mubr.msk.f32.gmra.mrb[216].mxu1 %vm1251_vm8, %v8221_v43 }
 0x9c1   : > { %6394 = vmatprep.mubr.msk.f32.mxu1 %vm7094_vm0, %v7095_v4 }
 0x9c4   : > { %6395 = vmatmul.mubr.msk.f32.gmra.mrb[218].mxu1 %vm1251_vm8, %v8235_v49 }
 0x9c5   : > { %6476 = vmatprep.mubr.msk.f32.mxu1 %vm7094_vm0, %v7095_v4 }
 0xa04   : > { %v3384_v50 = vpop.f32.mrb[168].mxu1 }
 0xa05   : > { %v3385_v26 = vadd.f32 %v8826_v19, %v3384_v50  ;;  %v6270_v45 = vpop.f32.mrb[169].mxu1 }
 0xa07   : > { %v3448_v1 = vmax.f32 %v3385_v26, 0.0 }
 0xa09   : > { %v3461_v36 = vadd.f32 %v3448_v1, %v8676_v33 }
 0xa0b   : > { %v3389_v39 = vpop.f32.mrb[170].mxu1  ;;  %6316 = vmatmul.mubr.msk.f32.vlgmr.msra.gmra.mrb[170].mxu0 %vm872_vm3, %v3461_v36 }
 0xa0c   : > { %v3390_v10 = vadd.f32 %v8826_v19, %v3389_v39  ;;  %v6273_v38 = vpop.f32.mrb[171].mxu1  ;;  %6318 = vmatprep.mubr.msk.f32.mxu0 %vm7094_vm0, %v7095_v4  ;;  %6787 = vmatpush3.bf16.msra.mxu0 %v8111_v14 }
 0xa0d   : > { %6788 = vmatprep.subr.bf16.mxu0 %v7093_v2 }
 0xa0e   : > { %v3449_v5 = vmax.f32 %v3390_v10, 0.0 }
 0xa10   : > { %v3462_v62 = vadd.f32 %v3449_v5, %v8685_v25  ;;  %6790 = vmatpush3.bf16.msra.mxu0 %v8133_v29 }
 0xa11   : > { %6791 = vmatprep.subr.bf16.mxu0 %v7093_v2 }
 0xa12   : > { %6319 = vmatmul.mubr.msk.f32.gmra.mrb[172].mxu0 %vm872_vm3, %v3462_v62 }
 0xa13   : > { %v3394_v33 = vpop.f32.mrb[172].mxu1  ;;  %6321 = vmatprep.mubr.msk.f32.mxu0 %vm7094_vm0, %v7095_v4 }
 0xa14   : > { %v3395_v12 = vadd.f32 %v8826_v19, %v3394_v33  ;;  %v6276_v40 = vpop.f32.mrb[173].mxu1  ;;  %6793 = vmatpush3.bf16.msra.mxu0 %v8139_v31 }
 0xa15   : > { %6794 = vmatprep.subr.bf16.mxu0 %v7093_v2 }
 0xa16   : > { %v3450_v15 = vmax.f32 %v3395_v12, 0.0 }
 0xa18   : > { %v3463_v25 = vadd.f32 %v3450_v15, %v8691_v61  ;;  %6796 = vmatpush3.bf16.msra.mxu0 %v8162_v42 }
 0xa19   : > { %6797 = vmatprep.subr.bf16.mxu0 %v7093_v2 }
 0xa1a   : > { %6322 = vmatmul.mubr.msk.f32.gmra.mrb[174].mxu0 %vm872_vm3, %v3463_v25 }
 0xa1b   : > { %v3399_v50 = vpop.f32.mrb[174].mxu1  ;;  %6324 = vmatprep.mubr.msk.f32.mxu0 %vm7094_vm0, %v7095_v4 }
 0xa1c   : > { %v3400_v26 = vadd.f32 %v8826_v19, %v3399_v50  ;;  %v6279_v45 = vpop.f32.mrb[175].mxu1  ;;  %6799 = vmatpush3.bf16.msra.mxu0 %v8168_v47 }
 0xa1d   : > { %6800 = vmatprep.subr.bf16.mxu0 %v7093_v2 }
 0xa1e   : > { %v3451_v1 = vmax.f32 %v3400_v26, 0.0 }
 0xa20   : > { %v3464_v61 = vadd.f32 %v3451_v1, %v8697_v41  ;;  %6802 = vmatpush3.bf16.msra.mxu0 %v8191_v54 }
 0xa21   : > { %6803 = vmatprep.subr.bf16.mxu0 %v7093_v2 }
 0xa22   : > { %6325 = vmatmul.mubr.msk.f32.gmra.mrb[176].mxu0 %vm872_vm3, %v3464_v61 }
 0xa23   : > { %v3404_v36 = vpop.f32.mrb[176].mxu1  ;;  %6327 = vmatprep.mubr.msk.f32.mxu0 %vm7094_vm0, %v7095_v4 }
 0xa24   : > { %v3405_v39 = vadd.f32 %v8826_v19, %v3404_v36  ;;  %v6282_v10 = vpop.f32.mrb[177].mxu1  ;;  %6805 = vmatpush3.bf16.msra.mxu0 %v8197_v59 }
 0xa25   : > { %6806 = vmatprep.subr.bf16.mxu0 %v7093_v2 }
 0xa26   : > { %v3452_v38 = vmax.f32 %v3405_v39, 0.0 }
 0xa28   : > { %v3465_v41 = vadd.f32 %v3452_v38, %v8703_v22  ;;  %6808 = vmatpush3.bf16.msra.mxu0 %v8217_v20 }
 0xa29   : > { %6815 = vmatprep.subr.bf16.mxu0 %v7093_v2 }
 0xa2a   : > { %6328 = vmatmul.mubr.msk.f32.gmra.mrb[178].mxu0 %vm872_vm3, %v3465_v41 }
 0xa2b   : > { %v3409_v5 = vpop.f32.mrb[178].mxu1  ;;  %6330 = vmatprep.mubr.msk.f32.mxu0 %vm7094_vm0, %v7095_v4 }
 0xa2c   : > { %v3410_v62 = vadd.f32 %v8826_v19, %v3409_v5  ;;  %v6285_v33 = vpop.f32.mrb[179].mxu1 }
 0xa2e   : > { %v3453_v12 = vmax.f32 %v3410_v62, 0.0 }
 0xa30   : > { %v3466_v40 = vadd.f32 %v3453_v12, %v8709_v63 }
 0xa32   : > { %6331 = vmatmul.mubr.msk.f32.gmra.mrb[180].mxu0 %vm872_vm3, %v3466_v40 }
 0xa33   : > { %v3414_v15 = vpop.f32.mrb[180].mxu1  ;;  %6333 = vmatprep.mubr.msk.f32.mxu0 %vm7094_vm0, %v7095_v4 }
 0xa34   : > { %v3415_v22 = vadd.f32 %v8826_v19, %v3414_v15  ;;  %v6288_v25 = vpop.f32.mrb[181].mxu1 }
 0xa36   : > { %v3454_v50 = vmax.f32 %v3415_v22, 0.0 }
 0xa38   : > { %v3467_v26 = vadd.f32 %v3454_v50, %v8715_v24 }
 0xa3a   : > { %6334 = vmatmul.mubr.msk.f32.gmra.mrb[182].mxu0 %vm872_vm3, %v3467_v26 }
 0xa3b   : > { %v3419_v45 = vpop.f32.mrb[182].mxu1  ;;  %6336 = vmatprep.mubr.msk.f32.mxu0 %vm7094_vm0, %v7095_v4 }
 0xa3c   : > { %v3420_v63 = vadd.f32 %v8826_v19, %v3419_v45  ;;  %v6291_v1 = vpop.f32.mrb[183].mxu1 }
 0xa3e   : > { %v3455_v61 = vmax.f32 %v3420_v63, 0.0 }
 0xa40   : > { %v3468_v36 = vadd.f32 %v3455_v61, %v8721_v57 }
 0xa42   : > { %6337 = vmatmul.mubr.msk.f32.gmra.mrb[184].mxu0 %vm872_vm3, %v3468_v36 }
 0xa43   : > { %v3424_v39 = vpop.f32.mrb[184].mxu1  ;;  %6339 = vmatprep.mubr.msk.f32.mxu0 %vm7094_vm0, %v7095_v4 }
 0xa44   : > { %v3425_v24 = vadd.f32 %v8826_v19, %v3424_v39  ;;  %v6294_v10 = vpop.f32.mrb[185].mxu1 }
 0xa46   : > { %v3456_v38 = vmax.f32 %v3425_v24, 0.0 }
 0xa48   : > { %v3469_v41 = vadd.f32 %v3456_v38, %v8727_v30 }
 0xa4a   : > { %6340 = vmatmul.mubr.msk.f32.gmra.mrb[186].mxu0 %vm872_vm3, %v3469_v41 }
 0xa4b   : > { %v3429_v5 = vpop.f32.mrb[186].mxu1  ;;  %6342 = vmatprep.mubr.msk.f32.mxu0 %vm7094_vm0, %v7095_v4 }
 0xa4c   : > { %v3430_v57 = vadd.f32 %v8826_v19, %v3429_v5  ;;  %v6297_v62 = vpop.f32.mrb[187].mxu1 }
 0xa4e   : > { %v3457_v33 = vmax.f32 %v3430_v57, 0.0 }
 0xa50   : > { %v3470_v12 = vadd.f32 %v3457_v33, %v8733_v56 }
 0xa52   : > { %6343 = vmatmul.mubr.msk.f32.gmra.mrb[188].mxu0 %vm872_vm3, %v3470_v12 }
 0xa53   : > { %v3434_v40 = vpop.f32.mrb[188].mxu1  ;;  %6345 = vmatprep.mubr.msk.f32.mxu0 %vm7094_vm0, %v7095_v4 }
 0xa54   : > { %v3435_v30 = vadd.f32 %v8826_v19, %v3434_v40  ;;  %v6300_v15 = vpop.f32.mrb[189].mxu1 }
 0xa56   : > { %v3458_v22 = vmax.f32 %v3435_v30, 0.0 }
 0xa58   : > { %v3471_v25 = vadd.f32 %v3458_v22, %v8739_v46 }
 0xa5a   : > { %6346 = vmatmul.mubr.msk.f32.gmra.mrb[190].mxu0 %vm872_vm3, %v3471_v25 }
 0xa5b   : > { %v3439_v50 = vpop.f32.mrb[190].mxu1  ;;  %6348 = vmatprep.mubr.msk.f32.mxu0 %vm7094_vm0, %v7095_v4 }
 0xa5c   : > { %v3440_v56 = vadd.f32 %v8826_v19, %v3439_v50  ;;  %v6303_v26 = vpop.f32.mrb[191].mxu1 }
 0xa5e   : > { %v3459_v45 = vmax.f32 %v3440_v56, 0.0 }
 0xa60   : > { %v3472_v63 = vadd.f32 %v3459_v45, %v8758_v32 }
 0xa62   : > { %6349 = vmatmul.mubr.msk.f32.gmra.mrb[192].mxu0 %vm872_vm3, %v3472_v63 }
 0xa63   : > { %v3444_v1 = vpop.f32.mrb[192].mxu1  ;;  %6351 = vmatprep.mubr.msk.f32.mxu0 %vm7094_vm0, %v7095_v4 }
 0xa64   : > { %v3445_v46 = vadd.f32 %v8826_v19, %v3444_v1  ;;  %v6306_v61 = vpop.f32.mrb[193].mxu1 }
 0xa66   : > { %v3460_v36 = vmax.f32 %v3445_v46, 0.0 }
 0xa67   : > { %v3733_v39 = vpop.f32.mrb[194].mxu1 }
 0xa68   : > { %v3473_v24 = vadd.f32 %v3460_v36, %v8765_v53  ;;  %v6360_v10 = vpop.f32.mrb[195].mxu1 }
 0xa69   : > { %v5175_v10 = vld [vmem:[%s9470_s4 + $0x48] sm:$0xff] }
 0xa6a   : > { %6352 = vmatmul.mubr.msk.f32.gmra.mrb[194].mxu0 %vm872_vm3, %v3473_v24  ;;  %v5174_v24 = vld [vmem:[%s9470_s4 + $0x40] sm:$0xff] }
 0xa6b   : > { %v3738_v38 = vpop.f32.mrb[196].mxu1  ;;  %6429 = vmatprep.mubr.msk.f32.mxu0 %vm7094_vm0, %v7095_v4 }
 0xa6c   : > { %v6363_v32 = vpop.f32.mrb[197].mxu1 }
 0xa6d   : > { %v5176_v32 = vld [vmem:[%s9470_s4 + $0x50] sm:$0xff] }
 0xa6f   : > { %v3743_v41 = vpop.f32.mrb[198].mxu1 }
 0xa70   : > { %v6366_v5 = vpop.f32.mrb[199].mxu1 }
 0xa71   : > { %v6810_v5 = vpack.c.bf16 %v5175_v10, %v5174_v24 }
 0xa73   : > { %v3748_v57 = vpop.f32.mrb[200].mxu1  ;;  %6811 = vmatpush3.bf16.msra.mxu1 %v6810_v5 }
 0xa74   : > { %v6369_v62 = vpop.f32.mrb[201].mxu1  ;;  %6812 = vmatprep.subr.bf16.mxu1 %v7093_v2 }
 0xa75   : > { %v5177_v62 = vld [vmem:[%s9470_s4 + $0x58] sm:$0xff] }
 0xa77   : > { %v3753_v33 = vpop.f32.mrb[202].mxu1 }
 0xa78   : > { %v6372_v12 = vpop.f32.mrb[203].mxu1 }
 0xa79   : > { %v6813_v12 = vpack.c.bf16 %v5177_v62, %v5176_v32 }
 0xa7b   : > { %v3758_v19 = vpop.f32.mrb[204].mxu1  ;;  %6814 = vmatpush3.bf16.msra.mxu1 %v6813_v12 }
 0xa7c   : > { %v6375_v40 = vpop.f32.mrb[205].mxu1  ;;  %6821 = vmatprep.subr.bf16.mxu1 %v7093_v2 }
 0xa7f   : > { %v8909_v30 = vpop.f32.mrb[206].mxu1 }
 0xa80   : > { %v6378_v15 = vpop.f32.mrb[207].mxu1 }
 0xa83   : > { %v8911_v53 = vpop.f32.mrb[208].mxu1 }
 0xa84   : > { %v6381_v22 = vpop.f32.mrb[209].mxu1 }
 0xa87   : > { %v8913_v25 = vpop.f32.mrb[210].mxu1 }
 0xa88   : > { %v6384_v50 = vpop.f32.mrb[211].mxu1 }
 0xa8b   : > { %v8915_v56 = vpop.f32.mrb[212].mxu1 }
 0xa8c   : > { %v6387_v26 = vpop.f32.mrb[213].mxu1 }
 0xa8f   : > { %v8917_v45 = vpop.f32.mrb[214].mxu1 }
 0xa90   : > { %v6390_v63 = vpop.f32.mrb[215].mxu1 }
 0xa93   : > { %v8919_v1 = vpop.f32.mrb[216].mxu1 }
 0xa94   : > { %v6393_v46 = vpop.f32.mrb[217].mxu1 }
 0xa97   : > { %v8921_v61 = vpop.f32.mrb[218].mxu1 }
 0xa98   : > { %v6396_v36 = vpop.f32.mrb[219].mxu1 }
 0xade   : > { %v3584_v40 = vpop.f32.mrb[170].mxu0 }
 0xadf   : > { %v8938_v15 = vadd.f32 %v3584_v40, %v8586_v51  ;;  %v6317_v22 = vpop.f32.mrb[171].mxu0 }
 0xae1   : > { %v3797_v50 = vmul.f32 %v3733_v39, %v8938_v15 }
 0xae3   : > { %6430 = vmatmul.mubr.f32.vlgmr.msra.gmra.mrb[196].mxu0 %v3797_v50 }
 0xae4   : > { %6432 = vmatprep.mubr.msk.f32.mxu0 %vm7094_vm0, %v7095_v4 }
 0xae5   : > { %v3589_v26 = vpop.f32.mrb[172].mxu0 }
 0xae6   : > { %v8944_v63 = vadd.f32 %v3589_v26, %v8592_v52  ;;  %v6320_v46 = vpop.f32.mrb[173].mxu0 }
 0xae8   : > { %v3798_v36 = vmul.f32 %v3738_v38, %v8944_v63 }
 0xaea   : > { %6433 = vmatmul.mubr.f32.gmra.mrb[198].mxu0 %v3798_v36 }
 0xaeb   : > { %6435 = vmatprep.mubr.msk.f32.mxu0 %vm7094_vm0, %v7095_v4 }
 0xaed   : > { %v3594_v51 = vpop.f32.mrb[174].mxu0 }
 0xaee   : > { %v8950_v24 = vadd.f32 %v3594_v51, %v8598_v37  ;;  %v6323_v39 = vpop.f32.mrb[175].mxu0 }
 0xaf0   : > { %v3799_v10 = vmul.f32 %v3743_v41, %v8950_v24 }
 0xaf2   : > { %6436 = vmatmul.mubr.f32.gmra.mrb[200].mxu0 %v3799_v10 }
 0xaf3   : > { %6438 = vmatprep.mubr.msk.f32.mxu0 %vm7094_vm0, %v7095_v4 }
 0xaf5   : > { %v3599_v52 = vpop.f32.mrb[176].mxu0 }
 0xaf6   : > { %v8956_v32 = vadd.f32 %v3599_v52, %v8604_v27  ;;  %v6326_v38 = vpop.f32.mrb[177].mxu0 }
 0xaf8   : > { %v3800_v5 = vmul.f32 %v3748_v57, %v8956_v32 }
 0xafa   : > { %6439 = vmatmul.mubr.f32.gmra.mrb[202].mxu0 %v3800_v5 }
 0xafb   : > { %6441 = vmatprep.mubr.msk.f32.mxu0 %vm7094_vm0, %v7095_v4 }
 0xafd   : > { %v3604_v37 = vpop.f32.mrb[178].mxu0 }
 0xafe   : > { %v8962_v62 = vadd.f32 %v3604_v37, %v8610_v17  ;;  %v6329_v41 = vpop.f32.mrb[179].mxu0 }
 0xb00   : > { %v3801_v12 = vmul.f32 %v3753_v33, %v8962_v62 }
 0xb02   : > { %6442 = vmatmul.mubr.f32.gmra.mrb[204].mxu0 %v3801_v12 }
 0xb03   : > { %6444 = vmatprep.mubr.msk.f32.mxu0 %vm7094_vm0, %v7095_v4 }
 0xb05   : > { %v3609_v27 = vpop.f32.mrb[180].mxu0 }
 0xb06   : > { %v8968_v40 = vadd.f32 %v3609_v27, %v8616_v44  ;;  %v6332_v57 = vpop.f32.mrb[181].mxu0 }
 0xb08   : > { %v3802_v22 = vmul.f32 %v3758_v19, %v8968_v40 }
 0xb0a   : > { %6445 = vmatmul.mubr.f32.gmra.mrb[206].mxu0 %v3802_v22 }
 0xb0b   : > { %6447 = vmatprep.mubr.msk.f32.mxu0 %vm7094_vm0, %v7095_v4 }
 0xb0d   : > { %v3614_v17 = vpop.f32.mrb[182].mxu0 }
 0xb0e   : > { %v8974_v50 = vadd.f32 %v3614_v17, %v8622_v58  ;;  %v6335_v33 = vpop.f32.mrb[183].mxu0 }
 0xb10   : > { %v3803_v26 = vmul.f32 %v8909_v30, %v8974_v50 }
 0xb12   : > { %6448 = vmatmul.mubr.f32.gmra.mrb[208].mxu0 %v3803_v26 }
 0xb13   : > { %6450 = vmatprep.mubr.msk.f32.mxu0 %vm7094_vm0, %v7095_v4 }
 0xb15   : > { %v3619_v44 = vpop.f32.mrb[184].mxu0 }
 0xb16   : > { %v8981_v46 = vadd.f32 %v3619_v44, %v8629_v7  ;;  %v6338_v19 = vpop.f32.mrb[185].mxu0 }
 0xb18   : > { %v3804_v36 = vmul.f32 %v8911_v53, %v8981_v46 }
 0xb1a   : > { %6451 = vmatmul.mubr.f32.gmra.mrb[210].mxu0 %v3804_v36 }
 0xb1b   : > { %6453 = vmatprep.mubr.msk.f32.mxu0 %vm7094_vm0, %v7095_v4 }
 0xb1d   : > { %v3624_v58 = vpop.f32.mrb[186].mxu0 }
 0xb1e   : > { %v8988_v51 = vadd.f32 %v3624_v58, %v8636_v3  ;;  %v6341_v30 = vpop.f32.mrb[187].mxu0 }
 0xb20   : > { %v3805_v39 = vmul.f32 %v8913_v25, %v8988_v51 }
 0xb22   : > { %6454 = vmatmul.mubr.f32.gmra.mrb[212].mxu0 %v3805_v39 }
 0xb23   : > { %6456 = vmatprep.mubr.msk.f32.mxu0 %vm7094_vm0, %v7095_v4 }
 0xb25   : > { %v3629_v7 = vpop.f32.mrb[188].mxu0 }
 0xb26   : > { %v8995_v10 = vadd.f32 %v3629_v7, %v8643_v28  ;;  %v6344_v53 = vpop.f32.mrb[189].mxu0 }
 0xb28   : > { %v3806_v52 = vmul.f32 %v8915_v56, %v8995_v10 }
 0xb2a   : > { %6457 = vmatmul.mubr.f32.gmra.mrb[214].mxu0 %v3806_v52 }
 0xb2b   : > { %6459 = vmatprep.mubr.msk.f32.mxu0 %vm7094_vm0, %v7095_v4 }
 0xb2d   : > { %v3634_v3 = vpop.f32.mrb[190].mxu0 }
 0xb2e   : > { %v9002_v38 = vadd.f32 %v3634_v3, %v8650_v13  ;;  %v6347_v25 = vpop.f32.mrb[191].mxu0 }
 0xb30   : > { %v3807_v5 = vmul.f32 %v8917_v45, %v9002_v38 }
 0xb32   : > { %6460 = vmatmul.mubr.f32.gmra.mrb[216].mxu0 %v3807_v5 }
 0xb33   : > { %6462 = vmatprep.mubr.msk.f32.mxu0 %vm7094_vm0, %v7095_v4 }
 0xb35   : > { %v3639_v28 = vpop.f32.mrb[192].mxu0 }
 0xb36   : > { %v9009_v37 = vadd.f32 %v3639_v28, %v8657_v8  ;;  %v6350_v56 = vpop.f32.mrb[193].mxu0  ;;  %v5210_v8 = vld [vmem:[%s9449_s12 + $0x30] sm:$0xff] }
 0xb38   : > { %v3808_v41 = vmul.f32 %v8919_v1, %v9009_v37  ;;  %v5211_v1 = vld [vmem:[%s9449_s12 + $0x38] sm:$0x3] }
 0xb39   : > { %v6822_v57 = vpack.c.bf16 %v5211_v1, %v5210_v8  ;;  %v5195_v8 = vld [vmem:[%s9450_s13 + $0x70] sm:$0xff]  ;;  %v5196_v1 = vld [vmem:[%s9450_s13 + $0x78] sm:$0xff] }
 0xb3a   : > { %6463 = vmatmul.mubr.f32.gmra.mrb[218].mxu0 %v3808_v41 }
 0xb3b   : > { %6465 = vmatprep.mubr.msk.f32.mxu0 %vm7094_vm0, %v7095_v4 }
 0xb3d   : > { %v3644_v13 = vpop.f32.mrb[194].mxu0 }
 0xb3e   : > { %v9016_v12 = vadd.f32 %v3644_v13, %v8664_v18  ;;  %v6353_v45 = vpop.f32.mrb[195].mxu0  ;;  %v5193_v13 = vld [vmem:[%s9450_s13 + $0x60] sm:$0xff] }
 0xb3f   : > { %v5194_v45 = vld [vmem:[%s9450_s13 + $0x68] sm:$0xff] }
 0xb40   : > { %v3809_v27 = vmul.f32 %v8921_v61, %v9016_v12 }
 0xb42   : > { %6466 = vmatmul.mubr.f32.gmra.mrb[220].mxu0 %v3809_v27  ;;  %v6816_v27 = vpack.c.bf16 %v5194_v45, %v5193_v13 }
 0xb43   : > { %6523 = vmatprep.mubr.msk.f32.mxu0 %vm7094_vm0, %v7095_v4 }
 0xb44   : > { %6817 = vmatpush3.bf16.msra.mxu0 %v6816_v27 }
 0xb45   : > { %6818 = vmatprep.subr.bf16.mxu0 %v7093_v2 }
 0xbb6   : > { %v9028_v22 = vpop.f32.mrb[196].mxu0 }
 0xbb7   : > { %v6431_v18 = vpop.f32.mrb[197].mxu0  ;;  %6477 = vmatmul.mubr.msk.f32.vlgmr.msra.gmra.mrb[220].mxu1 %vm872_vm3, %v9028_v22 }
 0xbb8   : > { %6479 = vmatprep.mubr.msk.f32.mxu1 %vm7094_vm0, %v7095_v4  ;;  %6824 = vmatpush3.bf16.msk.msra.mxu1 %vm7792_vm2, %v6822_v57  ;;  %v6819_v18 = vpack.c.bf16 %v5196_v1, %v5195_v8 }
 0xbba   : > { %6820 = vmatpush3.bf16.msra.mxu0 %v6819_v18 }
 0xbbb   : > { %6825 = vmatprep.subr.bf16.mxu0 %v7093_v2 }
 0xbbd   : > { %v9036_v61 = vpop.f32.mrb[198].mxu0 }
 0xbbe   : > { %v6434_v17 = vpop.f32.mrb[199].mxu0  ;;  %6480 = vmatmul.mubr.msk.f32.gmra.mrb[222].mxu1 %vm872_vm3, %v9036_v61 }
 0xbbf   : > { %6482 = vmatprep.mubr.msk.f32.mxu1 %vm7094_vm0, %v7095_v4 }
 0xbc5   : > { %v9042_v33 = vpop.f32.mrb[200].mxu0 }
 0xbc6   : > { %v6437_v26 = vpop.f32.mrb[201].mxu0  ;;  %6483 = vmatmul.mubr.msk.f32.gmra.mrb[224].mxu1 %vm872_vm3, %v9042_v33 }
 0xbc7   : > { %6485 = vmatprep.mubr.msk.f32.mxu1 %vm7094_vm0, %v7095_v4 }
 0xbcd   : > { %v9048_v23 = vpop.f32.mrb[202].mxu0 }
 0xbce   : > { %v6440_v44 = vpop.f32.mrb[203].mxu0  ;;  %6486 = vmatmul.mubr.msk.f32.gmra.mrb[226].mxu1 %vm872_vm3, %v9048_v23 }
 0xbcf   : > { %6488 = vmatprep.mubr.msk.f32.mxu1 %vm7094_vm0, %v7095_v4 }
 0xbd5   : > { %v9054_v19 = vpop.f32.mrb[204].mxu0 }
 0xbd6   : > { %v6443_v36 = vpop.f32.mrb[205].mxu0  ;;  %6489 = vmatmul.mubr.msk.f32.gmra.mrb[228].mxu1 %vm872_vm3, %v9054_v19 }
 0xbd7   : > { %6491 = vmatprep.mubr.msk.f32.mxu1 %vm7094_vm0, %v7095_v4 }
 0xbdd   : > { %v9060_v58 = vpop.f32.mrb[206].mxu0 }
 0xbde   : > { %v6446_v30 = vpop.f32.mrb[207].mxu0  ;;  %6492 = vmatmul.mubr.msk.f32.gmra.mrb[230].mxu1 %vm872_vm3, %v9060_v58 }
 0xbdf   : > { %6494 = vmatprep.mubr.msk.f32.mxu1 %vm7094_vm0, %v7095_v4 }
 0xbe5   : > { %v9066_v39 = vpop.f32.mrb[208].mxu0 }
 0xbe6   : > { %v6449_v7 = vpop.f32.mrb[209].mxu0  ;;  %6495 = vmatmul.mubr.msk.f32.gmra.mrb[232].mxu1 %vm872_vm3, %v9066_v39 }
 0xbe7   : > { %6497 = vmatprep.mubr.msk.f32.mxu1 %vm7094_vm0, %v7095_v4 }
 0xbed   : > { %v9072_v53 = vpop.f32.mrb[210].mxu0 }
 0xbee   : > { %v6452_v52 = vpop.f32.mrb[211].mxu0  ;;  %6498 = vmatmul.mubr.msk.f32.gmra.mrb[234].mxu1 %vm872_vm3, %v9072_v53 }
 0xbef   : > { %6500 = vmatprep.mubr.msk.f32.mxu1 %vm7094_vm0, %v7095_v4 }
 0xbf5   : > { %v9078_v3 = vpop.f32.mrb[212].mxu0 }
 0xbf6   : > { %v6455_v25 = vpop.f32.mrb[213].mxu0  ;;  %6501 = vmatmul.mubr.msk.f32.gmra.mrb[236].mxu1 %vm872_vm3, %v9078_v3 }
 0xbf7   : > { %6503 = vmatprep.mubr.msk.f32.mxu1 %vm7094_vm0, %v7095_v4 }
 0xbfd   : > { %v9084_v5 = vpop.f32.mrb[214].mxu0 }
 0xbfe   : > { %v6458_v28 = vpop.f32.mrb[215].mxu0  ;;  %6504 = vmatmul.mubr.msk.f32.gmra.mrb[238].mxu1 %vm872_vm3, %v9084_v5 }
 0xbff   : > { %6506 = vmatprep.mubr.msk.f32.mxu1 %vm7094_vm0, %v7095_v4 }
 0xc05   : > { %v9090_v56 = vpop.f32.mrb[216].mxu0 }
 0xc06   : > { %v6461_v41 = vpop.f32.mrb[217].mxu0  ;;  %6507 = vmatmul.mubr.msk.f32.gmra.mrb[240].mxu1 %vm872_vm3, %v9090_v56 }
 0xc07   : > { %6509 = vmatprep.mubr.msk.f32.mxu1 %vm7094_vm0, %v7095_v4 }
 0xc0d   : > { %v9109_v57 = vpop.f32.mrb[218].mxu0 }
 0xc0e   : > { %v6464_v17 = vpop.f32.mrb[219].mxu0  ;;  %6510 = vmatmul.mubr.msk.f32.gmra.mrb[242].mxu1 %vm872_vm3, %v9109_v57 }
 0xc0f   : > { %6512 = vmatprep.mubr.msk.f32.mxu1 %vm7094_vm0, %v7095_v4 }
 0xc15   : > { %v9116_v26 = vpop.f32.mrb[220].mxu0 }
 0xc16   : > { %v6467_v44 = vpop.f32.mrb[221].mxu0  ;;  %6513 = vmatmul.mubr.msk.f32.gmra.mrb[244].mxu1 %vm872_vm3, %v9116_v26 }
 0xc17   : > { %6566 = vmatprep.mubr.msk.f32.mxu1 %vm7094_vm0, %v7095_v4 }
 0xc1a   : > { %6567 = vmatmul.mubr.msk.f32.vlgmr.msra.gmra.mrb[246].mxu1 %vm1251_vm8, %v8043_v55  ;;  %v9175_v55 = vld [vmem:[%s9442_s5 + $0x2] ss:$0 sm:$0xff] }
 0xc1b   : > { %6569 = vmatprep.mubr.msk.f32.mxu1 %vm7094_vm0, %v7095_v4 }
 0xc1e   : > { %6570 = vmatmul.mubr.msk.f32.gmra.mrb[248].mxu1 %vm1251_vm8, %v8052_v60 }
 0xc1f   : > { %6572 = vmatprep.mubr.msk.f32.mxu1 %vm7094_vm0, %v7095_v4 }
 0xc22   : > { %6573 = vmatmul.mubr.msk.f32.gmra.mrb[250].mxu1 %vm1251_vm8, %v8061_v0 }
 0xc23   : > { %6575 = vmatprep.mubr.msk.f32.mxu1 %vm7094_vm0, %v7095_v4 }
 0xc26   : > { %6576 = vmatmul.mubr.msk.f32.gmra.mrb[252].mxu1 %vm1251_vm8, %v8070_v21 }
 0xc27   : > { %6578 = vmatprep.mubr.msk.f32.mxu1 %vm7094_vm0, %v7095_v4 }
 0xc2a   : > { %6579 = vmatmul.mubr.msk.f32.gmra.mrb[254].mxu1 %vm1251_vm8, %v8079_v6 }
 0xc2b   : > { %6581 = vmatprep.mubr.msk.f32.mxu1 %vm7094_vm0, %v7095_v4 }
 0xc2e   : > { %6582 = vmatmul.mubr.msk.f32.gmra.mrb[0].mxu1 %vm1251_vm8, %v8088_v9 }
 0xc2f   : > { %6584 = vmatprep.mubr.msk.f32.mxu1 %vm7094_vm0, %v7095_v4 }
 0xc32   : > { %6585 = vmatmul.mubr.msk.f32.gmra.mrb[2].mxu1 %vm1251_vm8, %v8097_v11 }
 0xc33   : > { %6587 = vmatprep.mubr.msk.f32.mxu1 %vm7094_vm0, %v7095_v4 }
 0xc36   : > { %6588 = vmatmul.mubr.msk.f32.gmra.mrb[4].mxu1 %vm1251_vm8, %v8115_v16 }
 0xc37   : > { %6590 = vmatprep.mubr.msk.f32.mxu1 %vm7094_vm0, %v7095_v4 }
 0xc3a   : > { %6591 = vmatmul.mubr.msk.f32.gmra.mrb[6].mxu1 %vm1251_vm8, %v8142_v34 }
 0xc3b   : > { %6593 = vmatprep.mubr.msk.f32.mxu1 %vm7094_vm0, %v7095_v4 }
 0xc3e   : > { %6594 = vmatmul.mubr.msk.f32.gmra.mrb[8].mxu1 %vm1251_vm8, %v8171_v48 }
 0xc3f   : > { %6596 = vmatprep.mubr.msk.f32.mxu1 %vm7094_vm0, %v7095_v4 }
 0xc42   : > { %6597 = vmatmul.mubr.msk.f32.gmra.mrb[10].mxu1 %vm1251_vm8, %v8200_v35 }
 0xc43   : > { %6599 = vmatprep.mubr.msk.f32.mxu1 %vm7094_vm0, %v7095_v4 }
 0xc46   : > { %6600 = vmatmul.mubr.msk.f32.gmra.mrb[12].mxu1 %vm1251_vm8, %v8221_v43 }
 0xc47   : > { %6602 = vmatprep.mubr.msk.f32.mxu1 %vm7094_vm0, %v7095_v4 }
 0xc4a   : > { %6603 = vmatmul.mubr.msk.f32.gmra.mrb[14].mxu1 %vm1251_vm8, %v8235_v49 }
 0xc8a   : > { %v4058_v60 = vpop.f32.mrb[220].mxu1 }
 0xc8b   : > { %v4059_v0 = vadd.f32 %v9175_v55, %v4058_v60  ;;  %v6478_v21 = vpop.f32.mrb[221].mxu1 }
 0xc8d   : > { %v4122_v6 = vmax.f32 %v4059_v0, 0.0 }
 0xc8f   : > { %v4135_v9 = vadd.f32 %v4122_v6, %v9028_v22 }
 0xc91   : > { %v4063_v11 = vpop.f32.mrb[222].mxu1  ;;  %6524 = vmatmul.mubr.msk.f32.vlgmr.msra.gmra.mrb[222].mxu0 %vm872_vm3, %v4135_v9 }
 0xc92   : > { %v4064_v16 = vadd.f32 %v9175_v55, %v4063_v11  ;;  %v6481_v34 = vpop.f32.mrb[223].mxu1  ;;  %6526 = vmatprep.mubr.msk.f32.mxu0 %vm7094_vm0, %v7095_v4  ;;  %6827 = vmatpush3.bf16.msra.mxu0 %v8111_v14 }
 0xc93   : > { %6828 = vmatprep.subr.bf16.mxu0 %v7093_v2 }
 0xc94   : > { %v4123_v48 = vmax.f32 %v4064_v16, 0.0 }
 0xc96   : > { %v4136_v35 = vadd.f32 %v4123_v48, %v9036_v61  ;;  %6830 = vmatpush3.bf16.msra.mxu0 %v8133_v29 }
 0xc97   : > { %6831 = vmatprep.subr.bf16.mxu0 %v7093_v2 }
 0xc98   : > { %6527 = vmatmul.mubr.msk.f32.gmra.mrb[224].mxu0 %vm872_vm3, %v4136_v35 }
 0xc99   : > { %v4068_v43 = vpop.f32.mrb[224].mxu1  ;;  %6529 = vmatprep.mubr.msk.f32.mxu0 %vm7094_vm0, %v7095_v4 }
 0xc9a   : > { %v4069_v49 = vadd.f32 %v9175_v55, %v4068_v43  ;;  %v6484_v22 = vpop.f32.mrb[225].mxu1  ;;  %6833 = vmatpush3.bf16.msra.mxu0 %v8139_v31 }
 0xc9b   : > { %6834 = vmatprep.subr.bf16.mxu0 %v7093_v2 }
 0xc9c   : > { %v4124_v14 = vmax.f32 %v4069_v49, 0.0 }
 0xc9e   : > { %v4137_v61 = vadd.f32 %v4124_v14, %v9042_v33  ;;  %6836 = vmatpush3.bf16.msra.mxu0 %v8162_v42 }
 0xc9f   : > { %6837 = vmatprep.subr.bf16.mxu0 %v7093_v2 }
 0xca0   : > { %6530 = vmatmul.mubr.msk.f32.gmra.mrb[226].mxu0 %vm872_vm3, %v4137_v61 }
 0xca1   : > { %v4073_v29 = vpop.f32.mrb[226].mxu1  ;;  %6532 = vmatprep.mubr.msk.f32.mxu0 %vm7094_vm0, %v7095_v4 }
 0xca2   : > { %v4074_v36 = vadd.f32 %v9175_v55, %v4073_v29  ;;  %v6487_v30 = vpop.f32.mrb[227].mxu1  ;;  %6839 = vmatpush3.bf16.msra.mxu0 %v8168_v47 }
 0xca3   : > { %6840 = vmatprep.subr.bf16.mxu0 %v7093_v2 }
 0xca4   : > { %v4125_v31 = vmax.f32 %v4074_v36, 0.0 }
 0xca6   : > { %v4138_v33 = vadd.f32 %v4125_v31, %v9048_v23  ;;  %6842 = vmatpush3.bf16.msra.mxu0 %v8191_v54 }
 0xca7   : > { %6843 = vmatprep.subr.bf16.mxu0 %v7093_v2 }
 0xca8   : > { %6533 = vmatmul.mubr.msk.f32.gmra.mrb[228].mxu0 %vm872_vm3, %v4138_v33 }
 0xca9   : > { %v4078_v42 = vpop.f32.mrb[228].mxu1  ;;  %6535 = vmatprep.mubr.msk.f32.mxu0 %vm7094_vm0, %v7095_v4 }
 0xcaa   : > { %v4079_v7 = vadd.f32 %v9175_v55, %v4078_v42  ;;  %v6490_v52 = vpop.f32.mrb[229].mxu1  ;;  %6845 = vmatpush3.bf16.msra.mxu0 %v8197_v59 }
 0xcab   : > { %6846 = vmatprep.subr.bf16.mxu0 %v7093_v2 }
 0xcac   : > { %v4126_v47 = vmax.f32 %v4079_v7, 0.0 }
 0xcae   : > { %v4139_v23 = vadd.f32 %v4126_v47, %v9054_v19  ;;  %6848 = vmatpush3.bf16.msra.mxu0 %v8217_v20 }
 0xcb0   : > { %6536 = vmatmul.mubr.msk.f32.gmra.mrb[230].mxu0 %vm872_vm3, %v4139_v23 }
 0xcb1   : > { %v4083_v54 = vpop.f32.mrb[230].mxu1  ;;  %6538 = vmatprep.mubr.msk.f32.mxu0 %vm7094_vm0, %v7095_v4 }
 0xcb2   : > { %v4084_v25 = vadd.f32 %v9175_v55, %v4083_v54  ;;  %v6493_v28 = vpop.f32.mrb[231].mxu1 }
 0xcb4   : > { %v4127_v41 = vmax.f32 %v4084_v25, 0.0 }
 0xcb6   : > { %v4140_v13 = vadd.f32 %v4127_v41, %v9060_v58 }
 0xcb8   : > { %6539 = vmatmul.mubr.msk.f32.gmra.mrb[232].mxu0 %vm872_vm3, %v4140_v13 }
 0xcb9   : > { %v4088_v2 = vpop.f32.mrb[232].mxu1  ;;  %6541 = vmatprep.mubr.msk.f32.mxu0 %vm7094_vm0, %v7095_v4 }
 0xcba   : > { %v4089_v59 = vadd.f32 %v9175_v55, %v4088_v2  ;;  %v6496_v20 = vpop.f32.mrb[233].mxu1 }
 0xcbc   : > { %v4128_v19 = vmax.f32 %v4089_v59, 0.0 }
 0xcbe   : > { %v4141_v45 = vadd.f32 %v4128_v19, %v9066_v39 }
 0xcc0   : > { %6542 = vmatmul.mubr.msk.f32.gmra.mrb[234].mxu0 %vm872_vm3, %v4141_v45 }
 0xcc1   : > { %v4093_v27 = vpop.f32.mrb[234].mxu1  ;;  %6544 = vmatprep.mubr.msk.f32.mxu0 %vm7094_vm0, %v7095_v4 }
 0xcc2   : > { %v4094_v58 = vadd.f32 %v9175_v55, %v4093_v27  ;;  %v6499_v8 = vpop.f32.mrb[235].mxu1 }
 0xcc4   : > { %v4129_v1 = vmax.f32 %v4094_v58, 0.0 }
 0xcc6   : > { %v4142_v18 = vadd.f32 %v4129_v1, %v9072_v53 }
 0xcc8   : > { %6545 = vmatmul.mubr.msk.f32.gmra.mrb[236].mxu0 %vm872_vm3, %v4142_v18 }
 0xcc9   : > { %v4098_v17 = vpop.f32.mrb[236].mxu1  ;;  %6547 = vmatprep.mubr.msk.f32.mxu0 %vm7094_vm0, %v7095_v4 }
 0xcca   : > { %v4099_v39 = vadd.f32 %v9175_v55, %v4098_v17  ;;  %v6502_v44 = vpop.f32.mrb[237].mxu1 }
 0xccc   : > { %v4130_v60 = vmax.f32 %v4099_v39, 0.0 }
 0xcce   : > { %v4143_v0 = vadd.f32 %v4130_v60, %v9078_v3 }
 0xcd0   : > { %6548 = vmatmul.mubr.msk.f32.gmra.mrb[238].mxu0 %vm872_vm3, %v4143_v0 }
 0xcd1   : > { %v4103_v21 = vpop.f32.mrb[238].mxu1  ;;  %6550 = vmatprep.mubr.msk.f32.mxu0 %vm7094_vm0, %v7095_v4 }
 0xcd2   : > { %v4104_v53 = vadd.f32 %v9175_v55, %v4103_v21  ;;  %v6505_v6 = vpop.f32.mrb[239].mxu1 }
 0xcd4   : > { %v4131_v9 = vmax.f32 %v4104_v53, 0.0 }
 0xcd6   : > { %v4144_v11 = vadd.f32 %v4131_v9, %v9084_v5 }
 0xcd8   : > { %6551 = vmatmul.mubr.msk.f32.gmra.mrb[240].mxu0 %vm872_vm3, %v4144_v11 }
 0xcd9   : > { %v4108_v16 = vpop.f32.mrb[240].mxu1  ;;  %6553 = vmatprep.mubr.msk.f32.mxu0 %vm7094_vm0, %v7095_v4 }
 0xcda   : > { %v4109_v3 = vadd.f32 %v9175_v55, %v4108_v16  ;;  %v6508_v34 = vpop.f32.mrb[241].mxu1 }
 0xcdc   : > { %v4132_v48 = vmax.f32 %v4109_v3, 0.0 }
 0xcde   : > { %v4145_v35 = vadd.f32 %v4132_v48, %v9090_v56 }
 0xce0   : > { %6554 = vmatmul.mubr.msk.f32.gmra.mrb[242].mxu0 %vm872_vm3, %v4145_v35 }
 0xce1   : > { %v4113_v43 = vpop.f32.mrb[242].mxu1  ;;  %6556 = vmatprep.mubr.msk.f32.mxu0 %vm7094_vm0, %v7095_v4 }
 0xce2   : > { %v4114_v5 = vadd.f32 %v9175_v55, %v4113_v43  ;;  %v6511_v49 = vpop.f32.mrb[243].mxu1 }
 0xce4   : > { %v4133_v22 = vmax.f32 %v4114_v5, 0.0 }
 0xce6   : > { %v4146_v14 = vadd.f32 %v4133_v22, %v9109_v57 }
 0xce8   : > { %6557 = vmatmul.mubr.msk.f32.gmra.mrb[244].mxu0 %vm872_vm3, %v4146_v14 }
 0xce9   : > { %v4118_v61 = vpop.f32.mrb[244].mxu1  ;;  %6559 = vmatprep.mubr.msk.f32.mxu0 %vm7094_vm0, %v7095_v4 }
 0xcea   : > { %v4119_v56 = vadd.f32 %v9175_v55, %v4118_v61  ;;  %v6514_v29 = vpop.f32.mrb[245].mxu1 }
 0xcec   : > { %v4134_v36 = vmax.f32 %v4119_v56, 0.0 }
 0xced   : > { %v4407_v30 = vpop.f32.mrb[246].mxu1 }
 0xcee   : > { %v4147_v31 = vadd.f32 %v4134_v36, %v9116_v26  ;;  %v6568_v33 = vpop.f32.mrb[247].mxu1 }
 0xcf0   : > { %6560 = vmatmul.mubr.msk.f32.gmra.mrb[246].mxu0 %vm872_vm3, %v4147_v31 }
 0xcf1   : > { %v4412_v42 = vpop.f32.mrb[248].mxu1  ;;  %6637 = vmatprep.mubr.msk.f32.mxu0 %vm7094_vm0, %v7095_v4 }
 0xcf2   : > { %v6571_v57 = vpop.f32.mrb[249].mxu1 }
 0xcf5   : > { %v4417_v7 = vpop.f32.mrb[250].mxu1 }
 0xcf6   : > { %v6574_v52 = vpop.f32.mrb[251].mxu1 }
 0xcf9   : > { %v4422_v47 = vpop.f32.mrb[252].mxu1 }
 0xcfa   : > { %v6577_v23 = vpop.f32.mrb[253].mxu1 }
 0xcfd   : > { %v4427_v54 = vpop.f32.mrb[254].mxu1 }
 0xcfe   : > { %v6580_v25 = vpop.f32.mrb[255].mxu1 }
 0xd01   : > { %v4432_v55 = vpop.f32.mrb[0].mxu1 }
 0xd02   : > { %v6583_v28 = vpop.f32.mrb[1].mxu1 }
 0xd05   : > { %v4437_v41 = vpop.f32.mrb[2].mxu1 }
 0xd06   : > { %v6586_v13 = vpop.f32.mrb[3].mxu1 }
 0xd09   : > { %v4442_v2 = vpop.f32.mrb[4].mxu1 }
 0xd0a   : > { %v6589_v26 = vpop.f32.mrb[5].mxu1 }
 0xd0d   : > { %v4447_v59 = vpop.f32.mrb[6].mxu1 }
 0xd0e   : > { %v6592_v20 = vpop.f32.mrb[7].mxu1 }
 0xd0f   : > { %v4615_v20 = vpop.permute.xlu0 %4614 }
 0xd11   : > { %v9257_v19 = vpop.f32.mrb[8].mxu1 }
 0xd12   : > { %v6595_v45 = vpop.f32.mrb[9].mxu1 }
 0xd15   : > { %v9259_v27 = vpop.f32.mrb[10].mxu1 }
 0xd16   : > { %v6598_v58 = vpop.f32.mrb[11].mxu1 }
 0xd19   : > { %v9261_v8 = vpop.f32.mrb[12].mxu1 }
 0xd1a   : > { %v6601_v1 = vpop.f32.mrb[13].mxu1 }
 0xd1d   : > { %v9263_v18 = vpop.f32.mrb[14].mxu1 }
 0xd1e   : > { %v6604_v17 = vpop.f32.mrb[15].mxu1 }
 0xd64   : > { %v4258_v39 = vpop.f32.mrb[222].mxu0 }
 0xd65   : > { %v4322_v44 = vadd.f32 %v4258_v39, %v8938_v15  ;;  %v6525_v60 = vpop.f32.mrb[223].mxu0 }
 0xd67   : > { %v4471_v0 = vmul.f32 %v4407_v30, %v4322_v44 }
 0xd69   : > { %6638 = vmatmul.mubr.f32.vlgmr.msra.gmra.mrb[248].mxu0 %v4471_v0 }
 0xd6a   : > { %6640 = vmatprep.mubr.msk.f32.mxu0 %vm7094_vm0, %v7095_v4 }
 0xd6b   : > { %v4263_v21 = vpop.f32.mrb[224].mxu0 }
 0xd6c   : > { %v4323_v53 = vadd.f32 %v4263_v21, %v8944_v63  ;;  %v6528_v6 = vpop.f32.mrb[225].mxu0  ;;  %v4623_v21 = vpop.permute.xlu0 %4622 }
 0xd6e   : > { %v4472_v9 = vmul.f32 %v4412_v42, %v4323_v53 }
 0xd70   : > { %6641 = vmatmul.mubr.f32.gmra.mrb[250].mxu0 %v4472_v9 }
 0xd71   : > { %6643 = vmatprep.mubr.msk.f32.mxu0 %vm7094_vm0, %v7095_v4 }
 0xd73   : > { %v4268_v11 = vpop.f32.mrb[226].mxu0 }
 0xd74   : > { %v4324_v16 = vadd.f32 %v4268_v11, %v8950_v24  ;;  %v6531_v3 = vpop.f32.mrb[227].mxu0 }
 0xd76   : > { %v4473_v15 = vmul.f32 %v4417_v7, %v4324_v16 }
 0xd78   : > { %6644 = vmatmul.mubr.f32.gmra.mrb[252].mxu0 %v4473_v15 }
 0xd79   : > { %6646 = vmatprep.mubr.msk.f32.mxu0 %vm7094_vm0, %v7095_v4 }
 0xd7b   : > { %v4273_v34 = vpop.f32.mrb[228].mxu0 }
 0xd7c   : > { %v4325_v48 = vadd.f32 %v4273_v34, %v8956_v32  ;;  %v6534_v35 = vpop.f32.mrb[229].mxu0  ;;  %v4627_v34 = vpop.permute.xlu0 %4626 }
 0xd7e   : > { %v4474_v63 = vmul.f32 %v4422_v47, %v4325_v48 }
 0xd80   : > { %6647 = vmatmul.mubr.f32.gmra.mrb[254].mxu0 %v4474_v63 }
 0xd81   : > { %6649 = vmatprep.mubr.msk.f32.mxu0 %vm7094_vm0, %v7095_v4 }
 0xd83   : > { %v4278_v43 = vpop.f32.mrb[230].mxu0 }
 0xd84   : > { %v4326_v5 = vadd.f32 %v4278_v43, %v8962_v62  ;;  %v6537_v49 = vpop.f32.mrb[231].mxu0 }
 0xd86   : > { %v4475_v24 = vmul.f32 %v4427_v54, %v4326_v5 }
 0xd88   : > { %6650 = vmatmul.mubr.f32.gmra.mrb[0].mxu0 %v4475_v24 }
 0xd89   : > { %6652 = vmatprep.mubr.msk.f32.mxu0 %vm7094_vm0, %v7095_v4 }
 0xd8b   : > { %v4283_v22 = vpop.f32.mrb[232].mxu0 }
 0xd8c   : > { %v4327_v14 = vadd.f32 %v4283_v22, %v8968_v40  ;;  %v6540_v61 = vpop.f32.mrb[233].mxu0  ;;  %v4631_v22 = vpop.permute.xlu0 %4630 }
 0xd8e   : > { %v4476_v32 = vmul.f32 %v4432_v55, %v4327_v14 }
 0xd90   : > { %6653 = vmatmul.mubr.f32.gmra.mrb[2].mxu0 %v4476_v32 }
 0xd91   : > { %6655 = vmatprep.mubr.msk.f32.mxu0 %vm7094_vm0, %v7095_v4 }
 0xd93   : > { %v4288_v56 = vpop.f32.mrb[234].mxu0 }
 0xd94   : > { %v4328_v29 = vadd.f32 %v4288_v56, %v8974_v50  ;;  %v6543_v36 = vpop.f32.mrb[235].mxu0 }
 0xd96   : > { %v4477_v62 = vmul.f32 %v4437_v41, %v4328_v29 }
 0xd98   : > { %6656 = vmatmul.mubr.f32.gmra.mrb[4].mxu0 %v4477_v62 }
 0xd99   : > { %6658 = vmatprep.mubr.msk.f32.mxu0 %vm7094_vm0, %v7095_v4 }
 0xd9b   : > { %v4293_v30 = vpop.f32.mrb[236].mxu0 }
 0xd9c   : > { %v4329_v31 = vadd.f32 %v4293_v30, %v8981_v46  ;;  %v6546_v33 = vpop.f32.mrb[237].mxu0  ;;  %v4635_v30 = vpop.permute.xlu0 %4634 }
 0xd9e   : > { %v4478_v40 = vmul.f32 %v4442_v2, %v4329_v31 }
 0xda0   : > { %6659 = vmatmul.mubr.f32.gmra.mrb[6].mxu0 %v4478_v40 }
 0xda1   : > { %6661 = vmatprep.mubr.msk.f32.mxu0 %vm7094_vm0, %v7095_v4 }
 0xda3   : > { %v4298_v42 = vpop.f32.mrb[238].mxu0 }
 0xda4   : > { %v4330_v57 = vadd.f32 %v4298_v42, %v8988_v51  ;;  %v6549_v7 = vpop.f32.mrb[239].mxu0 }
 0xda6   : > { %v4479_v50 = vmul.f32 %v4447_v59, %v4330_v57 }
 0xda8   : > { %6662 = vmatmul.mubr.f32.gmra.mrb[8].mxu0 %v4479_v50 }
 0xda9   : > { %6664 = vmatprep.mubr.msk.f32.mxu0 %vm7094_vm0, %v7095_v4 }
 0xdab   : > { %v4303_v52 = vpop.f32.mrb[240].mxu0 }
 0xdac   : > { %v4331_v47 = vadd.f32 %v4303_v52, %v8995_v10  ;;  %v6552_v23 = vpop.f32.mrb[241].mxu0  ;;  %v4639_v52 = vpop.permute.xlu0 %4638 }
 0xdae   : > { %v4480_v46 = vmul.f32 %v9257_v19, %v4331_v47 }
 0xdb0   : > { %6665 = vmatmul.mubr.f32.gmra.mrb[10].mxu0 %v4480_v46 }
 0xdb1   : > { %6667 = vmatprep.mubr.msk.f32.mxu0 %vm7094_vm0, %v7095_v4 }
 0xdb3   : > { %v4308_v54 = vpop.f32.mrb[242].mxu0 }
 0xdb4   : > { %v4332_v25 = vadd.f32 %v4308_v54, %v9002_v38  ;;  %v6555_v51 = vpop.f32.mrb[243].mxu0 }
 0xdb6   : > { %v4481_v55 = vmul.f32 %v9259_v27, %v4332_v25 }
 0xdb8   : > { %6668 = vmatmul.mubr.f32.gmra.mrb[12].mxu0 %v4481_v55 }
 0xdb9   : > { %6670 = vmatprep.mubr.msk.f32.mxu0 %vm7094_vm0, %v7095_v4 }
 0xdbb   : > { %v4313_v28 = vpop.f32.mrb[244].mxu0 }
 0xdbc   : > { %v4333_v10 = vadd.f32 %v4313_v28, %v9009_v37  ;;  %v6558_v41 = vpop.f32.mrb[245].mxu0 }
 0xdbe   : > { %v4482_v13 = vmul.f32 %v9261_v8, %v4333_v10 }
 0xdc0   : > { %6671 = vmatmul.mubr.f32.gmra.mrb[14].mxu0 %v4482_v13 }
 0xdc1   : > { %6673 = vmatprep.mubr.msk.f32.mxu0 %vm7094_vm0, %v7095_v4  ;;  %v4617_v4 = vpop.permute.xlu1 %4616 }
 0xdc3   : > { %v4318_v2 = vpop.f32.mrb[246].mxu0 }
 0xdc4   : > { %v4334_v38 = vadd.f32 %v4318_v2, %v9016_v12  ;;  %v6561_v26 = vpop.f32.mrb[247].mxu0 }
 0xdc5   : > { %v4619_v8 = vpop.permute.xlu1 %4618 }
 0xdc6   : > { %v4483_v59 = vmul.f32 %v9263_v18, %v4334_v38 }
 0xdc8   : > { %6674 = vmatmul.mubr.f32.gmra.mrb[16].mxu0 %v4483_v59 }
 0xdc9   : > { %v4621_v39 = vpop.permute.xlu1 %4620 }
 0xdcd   : > { %v4625_v11 = vpop.permute.xlu1 %4624 }
 0xdd1   : > { %v4629_v43 = vpop.permute.xlu1 %4628 }
 0xdd5   : > { %v4633_v56 = vpop.permute.xlu1 %4632 }
 0xdd9   : > { %v4637_v42 = vpop.permute.xlu1 %4636 }
 0xe3c   : > { %v4550_v19 = vpop.f32.mrb[248].mxu0 }
 0xe3d   : > { %v4653_v37 = vsel %vm872_vm3, %v4550_v19, %v4615_v20  ;;  %v6639_v45 = vpop.f32.mrb[249].mxu0 }
 0xe3e   : > { %4667 = vst.msk [vmem:[%s9308_s20] sm:$0xff] %vm4666_vm5, %v4653_v37 }
 0xe43   : > { %v4555_v12 = vpop.f32.mrb[250].mxu0 }
 0xe44   : > { %v4654_v27 = vsel %vm872_vm3, %v4555_v12, %v4617_v4  ;;  %v6642_v58 = vpop.f32.mrb[251].mxu0 }
 0xe45   : > { %4668 = vst.msk [vmem:[%s9308_s20 + $0x8] sm:$0xff] %vm4666_vm5, %v4654_v27 }
 0xe4b   : > { %v4560_v1 = vpop.f32.mrb[252].mxu0 }
 0xe4c   : > { %v4655_v18 = vsel %vm872_vm3, %v4560_v1, %v4619_v8  ;;  %v6645_v17 = vpop.f32.mrb[253].mxu0 }
 0xe4d   : > { %4669 = vst.msk [vmem:[%s9308_s20 + $0x10] sm:$0xff] %vm4666_vm5, %v4655_v18 }
 0xe53   : > { %v4565_v44 = vpop.f32.mrb[254].mxu0 }
 0xe54   : > { %v4656_v60 = vsel %vm872_vm3, %v4565_v44, %v4621_v39  ;;  %v6648_v0 = vpop.f32.mrb[255].mxu0 }
 0xe55   : > { %4670 = vst.msk [vmem:[%s9308_s20 + $0x18] sm:$0xff] %vm4666_vm5, %v4656_v60 }
 0xe5b   : > { %v4570_v53 = vpop.f32.mrb[0].mxu0 }
 0xe5c   : > { %v4657_v6 = vsel %vm872_vm3, %v4570_v53, %v4623_v21  ;;  %v6651_v9 = vpop.f32.mrb[1].mxu0 }
 0xe5d   : > { %4671 = vst.msk [vmem:[%s9308_s20 + $0x20] sm:$0xff] %vm4666_vm5, %v4657_v6 }
 0xe63   : > { %v4575_v16 = vpop.f32.mrb[2].mxu0 }
 0xe64   : > { %v4658_v3 = vsel %vm872_vm3, %v4575_v16, %v4625_v11  ;;  %v6654_v15 = vpop.f32.mrb[3].mxu0 }
 0xe65   : > { %4672 = vst.msk [vmem:[%s9308_s20 + $0x28] sm:$0xff] %vm4666_vm5, %v4658_v3 }
 0xe6b   : > { %v4580_v48 = vpop.f32.mrb[4].mxu0 }
 0xe6c   : > { %v4659_v35 = vsel %vm872_vm3, %v4580_v48, %v4627_v34  ;;  %v6657_v63 = vpop.f32.mrb[5].mxu0 }
 0xe6d   : > { %4673 = vst.msk [vmem:[%s9308_s20 + $0x30] sm:$0xff] %vm4666_vm5, %v4659_v35 }
 0xe73   : > { %v4585_v5 = vpop.f32.mrb[6].mxu0 }
 0xe74   : > { %v4660_v49 = vsel %vm872_vm3, %v4585_v5, %v4629_v43  ;;  %v6660_v24 = vpop.f32.mrb[7].mxu0 }
 0xe75   : > { %4674 = vst.msk [vmem:[%s9308_s20 + $0x38] sm:$0xff] %vm4666_vm5, %v4660_v49 }
 0xe7b   : > { %v4590_v14 = vpop.f32.mrb[8].mxu0 }
 0xe7c   : > { %v4661_v61 = vsel %vm872_vm3, %v4590_v14, %v4631_v22  ;;  %v6663_v32 = vpop.f32.mrb[9].mxu0 }
 0xe7d   : > { %4675 = vst.msk [vmem:[%s9308_s20 + $0x40] sm:$0xff] %vm4666_vm5, %v4661_v61 }
 0xe83   : > { %v4595_v29 = vpop.f32.mrb[10].mxu0 }
 0xe84   : > { %v4662_v36 = vsel %vm872_vm3, %v4595_v29, %v4633_v56  ;;  %v6666_v62 = vpop.f32.mrb[11].mxu0 }
 0xe85   : > { %4676 = vst.msk [vmem:[%s9308_s20 + $0x48] sm:$0xff] %vm4666_vm5, %v4662_v36 }
 0xe8b   : > { %v4600_v31 = vpop.f32.mrb[12].mxu0 }
 0xe8c   : > { %v4663_v33 = vsel %vm872_vm3, %v4600_v31, %v4635_v30  ;;  %v6669_v40 = vpop.f32.mrb[13].mxu0 }
 0xe8d   : > { %4677 = vst.msk [vmem:[%s9308_s20 + $0x50] sm:$0xff] %vm4666_vm5, %v4663_v33 }
 0xe93   : > { %v4605_v57 = vpop.f32.mrb[14].mxu0 }
 0xe94   : > { %v4664_v7 = vsel %vm872_vm3, %v4605_v57, %v4637_v42  ;;  %v6672_v50 = vpop.f32.mrb[15].mxu0 }
 0xe95   : > { %4678 = vst.msk [vmem:[%s9308_s20 + $0x58] sm:$0xff] %vm4666_vm5, %v4664_v7 }
 0xe97   : > { %4686 = sbr.rel (!%p7214_p4) target bundleno = 3803 (0xedb), region = 92 }
 0xe9b   : > { %v4610_v47 = vpop.f32.mrb[16].mxu0 }
 0xe9c   : > { %v4665_v23 = vsel %vm872_vm3, %v4610_v47, %v4639_v52  ;;  %v6675_v46 = vpop.f32.mrb[17].mxu0 }
 0xe9d   : > { %4679 = vst.msk [vmem:[%s9308_s20 + $0x60] sm:$0xff] %vm4666_vm5, %v4665_v23 }
 0xe9e   : > { %s9479_s24 = smov (!%p4689_p8, %s4688_s24), 13 }
 0xe9f   : > { %s5226_s26 = sshll.u32 %s9479_s24, 7 }
 0xea0   : > { %p5229_p9 = scmp.eq.s32.totalorder %s5226_s26, 0 }
 0xea1   : > { %7001 = sdivrem.u32 (!%p5229_p9), %s9479_s24, 13 }
 0xea2   : > { %4697 = sbr.rel (%p5229_p9) target bundleno = 3803 (0xedb), region = 96 }
 0xeaa   : > { %s9361_s18 = spop.drf %7001 }
 0xeab   : > { %p5230_p10 = scmp.le.s32.totalorder %s9361_s18, 0 }
 0xeac   : > { %s9471_s27 = smov (!%p5230_p10), %s9355_s21  ;;  %s9472_s22 = smov (!%p5230_p10), %s9308_s20 }
 0xead   : > { %4907 = sbr.rel (%p5230_p10) target bundleno = 3774 (0xebe), region = 185  ;;  %s9370_s0 = smov (!%p5230_p10), 0  }
 0xeae   : > { %s9372_s19 = smov (!%p5230_p10), 0  }
 0xeb4 LB: >> { %v4785_v54 = vld [vmem:[%s7067_s22] sm:$0xff]  ;;  %v4787_v25 = vld [vmem:[%s7067_s22 + $0x8] sm:$0xff]  ;;  %v4789_v51 = vld [vmem:[%s7067_s22 + $0x10] sm:$0xff]  ;;  %s4811_s1 = sadd.s32 1, %s7071_s0  ;;  %s4779_s19 = sadd.s32 1, %s7075_s19   ;;  %s7075_s19 = sphi %s9372_s19, %s4779_s19   ;;  %s7071_s0 = sphi %s9370_s0, %s9473_s0   ;;  %s7067_s22 = sphi %s9472_s22, %s4816_s22   ;;  %s7063_s27 = sphi %s9471_s27, %s4817_s27  }
 0xeb5   : >> { %4786 = vst [vmem:[%s7063_s27] sm:$0xff] %v4785_v54  ;;  %4788 = vst [vmem:[%s7063_s27 + $0x8] sm:$0xff] %v4787_v25  ;;  %v4791_v55 = vld [vmem:[%s7067_s22 + $0x18] sm:$0xff]  ;;  %v4793_v28 = vld [vmem:[%s7067_s22 + $0x20] sm:$0xff]  ;;  %p4812_p11 = scmp.ge.s32.totalorder %s4811_s1, %s9361_s18  ;;  %p4778_p12 = scmp.ge.s32.totalorder %s4779_s19, %s9361_s18 }
 0xeb6   : >> { %4790 = vst [vmem:[%s7063_s27 + $0x10] sm:$0xff] %v4789_v51  ;;  %v4795_v10 = vld [vmem:[%s7067_s22 + $0x28] sm:$0xff]  ;;  %4792 = vst [vmem:[%s7063_s27 + $0x18] sm:$0xff] %v4791_v55  ;;  %v4797_v41 = vld [vmem:[%s7067_s22 + $0x30] sm:$0xff] }
 0xeb7   : >> { %4794 = vst [vmem:[%s7063_s27 + $0x20] sm:$0xff] %v4793_v28  ;;  %4796 = vst [vmem:[%s7063_s27 + $0x28] sm:$0xff] %v4795_v10  ;;  %v4799_v13 = vld [vmem:[%s7067_s22 + $0x38] sm:$0xff]  ;;  %v4801_v2 = vld [vmem:[%s7067_s22 + $0x40] sm:$0xff]  ;;  %s9481_s1 = smov (%p4812_p11, %s4811_s1), 0  ;;  %4781 = sbr.rel (!%p4778_p12) target bundleno = 3764 (0xeb4), region = 191 }
 0xeb8   : >> { %4798 = vst [vmem:[%s7063_s27 + $0x30] sm:$0xff] %v4797_v41  ;;  %4800 = vst [vmem:[%s7063_s27 + $0x38] sm:$0xff] %v4799_v13  ;;  %v4803_v38 = vld [vmem:[%s7067_s22 + $0x48] sm:$0xff]  ;;  %v4805_v26 = vld [vmem:[%s7067_s22 + $0x50] sm:$0xff]  ;;  %s4814_s6 = smul.u32 104, %s9481_s1  ;;  %s9473_s0 = smov %s9481_s1 }
 0xeb9   : >> { %4802 = vst [vmem:[%s7063_s27 + $0x40] sm:$0xff] %v4801_v2  ;;  %v4807_v59 = vld [vmem:[%s7067_s22 + $0x58] sm:$0xff]  ;;  %4804 = vst [vmem:[%s7063_s27 + $0x48] sm:$0xff] %v4803_v38  ;;  %v4809_v20 = vld [vmem:[%s7067_s22 + $0x60] sm:$0xff] }
 0xeba   : >> { %4806 = vst [vmem:[%s7063_s27 + $0x50] sm:$0xff] %v4805_v26  ;;  %4808 = vst [vmem:[%s7063_s27 + $0x58] sm:$0xff] %v4807_v59  ;;  %s4816_s22 = scalar_lea.vmem %s9308_s20, %s4814_s6 [#allocation2]  }
 0xebb   : >> { %4810 = vst [vmem:[%s7063_s27 + $0x60] sm:$0xff] %v4809_v20  ;;  %s4817_s27 = scalar_lea.vmem %s9355_s21, %s4814_s6  }
 0xebe PF: > { %7003 = sdivrem.u32 %s9479_s24, 13 }
 0xebf   : > { %s5231_s23 = smul.u32 104, %s9361_s18 }
 0xec1   : > { %s4822_s30 = scalar_lea.vmem %s9308_s20, %s5231_s23 [#allocation2]   ;;  %s4824_s29 = scalar_lea.vmem %s9355_s21, %s5231_s23  }
 0xec7   : > { %s7004_s26 = spop.drf %7003 }
 0xec8   : > { %p5233_p13 = scmp.le.s32.totalorder %s7004_s26, 0 }
 0xec9   : > { %s7077_s6 = smov (!%p5233_p13), %s4824_s29   ;;  %s7081_s2 = smov (!%p5233_p13), %s4822_s30  }
 0xeca   : > { %4921 = sbr.rel (%p5233_p13) target bundleno = 3803 (0xedb), region = 196  ;;  %s7085_s3 = smov (!%p5233_p13), 0  }
 0xecb   : > { %s7089_s4 = smov (!%p5233_p13), 0  }
 0xed1 LB: >> { %v4834_v19 = vld [vmem:[%s7083_s2] sm:$0xff]  ;;  %s4836_s27 = sadd.s32 1, %s7087_s3  ;;  %s4828_s4 = sadd.s32 1, %s7091_s4   ;;  %s7091_s4 = sphi %s7089_s4, %s4828_s4   ;;  %s7087_s3 = sphi %s7085_s3, %s7086_s3   ;;  %s7083_s2 = sphi %s7081_s2, %s4841_s2   ;;  %s7079_s6 = sphi %s7077_s6, %s4842_s6  }
 0xed2   : >> { %4835 = vst [vmem:[%s7079_s6] sm:$0xff] %v4834_v19  ;;  %p4837_p0 = scmp.ge.s32.totalorder %s4836_s27, %s7004_s26  ;;  %p4827_p1 = scmp.ge.s32.totalorder %s4828_s4, %s7004_s26 }
 0xed4   : >> { %s9483_s27 = smov (%p4837_p0, %s4836_s27), 0  ;;  %4830 = sbr.rel (!%p4827_p1) target bundleno = 3793 (0xed1), region = 202 }
 0xed5   : >> { %s5234_s20 = sshll.u32 %s9483_s27, 3  ;;  %s7086_s3 = smov %s9483_s27  }
 0xed6   : >> { %s4841_s2 = scalar_lea.vmem %s4822_s30, %s5234_s20 [#allocation2]   ;;  %s4842_s6 = scalar_lea.vmem %s4824_s29, %s5234_s20  }
 0xedb PF: > { %s9474_s3 = sld [smem:[#allocation3_spill]]  ;;  %p24_p2 = scmp.ge.s32.totalorder %s7204_s28, 4  }
 0xedc   : > { %s9475_s24 = smov %s7055_s25  ;;  %s9477_s26 = smov %s7204_s28 }
 0xedd   :  { %26 = sbr.rel (!%p24_p2) target bundleno = 9 (0x9), region = 213 }
 0xee1   : > { %s9476_s25 = smov %s9474_s3 }

</bundles_post_ra>
